<compile_context>
chip_gen: v5e
topology: v5e:2x2
jax: 0.10.0
libtpu: 0.0.40
codegen_flags: <defaults>
</compile_context>

<pallas_src>
import functools

import jax
import jax.numpy as jnp
from jax import lax
from jax.experimental import pallas as pl
from jax.experimental.pallas import tpu as pltpu

_NEG_INF = -1e30


def _round_up(x, m):
    return ((x + m - 1) // m) * m


def _nonlocal_flash_kernel(x_ref, th_ref, phT_ref, g_ref, wo_ref, bsh_ref,
                           out_ref, m_sc, l_sc, acc_sc, *,
                           seq_len, tile_k, out_channels, instantiation,
                           compute_dtype, needs_key_mask):
    """Grid = (batch, query tile, kv tile); kv axis is the reduction axis.

    x_ref   : (1, C8, TQ)   residual slice of x in native channels-major layout
    th_ref  : (1, TQ, Dip)  theta tile (softmax scale pre-folded)
    phT_ref : (1, Dip, TK)  phi tile, pre-transposed (Dip-major)
    g_ref   : (1, TK, Dip)  g tile
    wo_ref  : (Dip, Cp)     output projection with BN scale folded in
    bsh_ref : (1, Cp)       conv_out bias * BN scale + BN shift (f32)
    out_ref : (1, C8, TQ)   output block in native channels-major layout
    scratch : running max (TQ,1), running sum (TQ,1), accumulator (TQ,Dip) f32
    """
    ki = pl.program_id(2)
    nk = pl.num_programs(2)

    # ---- per-query-tile init of the online-softmax state -------------------
    @pl.when(ki == 0)
    def _init():
        acc_sc[...] = jnp.zeros_like(acc_sc)
        if instantiation == "softmax":
            m_sc[...] = jnp.full_like(m_sc, _NEG_INF)
            l_sc[...] = jnp.zeros_like(l_sc)

    theta = th_ref[0]                                        # (TQ, Dip)
    phi_t = phT_ref[0]                                       # (Dip, TK)
    g = g_ref[0]                                             # (TK, Dip)

    # Plain MXU matmul: phi arrives already Dip-major (no in-kernel transpose).
    s = jnp.dot(theta, phi_t, preferred_element_type=jnp.float32)   # (TQ, TK)

    if instantiation == "softmax":
        def update(masked):
            if masked:
                key_idx = ki * tile_k + lax.broadcasted_iota(jnp.int32, s.shape, 1)
                valid = key_idx < seq_len
                s_m = jnp.where(valid, s, _NEG_INF)
            else:
                s_m = s
            m_prev = m_sc[...]
            m_new = jnp.maximum(m_prev, jnp.max(s_m, axis=-1, keepdims=True))
            corr = jnp.exp(m_prev - m_new)
            p = jnp.exp(s_m - m_new)
            if masked:
                p = jnp.where(valid, p, 0.0)
            l_sc[...] = corr * l_sc[...] + jnp.sum(p, axis=-1, keepdims=True)
            acc_sc[...] = corr * acc_sc[...] + jnp.dot(
                p.astype(compute_dtype), g, preferred_element_type=jnp.float32)
            m_sc[...] = m_new

        if needs_key_mask:
            # Only the final kv tile can contain padded keys (Lk - L < tk), so
            # the mask (iota + compare + 2x where) runs on 1 of nk steps only.
            @pl.when(ki == nk - 1)
            def _(): update(masked=True)

            @pl.when(ki < nk - 1)
            def _(): update(masked=False)
        else:
            update(masked=False)
    elif instantiation == "dot_product":
        # Padded keys have phi == g == 0 in HBM (padding applied after the
        # biased projection), so they contribute nothing; normalization is a
        # constant reciprocal by the true sequence length.
        acc_sc[...] += jnp.dot((s * (1.0 / seq_len)).astype(compute_dtype), g,
                               preferred_element_type=jnp.float32)
    else:
        raise NotImplementedError(instantiation)

    # ---- finalize: normalize, conv_out (+folded BN) + residual --------------
    @pl.when(ki == nk - 1)
    def _finalize():
        if instantiation == "softmax":
            o = acc_sc[...] * pl.reciprocal(l_sc[...], approx=True)   # EUP slot
        else:
            o = acc_sc[...]
        # Output projection (BN scale folded into wo), bias+shift folded in bsh.
        p_out = jnp.dot(o.astype(compute_dtype), wo_ref[...],
                        preferred_element_type=jnp.float32)           # (TQ, Cp)
        p_out = p_out + bsh_ref[...]
        # One XLU transpose per query tile back to channels-major, then the
        # residual add in the native (C, L) layout (no wrapper HBM transposes).
        p_cl = jnp.transpose(p_out, (1, 0))                           # (Cp, TQ)
        if out_channels < p_cl.shape[0]:
            p_cl = p_cl[:out_channels, :]
        out_ref[0] = (x_ref[0].astype(jnp.float32) + p_cl).astype(out_ref.dtype)


def nonlocal_forward(x_ncthw, params, *, dim_inner, instantiation="softmax",
                     norm_eps=1e-5, tq=256, tk=256,
                     compute_dtype=jnp.bfloat16):
    """x_ncthw: (N, C, T, H, W) float32 (PyTorch layout).  Returns same layout.

    compute_dtype: dtype of the MXU operands and of the theta/phi/g HBM
    activations (bfloat16 recommended / default on all generations); all
    accumulation, softmax, BN and the residual stay in float32.
    """
    assert instantiation in ("softmax", "dot_product"), instantiation
    N, C, T, H, W = x_ncthw.shape
    L = T * H * W
    Di = dim_inner

    C8 = _round_up(C, 8)          # sublane-aligned channel count for x / out
    Cp = _round_up(C, 128)        # lane-dense channel count for the out proj
    Dip = _round_up(Di, 128)      # lane-dense inner dim

    # Tiles must be multiples of 128 (they sit on lane axes of x / out / phiT).
    tq = max(128, min(_round_up(tq, 128), _round_up(L, 128)))
    tk = max(128, min(_round_up(tk, 128), _round_up(L, 128)))
    if N == 1:
        # Keep >= 2 query tiles so v7x's second TensorCore gets work.
        tq = min(tq, max(128, _round_up((L + 1) // 2, 128)))
    Lq = _round_up(L, tq)   # padded query length
    Lk = _round_up(L, tk)   # padded key length (Lk - L < tk by construction)

    x_flat = x_ncthw.reshape(N, C, L)
    hi = lax.Precision.HIGHEST

    # ---- hoisted 1x1x1 projections (plain XLA matmuls, once per position) ---
    w_theta = params["w_theta"].reshape(Di, C)
    w_phi = params["w_phi"].reshape(Di, C)
    w_g = params["w_g"].reshape(Di, C)
    w_out = params["w_out"].reshape(C, Di)
    b_theta, b_phi, b_g, b_out = (params[k] for k in
                                  ("b_theta", "b_phi", "b_g", "b_out"))

    if instantiation == "softmax":
        # Fold the 1/sqrt(dim_inner) softmax scale into the theta projection.
        sc = jnp.float32(Di) ** -0.5
        w_theta = w_theta * sc
        b_theta = b_theta * sc

    # theta and g share the (N, L, Di) layout -> one fused matmul over x;
    # phi is produced directly Dip-major so QK^T needs no transpose anywhere.
    w_tg = jnp.concatenate([w_theta, w_g], axis=0)                  # (2*Di, C)
    b_tg = jnp.concatenate([b_theta, b_g], axis=0)
    tg = jnp.einsum("dc,ncl->nld", w_tg, x_flat, precision=hi) + b_tg[None, None, :]
    theta = tg[:, :, :Di]                                           # (N, L, Di)
    g = tg[:, :, Di:]                                               # (N, L, Di)
    phiT = jnp.einsum("dc,ncl->ndl", w_phi, x_flat, precision=hi) \
        + b_phi[None, :, None]                                      # (N, Di, L)

    def pad_to(a, shape):
        return jnp.pad(a, [(0, t - s) for s, t in zip(a.shape, shape)])

    # Padding AFTER the biased projection: padded keys have phi == g == 0.
    theta = pad_to(theta, (N, Lq, Dip)).astype(compute_dtype)
    g = pad_to(g, (N, Lk, Dip)).astype(compute_dtype)
    phiT = pad_to(phiT, (N, Dip, Lk)).astype(compute_dtype)
    x_pad = pad_to(x_flat, (N, C8, Lq))                             # residual, f32

    # ---- fold conv_out bias + inference-mode BatchNorm ----------------------
    inv_std = 1.0 / jnp.sqrt(params["bn_var"] + norm_eps)
    bn_scale = params["bn_gamma"] * inv_std                         # (C,)
    bn_shift = params["bn_beta"] - params["bn_mean"] * bn_scale     # (C,)
    wo = pad_to(w_out.T * bn_scale[None, :], (Dip, Cp)).astype(compute_dtype)
    bsh = pad_to((b_out * bn_scale + bn_shift).reshape(1, C),
                 (1, Cp)).astype(jnp.float32)

    grid = (N, Lq // tq, Lk // tk)
    needs_key_mask = (Lk != L)

    kernel = functools.partial(
        _nonlocal_flash_kernel,
        seq_len=L, tile_k=tk, out_channels=C8, instantiation=instantiation,
        compute_dtype=compute_dtype, needs_key_mask=needs_key_mask)

    # ---- VMEM accounting (double-buffering on every tiled input/output) -----
    cb = jnp.dtype(compute_dtype).itemsize
    vmem_est = (2 * C8 * tq * 4                      # x block
                + 2 * tq * Dip * cb                  # theta
                + 2 * Dip * tk * cb                  # phiT
                + 2 * tk * Dip * cb                  # g
                + 2 * (Dip * Cp * cb + Cp * 4)       # wo + bias (still 2-buffered)
                + 2 * C8 * tq * 4                    # out block
                + tq * Dip * 4 + 2 * tq * 4          # accumulator / m / l scratch
                + 4 * tq * tk * 4 + 2 * tq * Cp * 4)  # score / finalize temporaries
    vmem_kwargs = {}
    if vmem_est > 12 * 1024 * 1024:
        # Leave headroom under v7x's 64 MiB physical VMEM (32 MiB scoped default).
        vmem_kwargs["vmem_limit_bytes"] = int(min(48 * 1024 * 1024,
                                                  int(1.5 * vmem_est)))

    flops = N * (4 * Lq * Lk * Dip              # QK^T + PV
                 + 2 * Lq * Dip * Cp)           # output projection (per q tile)
    transcendentals = N * Lq * Lk if instantiation == "softmax" else 0
    bytes_accessed = (N * (Lq // tq) * Lk * 2 * Dip * cb   # phiT + g per q tile
                      + N * Lq * Dip * cb                  # theta
                      + 2 * N * C8 * Lq * 4                # x + out
                      + Dip * Cp * cb + Cp * 4)            # weights
    cost = pl.CostEstimate(flops=int(flops),
                           transcendentals=int(transcendentals),
                           bytes_accessed=int(bytes_accessed))

    out_pad = pl.pallas_call(
        kernel,
        out_shape=jax.ShapeDtypeStruct((N, C8, Lq), jnp.float32),
        grid=grid,
        in_specs=[
            pl.BlockSpec((1, C8, tq), lambda n, qi, ki: (n, 0, qi)),   # x residual
            pl.BlockSpec((1, tq, Dip), lambda n, qi, ki: (n, qi, 0)),  # theta
            pl.BlockSpec((1, Dip, tk), lambda n, qi, ki: (n, 0, ki)),  # phi^T
            pl.BlockSpec((1, tk, Dip), lambda n, qi, ki: (n, ki, 0)),  # g
            pl.BlockSpec((Dip, Cp), lambda n, qi, ki: (0, 0)),         # wo (BN folded)
            pl.BlockSpec((1, Cp), lambda n, qi, ki: (0, 0)),           # bias + shift
        ],
        out_specs=pl.BlockSpec((1, C8, tq), lambda n, qi, ki: (n, 0, qi)),
        scratch_shapes=[
            pltpu.VMEM((tq, 1), jnp.float32),    # running max
            pltpu.VMEM((tq, 1), jnp.float32),    # running sum
            pltpu.VMEM((tq, Dip), jnp.float32),  # output accumulator
        ],
        compiler_params=pltpu.CompilerParams(
            dimension_semantics=("parallel", "parallel", "arbitrary"),
            **vmem_kwargs),
        cost_estimate=cost,
    )(x_pad, theta, phiT, g, wo, bsh)

    # Strip channel / sequence padding and restore NCTHW.
    return out_pad[:, :C, :L].reshape(N, C, T, H, W)


def _reference_forward(x, params, *, dim_inner, instantiation="softmax",
                       norm_eps=1e-5):
    """Pure-JAX reference mirroring the PyTorch forward (eval-mode BN)."""
    N, C, T, H, W = x.shape
    Di = dim_inner
    L = T * H * W
    hi = lax.Precision.HIGHEST

    def conv1x1(inp, w, b):  # inp: (N, Cin, L); w: (Cout, Cin); b: (Cout,)
        return jnp.einsum("oc,ncl->nol", w, inp, precision=hi) + b[None, :, None]

    xf = x.reshape(N, C, L)
    theta = conv1x1(xf, params["w_theta"].reshape(Di, C), params["b_theta"])
    phi = conv1x1(xf, params["w_phi"].reshape(Di, C), params["b_phi"])
    g = conv1x1(xf, params["w_g"].reshape(Di, C), params["b_g"])

    theta_phi = jnp.einsum("nct,ncp->ntp", theta, phi, precision=hi)
    if instantiation == "softmax":
        theta_phi = theta_phi * (Di ** -0.5)
        theta_phi = jax.nn.softmax(theta_phi, axis=2)
    else:
        theta_phi = theta_phi / theta_phi.shape[2]
    theta_phi_g = jnp.einsum("ntg,ncg->nct", theta_phi, g, precision=hi)

    p = conv1x1(theta_phi_g, params["w_out"].reshape(C, Di), params["b_out"])
    inv_std = 1.0 / jnp.sqrt(params["bn_var"] + norm_eps)
    p = (p - params["bn_mean"][None, :, None]) * inv_std[None, :, None]
    p = p * params["bn_gamma"][None, :, None] + params["bn_beta"][None, :, None]
    return x + p.reshape(N, C, T, H, W)


if __name__ == "__main__":
    # Small deterministic configuration: dim=16, dim_inner=8, T=3, H=W=8 → L=192
    # (not a multiple of 128, so the key-padding mask path is exercised).
    N, C, Di, T, H, W = 2, 16, 8, 3, 8, 8

    key = jax.random.PRNGKey(0)
    ks = jax.random.split(key, 13)

    params = {
        "w_theta": 0.1 * jax.random.normal(ks[0], (Di, C, 1, 1, 1), jnp.float32),
        "b_theta": 0.1 * jax.random.normal(ks[1], (Di,), jnp.float32),
        "w_phi":   0.1 * jax.random.normal(ks[2], (Di, C, 1, 1, 1), jnp.float32),
        "b_phi":   0.1 * jax.random.normal(ks[3], (Di,), jnp.float32),
        "w_g":     0.1 * jax.random.normal(ks[4], (Di, C, 1, 1, 1), jnp.float32),
        "b_g":     0.1 * jax.random.normal(ks[5], (Di,), jnp.float32),
        "w_out":   0.1 * jax.random.normal(ks[6], (C, Di, 1, 1, 1), jnp.float32),
        "b_out":   0.1 * jax.random.normal(ks[7], (C,), jnp.float32),
        # BatchNorm3d parameters + running stats (inference mode).
        "bn_gamma": 1.0 + 0.05 * jax.random.normal(ks[8], (C,), jnp.float32),
        "bn_beta":  0.05 * jax.random.normal(ks[9], (C,), jnp.float32),
        "bn_mean":  0.05 * jax.random.normal(ks[10], (C,), jnp.float32),
        "bn_var":   1.0 + 0.1 * jax.random.uniform(ks[11], (C,), jnp.float32),
    }

    x = jax.random.normal(ks[12], (N, C, T, H, W), jnp.float32)

    # Softmax, f32 MXU operands, 128-tiles → 2x2 q/kv grid so the online-softmax
    # accumulation AND the last-tile key mask are exercised.
    out = nonlocal_forward(x, params, dim_inner=Di, instantiation="softmax",
                           tq=128, tk=128, compute_dtype=jnp.float32)
    out = jax.block_until_ready(out)
    ref = _reference_forward(x, params, dim_inner=Di, instantiation="softmax")
    assert out.shape == (N, C, T, H, W)
    assert jnp.allclose(out, ref, atol=2e-3, rtol=2e-3), "softmax mismatch"

    # dot_product instantiation (padded keys contribute exactly zero).
    out_dp = nonlocal_forward(x, params, dim_inner=Di,
                              instantiation="dot_product", tq=128, tk=128,
                              compute_dtype=jnp.float32)
    ref_dp = _reference_forward(x, params, dim_inner=Di,
                                instantiation="dot_product")
    assert jnp.allclose(jax.block_until_ready(out_dp), ref_dp,
                        atol=2e-3, rtol=2e-3), "dot_product mismatch"

    # Production defaults: bf16 MXU operands / bf16 theta-phi-g in HBM,
    # 256-tiles; accumulation & elementwise math stay in f32.
    out_bf = nonlocal_forward(x, params, dim_inner=Di)
    assert jnp.allclose(jax.block_until_ready(out_bf), ref,
                        atol=2e-2, rtol=2e-2), "bf16 mismatch"

    # TODO(synk): training-mode BatchNorm (batch statistics + running-stat
    # update) and the optional MaxPool3d (pool_size) path are not implemented;
    # inference-mode BN with pool_size=None semantics are used.
    print("KERNEL_OK")
</pallas_src>

<mosaic_0001>
module attributes {stable_mosaic.version = 11 : i64} {
  func.func @_nonlocal_flash_kernel(%arg0: i32, %arg1: i32, %arg2: i32, %arg3: memref<1x16x128xf32, #tpu.memory_space<vmem>>, %arg4: memref<1x128x128xf32, #tpu.memory_space<vmem>>, %arg5: memref<1x128x128xf32, #tpu.memory_space<vmem>>, %arg6: memref<1x128x128xf32, #tpu.memory_space<vmem>>, %arg7: memref<128x128xf32, #tpu.memory_space<vmem>>, %arg8: memref<1x128xf32, #tpu.memory_space<vmem>>, %arg9: memref<1x16x128xf32, #tpu.memory_space<vmem>>, %arg10: memref<128x1xf32, #tpu.memory_space<vmem>>, %arg11: memref<128x1xf32, #tpu.memory_space<vmem>>, %arg12: memref<128x128xf32, #tpu.memory_space<vmem>>) attributes {dimension_semantics = [#tpu.dimension_semantics<parallel>, #tpu.dimension_semantics<parallel>, #tpu.dimension_semantics<arbitrary>], iteration_bounds = array<i64: 2, 2, 2>, scalar_prefetch = 0 : i64, scratch_operands = 3 : i64, tpu.core_type = #tpu.core_type<tc>, window_params = [{transform_indices = @transform_0, window_bounds = array<i64: 1, 16, 128>}, {transform_indices = @transform_1, window_bounds = array<i64: 1, 128, 128>}, {transform_indices = @transform_2, window_bounds = array<i64: 1, 128, 128>}, {transform_indices = @transform_3, window_bounds = array<i64: 1, 128, 128>}, {pipeline_mode = #tpu.pipeline_mode<synchronous>, transform_indices = @transform_4, window_bounds = array<i64: 128, 128>}, {pipeline_mode = #tpu.pipeline_mode<synchronous>, transform_indices = @transform_5, window_bounds = array<i64: 1, 128>}, {transform_indices = @transform_6, window_bounds = array<i64: 1, 16, 128>}]} {
    %c0_i32 = arith.constant 0 : i32
    %0 = arith.cmpi eq, %arg2, %c0_i32 : i32
    %1 = arith.extui %0 : i1 to i32
    %c0_i32_0 = arith.constant 0 : i32
    %2 = arith.cmpi ne, %1, %c0_i32_0 : i32
    scf.if %2 {
      %cst_14 = arith.constant 0.000000e+00 : f32
      %19 = vector.broadcast %cst_14 : f32 to vector<128x128xf32>
      %c0_15 = arith.constant 0 : index
      %c0_16 = arith.constant 0 : index
      %20 = vector.load %arg12[%c0_15, %c0_16] : memref<128x128xf32, #tpu.memory_space<vmem>>, vector<128x128xf32>
      tpu.vector_store %arg12[%c0_15, %c0_16], %19 {strides = array<i32>} : memref<128x128xf32, #tpu.memory_space<vmem>>, vector<128x128xf32>,
      %cst_17 = arith.constant -1.000000e+30 : f32
      %21 = vector.broadcast %cst_17 : f32 to vector<128x1xf32>
      %c0_18 = arith.constant 0 : index
      %c0_19 = arith.constant 0 : index
      %22 = vector.load %arg10[%c0_18, %c0_19] : memref<128x1xf32, #tpu.memory_space<vmem>>, vector<128x1xf32>
      tpu.vector_store %arg10[%c0_18, %c0_19], %21 {strides = array<i32>} : memref<128x1xf32, #tpu.memory_space<vmem>>, vector<128x1xf32>,
      %cst_20 = arith.constant 0.000000e+00 : f32
      %23 = vector.broadcast %cst_20 : f32 to vector<128x1xf32>
      %c0_21 = arith.constant 0 : index
      %c0_22 = arith.constant 0 : index
      %24 = vector.load %arg11[%c0_21, %c0_22] : memref<128x1xf32, #tpu.memory_space<vmem>>, vector<128x1xf32>
      tpu.vector_store %arg11[%c0_21, %c0_22], %23 {strides = array<i32>} : memref<128x1xf32, #tpu.memory_space<vmem>>, vector<128x1xf32>,
    } else {
    }
    %c0 = arith.constant 0 : index
    %c0_1 = arith.constant 0 : index
    %c0_2 = arith.constant 0 : index
    %3 = vector.load %arg4[%c0, %c0_1, %c0_2] : memref<1x128x128xf32, #tpu.memory_space<vmem>>, vector<1x128x128xf32>
    %4 = vector.shape_cast %3 : vector<1x128x128xf32> to vector<128x128xf32>
    %c0_3 = arith.constant 0 : index
    %c0_4 = arith.constant 0 : index
    %c0_5 = arith.constant 0 : index
    %5 = vector.load %arg5[%c0_3, %c0_4, %c0_5] : memref<1x128x128xf32, #tpu.memory_space<vmem>>, vector<1x128x128xf32>
    %6 = vector.shape_cast %5 : vector<1x128x128xf32> to vector<128x128xf32>
    %c0_6 = arith.constant 0 : index
    %c0_7 = arith.constant 0 : index
    %c0_8 = arith.constant 0 : index
    %7 = vector.load %arg6[%c0_6, %c0_7, %c0_8] : memref<1x128x128xf32, #tpu.memory_space<vmem>>, vector<1x128x128xf32>
    %8 = vector.shape_cast %7 : vector<1x128x128xf32> to vector<128x128xf32>
    %cst = arith.constant dense<0.000000e+00> : vector<128x128xf32>
    %9 = tpu.matmul %4, %6, %cst {dimension_numbers = #tpu.dot_dimension_numbers<[1], [0], [0], [1], [0, 0, 1, 1], [], []>} : vector<128x128xf32>, vector<128x128xf32>, vector<128x128xf32> -> vector<128x128xf32>
    %c1_i32 = arith.constant 1 : i32
    %10 = arith.cmpi eq, %arg2, %c1_i32 : i32
    %11 = arith.extui %10 : i1 to i32
    %c0_i32_9 = arith.constant 0 : i32
    %12 = arith.cmpi ne, %11, %c0_i32_9 : i32
    scf.if %12 {
      %c128_i32 = arith.constant 128 : i32
      %19 = arith.muli %arg2, %c128_i32 : i32
      %20 = tpu.iota {dimensions = array<i32: 1>} : vector<128x128xi32>
      %21 = vector.broadcast %19 : i32 to vector<128x128xi32>
      %22 = arith.addi %21, %20 : vector<128x128xi32>
      %c192_i32 = arith.constant 192 : i32
      %23 = vector.broadcast %c192_i32 : i32 to vector<128x128xi32>
      %24 = arith.cmpi slt, %22, %23 : vector<128x128xi32>
      %cst_14 = arith.constant -1.000000e+30 : f32
      %25 = vector.broadcast %cst_14 : f32 to vector<128x128xf32>
      %26 = arith.select %24, %9, %25 : vector<128x128xi1>, vector<128x128xf32>
      %c0_15 = arith.constant 0 : index
      %c0_16 = arith.constant 0 : index
      %27 = vector.load %arg10[%c0_15, %c0_16] : memref<128x1xf32, #tpu.memory_space<vmem>>, vector<128x1xf32>
      %cst_17 = arith.constant dense<0xFF800000> : vector<128xf32>
      %28 = vector.multi_reduction <maximumf>, %26, %cst_17 [1] : vector<128x128xf32> to vector<128xf32>
      %29 = vector.shape_cast %28 : vector<128xf32> to vector<128x1xf32>
      %30 = arith.maximumf %27, %29 : vector<128x1xf32>
      %31 = arith.subf %27, %30 : vector<128x1xf32>
      %32 = math.exp %31 : vector<128x1xf32>
      %33 = vector.broadcast %30 : vector<128x1xf32> to vector<128x128xf32>
      %34 = arith.subf %26, %33 : vector<128x128xf32>
      %35 = math.exp %34 : vector<128x128xf32>
      %cst_18 = arith.constant 0.000000e+00 : f32
      %36 = vector.broadcast %cst_18 : f32 to vector<128x128xf32>
      %37 = arith.select %24, %35, %36 : vector<128x128xi1>, vector<128x128xf32>
      %c0_19 = arith.constant 0 : index
      %c0_20 = arith.constant 0 : index
      %38 = vector.load %arg11[%c0_19, %c0_20] : memref<128x1xf32, #tpu.memory_space<vmem>>, vector<128x1xf32>
      %39 = arith.mulf %32, %38 : vector<128x1xf32>
      %cst_21 = arith.constant dense<0.000000e+00> : vector<128xf32>
      %40 = vector.multi_reduction <add>, %37, %cst_21 [1] : vector<128x128xf32> to vector<128xf32>
      %41 = vector.shape_cast %40 : vector<128xf32> to vector<128x1xf32>
      %42 = arith.addf %39, %41 : vector<128x1xf32>
      %c0_22 = arith.constant 0 : index
      %c0_23 = arith.constant 0 : index
      %43 = vector.load %arg11[%c0_22, %c0_23] : memref<128x1xf32, #tpu.memory_space<vmem>>, vector<128x1xf32>
      tpu.vector_store %arg11[%c0_22, %c0_23], %42 {strides = array<i32>} : memref<128x1xf32, #tpu.memory_space<vmem>>, vector<128x1xf32>,
      %c0_24 = arith.constant 0 : index
      %c0_25 = arith.constant 0 : index
      %44 = vector.load %arg12[%c0_24, %c0_25] : memref<128x128xf32, #tpu.memory_space<vmem>>, vector<128x128xf32>
      %45 = vector.broadcast %32 : vector<128x1xf32> to vector<128x128xf32>
      %46 = arith.mulf %45, %44 : vector<128x128xf32>
      %cst_26 = arith.constant dense<0.000000e+00> : vector<128x128xf32>
      %47 = tpu.matmul %37, %8, %cst_26 {dimension_numbers = #tpu.dot_dimension_numbers<[1], [0], [0], [1], [0, 0, 1, 1], [], []>} : vector<128x128xf32>, vector<128x128xf32>, vector<128x128xf32> -> vector<128x128xf32>
      %48 = arith.addf %46, %47 : vector<128x128xf32>
      %c0_27 = arith.constant 0 : index
      %c0_28 = arith.constant 0 : index
      %49 = vector.load %arg12[%c0_27, %c0_28] : memref<128x128xf32, #tpu.memory_space<vmem>>, vector<128x128xf32>
      tpu.vector_store %arg12[%c0_27, %c0_28], %48 {strides = array<i32>} : memref<128x128xf32, #tpu.memory_space<vmem>>, vector<128x128xf32>,
      %c0_29 = arith.constant 0 : index
      %c0_30 = arith.constant 0 : index
      %50 = vector.load %arg10[%c0_29, %c0_30] : memref<128x1xf32, #tpu.memory_space<vmem>>, vector<128x1xf32>
      tpu.vector_store %arg10[%c0_29, %c0_30], %30 {strides = array<i32>} : memref<128x1xf32, #tpu.memory_space<vmem>>, vector<128x1xf32>,
    } else {
    }
    %c1_i32_10 = arith.constant 1 : i32
    %13 = arith.cmpi slt, %arg2, %c1_i32_10 : i32
    %14 = arith.extui %13 : i1 to i32
    %c0_i32_11 = arith.constant 0 : i32
    %15 = arith.cmpi ne, %14, %c0_i32_11 : i32
    scf.if %15 {
      %c0_14 = arith.constant 0 : index
      %c0_15 = arith.constant 0 : index
      %19 = vector.load %arg10[%c0_14, %c0_15] : memref<128x1xf32, #tpu.memory_space<vmem>>, vector<128x1xf32>
      %cst_16 = arith.constant dense<0xFF800000> : vector<128xf32>
      %20 = vector.multi_reduction <maximumf>, %9, %cst_16 [1] : vector<128x128xf32> to vector<128xf32>
      %21 = vector.shape_cast %20 : vector<128xf32> to vector<128x1xf32>
      %22 = arith.maximumf %19, %21 : vector<128x1xf32>
      %23 = arith.subf %19, %22 : vector<128x1xf32>
      %24 = math.exp %23 : vector<128x1xf32>
      %25 = vector.broadcast %22 : vector<128x1xf32> to vector<128x128xf32>
      %26 = arith.subf %9, %25 : vector<128x128xf32>
      %27 = math.exp %26 : vector<128x128xf32>
      %c0_17 = arith.constant 0 : index
      %c0_18 = arith.constant 0 : index
      %28 = vector.load %arg11[%c0_17, %c0_18] : memref<128x1xf32, #tpu.memory_space<vmem>>, vector<128x1xf32>
      %29 = arith.mulf %24, %28 : vector<128x1xf32>
      %cst_19 = arith.constant dense<0.000000e+00> : vector<128xf32>
      %30 = vector.multi_reduction <add>, %27, %cst_19 [1] : vector<128x128xf32> to vector<128xf32>
      %31 = vector.shape_cast %30 : vector<128xf32> to vector<128x1xf32>
      %32 = arith.addf %29, %31 : vector<128x1xf32>
      %c0_20 = arith.constant 0 : index
      %c0_21 = arith.constant 0 : index
      %33 = vector.load %arg11[%c0_20, %c0_21] : memref<128x1xf32, #tpu.memory_space<vmem>>, vector<128x1xf32>
      tpu.vector_store %arg11[%c0_20, %c0_21], %32 {strides = array<i32>} : memref<128x1xf32, #tpu.memory_space<vmem>>, vector<128x1xf32>,
      %c0_22 = arith.constant 0 : index
      %c0_23 = arith.constant 0 : index
      %34 = vector.load %arg12[%c0_22, %c0_23] : memref<128x128xf32, #tpu.memory_space<vmem>>, vector<128x128xf32>
      %35 = vector.broadcast %24 : vector<128x1xf32> to vector<128x128xf32>
      %36 = arith.mulf %35, %34 : vector<128x128xf32>
      %cst_24 = arith.constant dense<0.000000e+00> : vector<128x128xf32>
      %37 = tpu.matmul %27, %8, %cst_24 {dimension_numbers = #tpu.dot_dimension_numbers<[1], [0], [0], [1], [0, 0, 1, 1], [], []>} : vector<128x128xf32>, vector<128x128xf32>, vector<128x128xf32> -> vector<128x128xf32>
      %38 = arith.addf %36, %37 : vector<128x128xf32>
      %c0_25 = arith.constant 0 : index
      %c0_26 = arith.constant 0 : index
      %39 = vector.load %arg12[%c0_25, %c0_26] : memref<128x128xf32, #tpu.memory_space<vmem>>, vector<128x128xf32>
      tpu.vector_store %arg12[%c0_25, %c0_26], %38 {strides = array<i32>} : memref<128x128xf32, #tpu.memory_space<vmem>>, vector<128x128xf32>,
      %c0_27 = arith.constant 0 : index
      %c0_28 = arith.constant 0 : index
      %40 = vector.load %arg10[%c0_27, %c0_28] : memref<128x1xf32, #tpu.memory_space<vmem>>, vector<128x1xf32>
      tpu.vector_store %arg10[%c0_27, %c0_28], %22 {strides = array<i32>} : memref<128x1xf32, #tpu.memory_space<vmem>>, vector<128x1xf32>,
    } else {
    }
    %c1_i32_12 = arith.constant 1 : i32
    %16 = arith.cmpi eq, %arg2, %c1_i32_12 : i32
    %17 = arith.extui %16 : i1 to i32
    %c0_i32_13 = arith.constant 0 : i32
    %18 = arith.cmpi ne, %17, %c0_i32_13 : i32
    scf.if %18 {
      %c0_14 = arith.constant 0 : index
      %c0_15 = arith.constant 0 : index
      %19 = vector.load %arg12[%c0_14, %c0_15] : memref<128x128xf32, #tpu.memory_space<vmem>>, vector<128x128xf32>
      %c0_16 = arith.constant 0 : index
      %c0_17 = arith.constant 0 : index
      %20 = vector.load %arg11[%c0_16, %c0_17] : memref<128x1xf32, #tpu.memory_space<vmem>>, vector<128x1xf32>
      %21 = tpu.reciprocal %20 {approx = true} : vector<128x1xf32> -> vector<128x1xf32>
      %22 = vector.broadcast %21 : vector<128x1xf32> to vector<128x128xf32>
      %23 = arith.mulf %19, %22 : vector<128x128xf32>
      %c0_18 = arith.constant 0 : index
      %c0_19 = arith.constant 0 : index
      %24 = vector.load %arg7[%c0_18, %c0_19] : memref<128x128xf32, #tpu.memory_space<vmem>>, vector<128x128xf32>
      %cst_20 = arith.constant dense<0.000000e+00> : vector<128x128xf32>
      %25 = tpu.matmul %23, %24, %cst_20 {dimension_numbers = #tpu.dot_dimension_numbers<[1], [0], [0], [1], [0, 0, 1, 1], [], []>} : vector<128x128xf32>, vector<128x128xf32>, vector<128x128xf32> -> vector<128x128xf32>
      %c0_21 = arith.constant 0 : index
      %c0_22 = arith.constant 0 : index
      %26 = vector.load %arg8[%c0_21, %c0_22] : memref<1x128xf32, #tpu.memory_space<vmem>>, vector<1x128xf32>
      %27 = vector.broadcast %26 : vector<1x128xf32> to vector<128x128xf32>
      %28 = arith.addf %25, %27 : vector<128x128xf32>
      %29 = tpu.transpose %28, [1, 0] : vector<128x128xf32> -> vector<128x128xf32>
      %30 = vector.extract_strided_slice %29 {offsets = [0, 0], sizes = [16, 128], strides = [1, 1]} : vector<128x128xf32> to vector<16x128xf32>
      %c0_23 = arith.constant 0 : index
      %c0_24 = arith.constant 0 : index
      %c0_25 = arith.constant 0 : index
      %31 = vector.load %arg3[%c0_23, %c0_24, %c0_25] : memref<1x16x128xf32, #tpu.memory_space<vmem>>, vector<1x16x128xf32>
      %32 = vector.shape_cast %31 : vector<1x16x128xf32> to vector<16x128xf32>
      %33 = arith.addf %32, %30 : vector<16x128xf32>
      %c0_26 = arith.constant 0 : index
      %c0_27 = arith.constant 0 : index
      %c0_28 = arith.constant 0 : index
      %34 = vector.load %arg9[%c0_26, %c0_27, %c0_28] : memref<1x16x128xf32, #tpu.memory_space<vmem>>, vector<1x16x128xf32>
      %35 = vector.shape_cast %34 : vector<1x16x128xf32> to vector<16x128xf32>
      %36 = vector.shape_cast %33 : vector<16x128xf32> to vector<1x16x128xf32>
      tpu.vector_store %arg9[%c0_26, %c0_27, %c0_28], %36 {strides = array<i32>} : memref<1x16x128xf32, #tpu.memory_space<vmem>>, vector<1x16x128xf32>,
    } else {
    }
    return
  }
  func.func @transform_0(%arg0: i32, %arg1: i32, %arg2: i32) -> (i32, i32, i32) {
    %c0_i32 = arith.constant 0 : i32
    %c0_i32_0 = arith.constant 0 : i32
    return %arg0, %c0_i32, %arg1 : i32, i32, i32
  }
  func.func @transform_1(%arg0: i32, %arg1: i32, %arg2: i32) -> (i32, i32, i32) {
    %c0_i32 = arith.constant 0 : i32
    %c0_i32_0 = arith.constant 0 : i32
    return %arg0, %arg1, %c0_i32 : i32, i32, i32
  }
  func.func @transform_2(%arg0: i32, %arg1: i32, %arg2: i32) -> (i32, i32, i32) {
    %c0_i32 = arith.constant 0 : i32
    %c0_i32_0 = arith.constant 0 : i32
    return %arg0, %c0_i32, %arg2 : i32, i32, i32
  }
  func.func @transform_3(%arg0: i32, %arg1: i32, %arg2: i32) -> (i32, i32, i32) {
    %c0_i32 = arith.constant 0 : i32
    %c0_i32_0 = arith.constant 0 : i32
    return %arg0, %arg2, %c0_i32 : i32, i32, i32
  }
  func.func @transform_4(%arg0: i32, %arg1: i32, %arg2: i32) -> (i32, i32) {
    %c0_i32 = arith.constant 0 : i32
    %c0_i32_0 = arith.constant 0 : i32
    %c0_i32_1 = arith.constant 0 : i32
    return %c0_i32, %c0_i32_0 : i32, i32
  }
  func.func @transform_5(%arg0: i32, %arg1: i32, %arg2: i32) -> (i32, i32) {
    %c0_i32 = arith.constant 0 : i32
    %c0_i32_0 = arith.constant 0 : i32
    %c0_i32_1 = arith.constant 0 : i32
    return %c0_i32, %c0_i32_0 : i32, i32
  }
  func.func @transform_6(%arg0: i32, %arg1: i32, %arg2: i32) -> (i32, i32, i32) {
    %c0_i32 = arith.constant 0 : i32
    %c0_i32_0 = arith.constant 0 : i32
    return %arg0, %c0_i32, %arg1 : i32, i32, i32
  }
}

</mosaic_0001>

<bundles_post_ra>
// kernel: tpu_custom_call.1
= control target key start
LH: loop header
LB: loop body
LE: loop exit
PB: predicated region body
PF: predicated region fallthrough
CT: control target
= control target key end

     0   :  { %s4568_s0 = inlined_call_operand.hbm [shape: f32[2,16,256], index: 0, kind: input, shape index: {}]   ;;  %s4569_s1 = inlined_call_operand.hbm [shape: f32[2,256,128], index: 1, kind: input, shape index: {}]   ;;  %s4570_s2 = inlined_call_operand.hbm [shape: f32[2,128,256], index: 2, kind: input, shape index: {}]   ;;  %s4571_s3 = inlined_call_operand.hbm [shape: f32[2,256,128], index: 3, kind: input, shape index: {}]   ;;  %s4572_s4 = inlined_call_operand.hbm [shape: f32[128,128], index: 4, kind: input, shape index: {}]   ;;  %s4573_s5 = inlined_call_operand.vmem [shape: f32[1,128], index: 5, kind: input, shape index: {}]   ;;  %s4574_s6 = inlined_call_operand.hbm [shape: f32[2,16,256], index: 6, kind: output, shape index: {}]  }
   0x1   :  { %4640 = sst [smem:[#allocation58_spill]] %s4568_s0 }
   0x2   :  { %4641 = sst [smem:[#allocation59_spill]] %s4569_s1 }
   0x3   :  { %4642 = sst [smem:[#allocation60_spill]] %s4572_s4 }
   0x4   :  { %4643 = sst [smem:[#allocation61_spill]] %s4573_s5 }
   0x5   :  { %4644 = sst [smem:[#allocation62_spill]] %s4574_s6 }
   0x6   :  { %11 = vsyncpa [#allocation6], 0 }
   0x7   :  { %13 = vsyncpa [#allocation6 + $0x1], 0 }
   0x8   :  { %14 = vsyncpa [#allocation9], 0 }
   0x9   :  { %16 = vsyncpa [#allocation9 + $0x1], 0 }
   0xa   :  { %17 = vsyncpa [#allocation12], 0 }
   0xb   :  { %19 = vsyncpa [#allocation12 + $0x1], 0 }
   0xc   :  { %20 = vsyncpa [#allocation7], 0 }
   0xd   :  { %22 = vsyncpa [#allocation7 + $0x1], 0  ;;  %s3170_s21 = smov 0   ;;  %s3172_s22 = smov 0  }
   0xe   :  { %s3174_s23 = smov 0   ;;  %s3176_s24 = smov 0  }
   0xf   :  { %s3178_s25 = smov 0   ;;  %s3180_s26 = smov 0  }
  0x10   :  { %s3182_s27 = smov 0   ;;  %s3184_s28 = smov 0  }
  0x11   :  { %s3186_s29 = smov 0   ;;  %s3188_s30 = smov 0  }
  0x12   :  { %s3190_s7 = smov 0   ;;  %s3192_s8 = smov 0  }
  0x13   :  { %s3194_s9 = smov 0  }
  0x14 LB: > { %4645 = sst [smem:[#allocation21_spill]] %s3085_s24  ;;  %s3234_s10 = sadd.s32 4294967295, %s3121_s9   ;;  %s3121_s9 = sphi %s3194_s9, %s28_s9   ;;  %s3117_s8 = sphi %s3192_s8, %s4754_s8   ;;  %s3113_s7 = sphi %s3190_s7, %s4753_s7   ;;  %s3109_s30 = sphi %s3188_s30, %s4752_s30   ;;  %s3105_s29 = sphi %s3186_s29, %s4751_s29   ;;  %s3101_s28 = sphi %s3184_s28, %s4750_s28   ;;  %s3097_s27 = sphi %s3182_s27, %s4749_s27   ;;  %s3093_s26 = sphi %s3180_s26, %s4742_s26   ;;  %s3089_s25 = sphi %s3178_s25, %s4741_s25   ;;  %s3085_s24 = sphi %s3176_s24, %s4740_s24   ;;  %s3081_s23 = sphi %s3174_s23, %s4748_s23   ;;  %s3077_s22 = sphi %s3172_s22, %s4747_s22   ;;  %s3073_s21 = sphi %s3170_s21, %s4746_s21  }
  0x15   : > { %4646 = sst [smem:[#allocation22_spill]] %s3089_s25  ;;  %p125_p0 = scmp.ne.s32.totalorder %s3077_s22, %s3073_s21 }
  0x16   : > { %4647 = sst [smem:[#allocation23_spill]] %s3093_s26  ;;  %p70_p1 = scmp.eq.s32.totalorder %s3234_s10, 0 }
  0x17   : > { %4648 = sst [smem:[#allocation24_spill]] %s3097_s27  ;;  %p2250_p2 = scmp.ge.s32.totalorder %s3121_s9, 1 }
  0x18   : > { %4649 = sst [smem:[#allocation25_spill]] %s3101_s28  ;;  %p234_p3 = scmp.lt.s32.totalorder %s3121_s9, 9 }
  0x19   : > { %4650 = sst [smem:[#allocation26_spill]] %s3105_s29  ;;  %p3242_p4 = por %p125_p0, %p70_p1 }
  0x1a   : > { %4651 = sst [smem:[#allocation27_spill]] %s3234_s10  ;;  %p3246_p5 = pnand %p2250_p2, %p234_p3 }
  0x1b   : > { %s4652_s11 = scalar_select %p3242_p4, 1, 0 }
  0x1c   : > { %s4655_s4 = sld [smem:[#allocation60_spill]]  ;;  %p2506_p6 = pneg %p3246_p5 }
  0x1d   : > { %4653 = sst [smem:[#allocation28_spill]] %s4652_s11  ;;  %s3123_s16 = smov [#allocation13]  }
  0x1e   : > { %s247_s17 = sshll.u32 %s3123_s16, 4  ;;  %p2507_p7 = pnand %p2506_p6, %p70_p1  ;;  %s248_s17 = int_to_ptr.vmem [resolvable:$true] %s247_s17 }
  0x1f   : > { %p221_p8 = scmp.eq.s32.totalorder %s3234_s10, 7  ;;  %s4575_s18 = smov 128  }
  0x20   : > { %s4577_s19 = smov 8   ;;  %s40_s20 = sadd.s32 1, %s3109_s30 }
  0x21   : > { %p41_p9 = scmp.ge.s32.totalorder %s40_s20, 2  ;;  %s43_s21 = sadd.s32 1, %s3113_s7 }
  0x22   : > { %s245_s15 = sshll.u32 %s4655_s4, 4  ;;  %s2249_s13 = sadd.s32 4294967294, %s3121_s9   ;;  %s246_s15 = int_to_ptr.hbm [resolvable:$true] %s245_s15 }
  0x23   : > { %2509 = dma.hbm_to_vmem [thread:$0]  (!%p2507_p7), %s246_s15, 2048, %s248_s17, [#allocation12], %s4575_s18, %s4575_s18, %s4577_s19  }
  0x24   : > { %s47_s14 = sadd.s32 1, %s3117_s8  ;;  %s4756_s20 = smov (%p41_p9, %s40_s20), 0 }
  0x25   : > { %4656 = sst [smem:[#allocation29_spill]] %s4756_s20  ;;  %s4758_s21 = smov (!%p41_p9, %s43_s21), %s3113_s7 }
  0x26   : > { %p63_p10 = scmp.ne.s32.totalorder %s3093_s26, %s3089_s25  ;;  %p64_p11 = scmp.eq.s32.totalorder %s3121_s9, 0 }
  0x27   : > { %p45_p12 = scmp.ge.s32.totalorder %s4758_s21, 2  ;;  %p69_p13 = scmp.ne.s32.totalorder %s3089_s25, %s3085_s24 }
  0x28   : > { %s56_s15 = sadd.s32 1, %s3093_s26  ;;  %p3276_p0 = por %p64_p11, %p63_p10 }
  0x29   : > { %s4760_s21 = smov (%p45_p12, %s4758_s21), 0  ;;  %s4762_s14 = smov (!%p45_p12, %s47_s14), %s3117_s8 }
  0x2a   : > { %4658 = sst [smem:[#allocation30_spill]] %s4760_s21  ;;  %s52_s17 = ssub.s32 %s3113_s7, %s4760_s21 }
  0x2b   : > { %p3290_p2 = por %p70_p1, %p69_p13  ;;  %p49_p3 = scmp.ge.s32.totalorder %s4762_s14, 2 }
  0x2c   : > { %p3296_p6 = por %p221_p8, %p63_p10  ;;  %p227_p7 = scmp.eq.s32.totalorder %s2249_s13, 7 }
  0x2d   : > { %s4659_s18 = scalar_select %p3290_p2, 1, 0 }
  0x2e   : > { %s4661_s19 = scalar_select %p3296_p6, 1, 0 }
  0x2f   : > { %4660 = sst [smem:[#allocation31_spill]] %s4659_s18  ;;  %p2528_p9 = scmp.lt.s32.totalorder %s3121_s9, 8 }
  0x30   : > { %4662 = sst [smem:[#allocation32_spill]] %s4661_s19  ;;  %s4764_s14 = smov (%p49_p3, %s4762_s14), 0 }
  0x31   : > { %4663 = sst [smem:[#allocation33_spill]] %s4764_s14  ;;  %s108_s4 = ssub.s32 %s3109_s30, %s4756_s20 }
  0x32   : > { %p3308_p12 = por %p227_p7, %p69_p13  ;;  %s51_s6 = ssub.s32 %s3117_s8, %s4764_s14 }
  0x33   : > { %p3318_p8 = pnand %p2528_p9, %p3276_p0  ;;  %s53_s19 = sor.u32 %s52_s17, %s51_s6 }
  0x34   : > { %s4664_s21 = scalar_select %p3308_p12, 1, 0 }
  0x35   : > { %s3323_s13 = sand.u32 1, %s3093_s26   ;;  %p54_p10 = scmp.eq.s32.totalorder %s53_s19, 0 }
  0x36   : > { %4665 = sst [smem:[#allocation34_spill]] %s4664_s21  ;;  %s3325_s29 = sor.u32 %s108_s4, %s51_s6 }
  0x37   : > { %s3329_s24 = scalar_select %p54_p10, %s3093_s26, %s56_s15  }
  0x38   : > { %s2256_s21 = sshll.u32 %s3323_s13, 7  ;;  %s2257_s16 = sshll.u32 %s3113_s7, 4 }
  0x39   : > { %4667 = sst [smem:[#allocation35_spill]] %s3329_s24  ;;  %s3334_s14 = sshll.u32 %s3117_s8, 5 }
  0x3a   : > { %s291_s5 = scalar_lea.vmem [#allocation8], %s2256_s21  ;;  %s296_s27 = sadd.s32 %s3334_s14, %s2257_s16 }
  0x3b   : > { %s301_s17 = sshll.u32 %s291_s5, 4  ;;  %s2259_s4 = sshll.u32 %s296_s27, 3  ;;  %s302_s17 = int_to_ptr.vmem [resolvable:$true] %s301_s17 }
  0x3c   : > { %s319_s6 = sadd.s32 %s3109_s30, %s3334_s14  ;;  %s4668_s1 = sld [smem:[#allocation59_spill]] }
  0x3d   : > { %s2262_s24 = sshll.u32 %s319_s6, 3  ;;  %s4669_s5 = sand.u32 1, %s3121_s9  }
  0x3e   : > { %s321_s18 = scalar_lea.hbm %s4570_s2, %s2262_s24  ;;  %s3349_s16 = scalar_lea.sflag [#allocation9], %s4669_s5 }
  0x3f   : > { %s3345_s21 = sshll.u32 %s321_s18, 4  ;;  %s4670_s27 = smov 8   ;;  %s323_s21 = int_to_ptr.hbm [resolvable:$true] %s3345_s21 }
  0x40   : > { %s4671_s25 = smov 128   ;;  %p110_p13 = scmp.eq.s32.totalorder %s3325_s29, 0 }
  0x41   : > { %s2253_s24 = sshll.u32 %s3323_s13, 4  ;;  %s2254_s10 = sshll.u32 %s3117_s8, 2 }
  0x42   : > { %s298_s20 = scalar_lea.hbm %s4668_s1, %s2259_s4  ;;  %s272_s11 = sadd.s32 %s3113_s7, %s2254_s10 }
  0x43   : > { %s299_s26 = sshll.u32 %s298_s20, 4  ;;  %s268_s18 = scalar_lea.vmem [#allocation5], %s2253_s24  ;;  %s300_s26 = int_to_ptr.hbm [resolvable:$true] %s299_s26 }
  0x44   : > { %2516 = dma.hbm_to_vmem [thread:$0]  (!%p3318_p8), %s300_s26, 2048, %s302_s17, %s3349_s16, %s4671_s25, %s4671_s25, %s4670_s27  }
  0x45   : > { %s277_s20 = sshll.u32 %s268_s18, 4  ;;  %s2255_s4 = sshll.u32 %s272_s11, 3  ;;  %s278_s20 = int_to_ptr.vmem [resolvable:$true] %s277_s20 }
  0x46   : > { %s4672_s0 = sld [smem:[#allocation58_spill]]  ;;  %s265_s15 = scalar_lea.sflag [#allocation6], %s3323_s13 }
  0x47   : > { %s3126_s5 = smov 256   ;;  %s112_s24 = sadd.s32 1, %s3081_s23 }
  0x48   : > { %p119_p0 = scmp.ne.s32.totalorder %s3081_s23, %s3077_s22  ;;  %s313_s11 = sand.u32 1, %s3081_s23  }
  0x49   : > { %s3376_s10 = scalar_select %p110_p13, %s3081_s23, %s112_s24  }
  0x4a   : > { %p121_p3 = por %p119_p0, %p64_p11  ;;  %s2260_s18 = sshll.u32 %s313_s11, 7 }
  0x4b   : > { %s315_s28 = scalar_lea.vmem [#allocation10], %s2260_s18 }
  0x4c   : > { %s274_s17 = scalar_lea.hbm %s4672_s0, %s2255_s4  ;;  %s2264_s4 = sshll.u32 %s3109_s30, 4 }
  0x4d   : > { %s275_s19 = sshll.u32 %s274_s17, 4  ;;  %p3384_p7 = pnand %p2528_p9, %p121_p3  ;;  %s276_s19 = int_to_ptr.hbm [resolvable:$true] %s275_s19 }
  0x4e   : > { %2513 = dma.hbm_to_vmem [thread:$0]  (!%p3318_p8), %s276_s19, 256, %s278_s20, %s265_s15, %s3126_s5, %s4671_s25, %s4670_s27  }
  0x4f   : > { %s324_s13 = sshll.u32 %s315_s28, 4  ;;  %s343_s29 = sadd.s32 %s2264_s4, %s3334_s14  ;;  %s325_s13 = int_to_ptr.vmem [resolvable:$true] %s324_s13 }
  0x50   : > { %2519 = dma.hbm_to_vmem [thread:$0]  (!%p3384_p7), %s323_s21, 2048, %s325_s13, %s3349_s16, %s3126_s5, %s4671_s25, %s4670_s27  }
  0x51   : > { %s338_s20 = scalar_lea.vmem [#allocation11], %s2260_s18  ;;  %s2266_s17 = sshll.u32 %s343_s29, 3 }
  0x52   : > { %s348_s26 = sshll.u32 %s338_s20, 4  ;;  %s345_s24 = scalar_lea.hbm %s4571_s3, %s2266_s17  ;;  %s349_s26 = int_to_ptr.vmem [resolvable:$true] %s348_s26 }
  0x53   : > { %s346_s11 = sshll.u32 %s345_s24, 4  ;;  %s4674_s0 = sand.u32 1, %s3121_s9   ;;  %s347_s11 = int_to_ptr.hbm [resolvable:$true] %s346_s11 }
  0x54   : > { %s335_s1 = scalar_lea.sflag [#allocation12], %s4674_s0  ;;  %360 = sbr.rel (%p3246_p5) target bundleno = 1726 (0x6be), region = 44 }
  0x55   : > { %2522 = dma.hbm_to_vmem [thread:$0]  (!%p3384_p7), %s347_s11, 2048, %s349_s26, %s335_s1, %s4671_s25, %s4671_s25, %s4670_s27  }
  0x59   : > { %s4675_s14 = sld [smem:[#allocation22_spill]] }
  0x5f   : > { %s3409_s16 = sand.u32 1, %s4675_s14  }
  0x60   : > { %s2268_s5 = sshll.u32 %s3409_s16, 4  ;;  %s363_s18 = scalar_lea.sflag [#allocation6], %s3409_s16 }
  0x61   : > { %s3413_s4 = scalar_lea.vmem [#allocation5], %s2268_s5 }
  0x62   : > { %3048 = dma.done.wait (%p3290_p2), %s363_s18, 256  }
  0x63   : > { %3050 = vsyncadd (%p3290_p2), %s363_s18, 4294967040  ;;  %s4677_s0 = sld [smem:[#allocation27_spill]]  ;;  %s2269_s25 = sshll.u32 %s3409_s16, 7 }
  0x64   : > { %s3421_s27 = scalar_lea.vmem [#allocation8], %s2269_s25 }
  0x69   : > { %s372_s1 = sand.u32 1, %s4677_s0  }
  0x6a   : > { %s373_s12 = scalar_lea.sflag [#allocation9], %s372_s1 }
  0x6b   : > { %3052 = dma.done.wait (%p3290_p2), %s373_s12, 2048  }
  0x6c   : > { %3054 = vsyncadd (%p3290_p2), %s373_s12, 4294965248  ;;  %s384_s28 = sand.u32 1, %s3077_s22  }
  0x6d   : > { %s2270_s13 = sshll.u32 %s384_s28, 7 }
  0x6e   : > { %s3428_s29 = scalar_lea.vmem [#allocation10], %s2270_s13 }
  0x6f   : > { %3056 = dma.done.wait (%p3242_p4), %s373_s12, 2048  }
  0x70   : > { %3058 = vsyncadd (%p3242_p4), %s373_s12, 4294965248  ;;  %s393_s20 = scalar_lea.sflag [#allocation12], %s372_s1  ;;  %s3434_s26 = scalar_lea.vmem [#allocation11], %s2270_s13 }
  0x71   : > { %3060 = dma.done.wait (%p3242_p4), %s393_s20, 2048  }
  0x72   : > { %3062 = vsyncadd (%p3242_p4), %s393_s20, 4294965248 }
  0x73   : > { %3064 = dma.done.wait (%p70_p1), [#allocation12], 2048  }
  0x74   : > { %3066 = vsyncadd (%p70_p1), [#allocation12], 4294965248  ;;  %s3444_s17 = scalar_lea.vmem [#allocation14], %s2268_s5  ;;  %s4679_s19 = sld [smem:[#allocation24_spill]] }
  0x7a   : > { %p2274_p5 = scmp.ne.s32.totalorder %s4679_s19, 0 }
  0x7c   : > { %451 = sbr.rel (%p2274_p5) target bundleno = 178 (0xb2), region = 68 }
  0x81   : > { %v3127_v0 = vmov 0.0   ;;  %vm468_vm0 = vcmask 7168   ;;  %v3128_v1 = vmov -1e+30  }
  0x82   : > { %452 = vst [vmem:[#allocation4 + $0x30] sm:$0xff] %v3127_v0 }
  0x83   : > { %453 = vst [vmem:[#allocation4] sm:$0xff] %v3127_v0 }
  0x84   : > { %454 = vst [vmem:[#allocation4 + $0x58] sm:$0xff] %v3127_v0 }
  0x85   : > { %455 = vst [vmem:[#allocation4 + $0x18] sm:$0xff] %v3127_v0 }
  0x86   : > { %456 = vst [vmem:[#allocation4 + $0x50] sm:$0xff] %v3127_v0 }
  0x87   : > { %457 = vst [vmem:[#allocation4 + $0x68] sm:$0xff] %v3127_v0 }
  0x88   : > { %458 = vst [vmem:[#allocation4 + $0x8] sm:$0xff] %v3127_v0 }
  0x89   : > { %459 = vst [vmem:[#allocation4 + $0x48] sm:$0xff] %v3127_v0 }
  0x8a   : > { %460 = vst [vmem:[#allocation4 + $0x40] sm:$0xff] %v3127_v0 }
  0x8b   : > { %461 = vst [vmem:[#allocation4 + $0x20] sm:$0xff] %v3127_v0 }
  0x8c   : > { %462 = vst [vmem:[#allocation4 + $0x10] sm:$0xff] %v3127_v0 }
  0x8d   : > { %463 = vst [vmem:[#allocation4 + $0x38] sm:$0xff] %v3127_v0 }
  0x8e   : > { %464 = vst [vmem:[#allocation4 + $0x60] sm:$0xff] %v3127_v0 }
  0x8f   : > { %465 = vst [vmem:[#allocation4 + $0x70] sm:$0xff] %v3127_v0 }
  0x90   : > { %466 = vst [vmem:[#allocation4 + $0x78] sm:$0xff] %v3127_v0 }
  0x91   : > { %467 = vst [vmem:[#allocation4 + $0x28] sm:$0xff] %v3127_v0 }
  0x92   : > { %469 = vst.msk [vmem:[#allocation2] sm:$0xff] %vm468_vm0, %v3128_v1 }
  0x93   : > { %470 = vst.msk [vmem:[#allocation2 + $0x8] sm:$0xff] %vm468_vm0, %v3128_v1 }
  0x94   : > { %471 = vst.msk [vmem:[#allocation2 + $0x10] sm:$0xff] %vm468_vm0, %v3128_v1 }
  0x95   : > { %472 = vst.msk [vmem:[#allocation2 + $0x18] sm:$0xff] %vm468_vm0, %v3128_v1 }
  0x96   : > { %473 = vst.msk [vmem:[#allocation2 + $0x20] sm:$0xff] %vm468_vm0, %v3128_v1 }
  0x97   : > { %474 = vst.msk [vmem:[#allocation2 + $0x28] sm:$0xff] %vm468_vm0, %v3128_v1 }
  0x98   : > { %475 = vst.msk [vmem:[#allocation2 + $0x30] sm:$0xff] %vm468_vm0, %v3128_v1 }
  0x99   : > { %476 = vst.msk [vmem:[#allocation2 + $0x38] sm:$0xff] %vm468_vm0, %v3128_v1 }
  0x9a   : > { %477 = vst.msk [vmem:[#allocation2 + $0x40] sm:$0xff] %vm468_vm0, %v3128_v1 }
  0x9b   : > { %478 = vst.msk [vmem:[#allocation2 + $0x48] sm:$0xff] %vm468_vm0, %v3128_v1 }
  0x9c   : > { %479 = vst.msk [vmem:[#allocation2 + $0x50] sm:$0xff] %vm468_vm0, %v3128_v1 }
  0x9d   : > { %480 = vst.msk [vmem:[#allocation2 + $0x58] sm:$0xff] %vm468_vm0, %v3128_v1 }
  0x9e   : > { %481 = vst.msk [vmem:[#allocation2 + $0x60] sm:$0xff] %vm468_vm0, %v3128_v1 }
  0x9f   : > { %482 = vst.msk [vmem:[#allocation2 + $0x68] sm:$0xff] %vm468_vm0, %v3128_v1 }
  0xa0   : > { %483 = vst.msk [vmem:[#allocation2 + $0x70] sm:$0xff] %vm468_vm0, %v3128_v1 }
  0xa1   : > { %484 = vst.msk [vmem:[#allocation2 + $0x78] sm:$0xff] %vm468_vm0, %v3128_v1 }
  0xa2   : > { %485 = vst.msk [vmem:[#allocation3] sm:$0xff] %vm468_vm0, %v3127_v0 }
  0xa3   : > { %486 = vst.msk [vmem:[#allocation3 + $0x8] sm:$0xff] %vm468_vm0, %v3127_v0 }
  0xa4   : > { %487 = vst.msk [vmem:[#allocation3 + $0x10] sm:$0xff] %vm468_vm0, %v3127_v0 }
  0xa5   : > { %488 = vst.msk [vmem:[#allocation3 + $0x18] sm:$0xff] %vm468_vm0, %v3127_v0 }
  0xa6   : > { %489 = vst.msk [vmem:[#allocation3 + $0x20] sm:$0xff] %vm468_vm0, %v3127_v0 }
  0xa7   : > { %490 = vst.msk [vmem:[#allocation3 + $0x28] sm:$0xff] %vm468_vm0, %v3127_v0 }
  0xa8   : > { %491 = vst.msk [vmem:[#allocation3 + $0x30] sm:$0xff] %vm468_vm0, %v3127_v0 }
  0xa9   : > { %492 = vst.msk [vmem:[#allocation3 + $0x38] sm:$0xff] %vm468_vm0, %v3127_v0 }
  0xaa   : > { %493 = vst.msk [vmem:[#allocation3 + $0x40] sm:$0xff] %vm468_vm0, %v3127_v0 }
  0xab   : > { %494 = vst.msk [vmem:[#allocation3 + $0x48] sm:$0xff] %vm468_vm0, %v3127_v0 }
  0xac   : > { %495 = vst.msk [vmem:[#allocation3 + $0x50] sm:$0xff] %vm468_vm0, %v3127_v0 }
  0xad   : > { %496 = vst.msk [vmem:[#allocation3 + $0x58] sm:$0xff] %vm468_vm0, %v3127_v0 }
  0xae   : > { %497 = vst.msk [vmem:[#allocation3 + $0x60] sm:$0xff] %vm468_vm0, %v3127_v0 }
  0xaf   : > { %498 = vst.msk [vmem:[#allocation3 + $0x68] sm:$0xff] %vm468_vm0, %v3127_v0 }
  0xb0   : > { %499 = vst.msk [vmem:[#allocation3 + $0x70] sm:$0xff] %vm468_vm0, %v3127_v0 }
  0xb1   : > { %500 = vst.msk [vmem:[#allocation3 + $0x78] sm:$0xff] %vm468_vm0, %v3127_v0 }
  0xb2 PF: > { %v532_v2 = vld [vmem:[%s3428_s29 + $0x78] sm:$0xff]  ;;  %v531_v3 = vld [vmem:[%s3428_s29 + $0x70] sm:$0xff]  ;;  %v530_v4 = vld [vmem:[%s3428_s29 + $0x68] sm:$0xff]  ;;  %s4702_s15 = sld [smem:[#allocation24_spill]] }
  0xb3   : > { %2301 = vmatpush.msra.mxu2 %v532_v2  ;;  %2302 = vmatpush.msra.mxu3 %v532_v2  ;;  %v3483_v5 = vld [vmem:[%s3434_s26] sm:$0xff]  ;;  %v3486_v6 = vld [vmem:[%s3434_s26 + $0x8] sm:$0xff]  ;;  %v3489_v7 = vld [vmem:[%s3434_s26 + $0x10] sm:$0xff] }
  0xb4   : > { %4680 = vst [vmem:[#allocation36_spill] sm:$0xff] %v3483_v5  ;;  %v3492_v8 = vld [vmem:[%s3434_s26 + $0x18] sm:$0xff]  ;;  %v3495_v9 = vld [vmem:[%s3434_s26 + $0x20] sm:$0xff]  ;;  %v3498_v10 = vld [vmem:[%s3434_s26 + $0x28] sm:$0xff]  ;;  %549 = vmatpush.msra.mxu0 %v532_v2  ;;  %2300 = vmatpush.msra.mxu1 %v532_v2 }
  0xb5   : > { %4681 = vst [vmem:[#allocation37_spill] sm:$0xff] %v3486_v6  ;;  %2304 = vmatpush.msra.mxu2 %v531_v3  ;;  %2305 = vmatpush.msra.mxu3 %v531_v3  ;;  %v3501_v11 = vld [vmem:[%s3434_s26 + $0x30] sm:$0xff]  ;;  %v3504_v12 = vld [vmem:[%s3434_s26 + $0x38] sm:$0xff]  ;;  %v3507_v13 = vld [vmem:[%s3434_s26 + $0x40] sm:$0xff] }
  0xb6   : > { %4682 = vst [vmem:[#allocation38_spill] sm:$0xff] %v3489_v7  ;;  %v3510_v14 = vld [vmem:[%s3434_s26 + $0x48] sm:$0xff]  ;;  %v3513_v15 = vld [vmem:[%s3434_s26 + $0x50] sm:$0xff]  ;;  %v3516_v16 = vld [vmem:[%s3434_s26 + $0x58] sm:$0xff]  ;;  %550 = vmatpush.msra.mxu0 %v531_v3  ;;  %2303 = vmatpush.msra.mxu1 %v531_v3 }
  0xb7   : > { %4683 = vst [vmem:[#allocation39_spill] sm:$0xff] %v3492_v8  ;;  %2307 = vmatpush.msra.mxu2 %v530_v4  ;;  %2308 = vmatpush.msra.mxu3 %v530_v4  ;;  %v3519_v17 = vld [vmem:[%s3434_s26 + $0x60] sm:$0xff]  ;;  %v3522_v18 = vld [vmem:[%s3434_s26 + $0x68] sm:$0xff]  ;;  %v3525_v19 = vld [vmem:[%s3434_s26 + $0x70] sm:$0xff] }
  0xb8   : > { %4684 = vst [vmem:[#allocation40_spill] sm:$0xff] %v3495_v9  ;;  %v3528_v20 = vld [vmem:[%s3434_s26 + $0x78] sm:$0xff]  ;;  %v529_v21 = vld [vmem:[%s3428_s29 + $0x60] sm:$0xff]  ;;  %551 = vmatpush.msra.mxu0 %v530_v4  ;;  %2306 = vmatpush.msra.mxu1 %v530_v4  ;;  %v527_v23 = vld [vmem:[%s3428_s29 + $0x50] sm:$0xff]  ;;  %p2275_p1 = scmp.ne.s32.totalorder %s4702_s15, 1 }
  0xb9   : > { %4685 = vst [vmem:[#allocation41_spill] sm:$0xff] %v3498_v10  ;;  %v528_v22 = vld [vmem:[%s3428_s29 + $0x58] sm:$0xff]  ;;  %2310 = vmatpush.msra.mxu2 %v529_v21  ;;  %2311 = vmatpush.msra.mxu3 %v529_v21  ;;  %v526_v24 = vld [vmem:[%s3428_s29 + $0x48] sm:$0xff]  ;;  %v525_v25 = vld [vmem:[%s3428_s29 + $0x40] sm:$0xff]  ;;  %s4703_s24 = sld [smem:[#allocation24_spill]] (!%p2275_p1) }
  0xba   : > { %4686 = vst [vmem:[#allocation42_spill] sm:$0xff] %v3501_v11  ;;  %552 = vmatpush.msra.mxu0 %v529_v21  ;;  %2309 = vmatpush.msra.mxu1 %v529_v21  ;;  %v524_v26 = vld [vmem:[%s3428_s29 + $0x38] sm:$0xff]  ;;  %v523_v27 = vld [vmem:[%s3428_s29 + $0x30] sm:$0xff]  ;;  %v522_v28 = vld [vmem:[%s3428_s29 + $0x28] sm:$0xff] }
  0xbb   : > { %4687 = vst [vmem:[#allocation43_spill] sm:$0xff] %v3504_v12  ;;  %2313 = vmatpush.msra.mxu2 %v528_v22  ;;  %2314 = vmatpush.msra.mxu3 %v528_v22  ;;  %v521_v29 = vld [vmem:[%s3428_s29 + $0x20] sm:$0xff]  ;;  %v520_v30 = vld [vmem:[%s3428_s29 + $0x18] sm:$0xff]  ;;  %v519_v31 = vld [vmem:[%s3428_s29 + $0x10] sm:$0xff] }
  0xbc   : > { %4688 = vst [vmem:[#allocation44_spill] sm:$0xff] %v3507_v13  ;;  %553 = vmatpush.msra.mxu0 %v528_v22  ;;  %2312 = vmatpush.msra.mxu1 %v528_v22  ;;  %v518_v32 = vld [vmem:[%s3428_s29 + $0x8] sm:$0xff]  ;;  %v517_v33 = vld [vmem:[%s3428_s29] sm:$0xff]  ;;  %v511_v42 = vld [vmem:[%s3421_s27 + $0x50] sm:$0xff] }
  0xbd   : > { %4689 = vst [vmem:[#allocation45_spill] sm:$0xff] %v3510_v14  ;;  %2316 = vmatpush.msra.mxu2 %v527_v23  ;;  %2317 = vmatpush.msra.mxu3 %v527_v23  ;;  %v509_v34 = vld [vmem:[%s3421_s27 + $0x40] sm:$0xff]  ;;  %v510_v38 = vld [vmem:[%s3421_s27 + $0x48] sm:$0xff]  ;;  %v515_v43 = vld [vmem:[%s3421_s27 + $0x70] sm:$0xff] }
  0xbe   : > { %4690 = vst [vmem:[#allocation46_spill] sm:$0xff] %v3513_v15  ;;  %554 = vmatpush.msra.mxu0 %v527_v23  ;;  %2315 = vmatpush.msra.mxu1 %v527_v23  ;;  %v513_v35 = vld [vmem:[%s3421_s27 + $0x60] sm:$0xff]  ;;  %v514_v39 = vld [vmem:[%s3421_s27 + $0x68] sm:$0xff]  ;;  %v503_v44 = vld [vmem:[%s3421_s27 + $0x10] sm:$0xff] }
  0xbf   : > { %4691 = vst [vmem:[#allocation47_spill] sm:$0xff] %v3516_v16  ;;  %2319 = vmatpush.msra.mxu2 %v526_v24  ;;  %2320 = vmatpush.msra.mxu3 %v526_v24  ;;  %v501_v36 = vld [vmem:[%s3421_s27] sm:$0xff]  ;;  %v502_v40 = vld [vmem:[%s3421_s27 + $0x8] sm:$0xff]  ;;  %v507_v45 = vld [vmem:[%s3421_s27 + $0x30] sm:$0xff]  ;;  %s2276_s11 = sshll.u32 (!%p2275_p1), %s4703_s24, 7 }
  0xc0   : > { %555 = vmatpush.msra.mxu0 %v526_v24  ;;  %2318 = vmatpush.msra.mxu1 %v526_v24  ;;  %v505_v37 = vld [vmem:[%s3421_s27 + $0x20] sm:$0xff]  ;;  %v506_v41 = vld [vmem:[%s3421_s27 + $0x28] sm:$0xff]  ;;  %v512_v46 = vld [vmem:[%s3421_s27 + $0x58] sm:$0xff] }
  0xc1   : > { %2322 = vmatpush.msra.mxu2 %v525_v25  ;;  %2323 = vmatpush.msra.mxu3 %v525_v25  ;;  %v516_v47 = vld [vmem:[%s3421_s27 + $0x78] sm:$0xff] }
  0xc2   : > { %556 = vmatpush.msra.mxu0 %v525_v25  ;;  %2321 = vmatpush.msra.mxu1 %v525_v25  ;;  %v504_v48 = vld [vmem:[%s3421_s27 + $0x18] sm:$0xff] }
  0xc3   : > { %2325 = vmatpush.msra.mxu2 %v524_v26  ;;  %2326 = vmatpush.msra.mxu3 %v524_v26  ;;  %v508_v49 = vld [vmem:[%s3421_s27 + $0x38] sm:$0xff] }
  0xc4   : > { %557 = vmatpush.msra.mxu0 %v524_v26  ;;  %2324 = vmatpush.msra.mxu1 %v524_v26 }
  0xc5   : > { %2328 = vmatpush.msra.mxu2 %v523_v27  ;;  %2329 = vmatpush.msra.mxu3 %v523_v27 }
  0xc6   : > { %558 = vmatpush.msra.mxu0 %v523_v27  ;;  %2327 = vmatpush.msra.mxu1 %v523_v27 }
  0xc7   : > { %2331 = vmatpush.msra.mxu2 %v522_v28  ;;  %2332 = vmatpush.msra.mxu3 %v522_v28 }
  0xc8   : > { %559 = vmatpush.msra.mxu0 %v522_v28  ;;  %2330 = vmatpush.msra.mxu1 %v522_v28 }
  0xc9   : > { %2334 = vmatpush.msra.mxu2 %v521_v29  ;;  %2335 = vmatpush.msra.mxu3 %v521_v29 }
  0xca   : > { %560 = vmatpush.msra.mxu0 %v521_v29  ;;  %2333 = vmatpush.msra.mxu1 %v521_v29 }
  0xcb   : > { %2337 = vmatpush.msra.mxu2 %v520_v30  ;;  %2338 = vmatpush.msra.mxu3 %v520_v30 }
  0xcc   : > { %561 = vmatpush.msra.mxu0 %v520_v30  ;;  %2336 = vmatpush.msra.mxu1 %v520_v30 }
  0xcd   : > { %2340 = vmatpush.msra.mxu2 %v519_v31  ;;  %2341 = vmatpush.msra.mxu3 %v519_v31 }
  0xce   : > { %562 = vmatpush.msra.mxu0 %v519_v31  ;;  %2339 = vmatpush.msra.mxu1 %v519_v31 }
  0xcf   : > { %2343 = vmatpush.msra.mxu2 %v518_v32  ;;  %2344 = vmatpush.msra.mxu3 %v518_v32 }
  0xd0   : > { %563 = vmatpush.msra.mxu0 %v518_v32  ;;  %2342 = vmatpush.msra.mxu1 %v518_v32 }
  0xd1   : > { %2346 = vmatpush.msra.mxu2 %v517_v33  ;;  %2347 = vmatpush.msra.mxu3 %v517_v33 }
  0xd2   : > { %589 = vmatmul.f32.vlgmr.msra.gmra.mxu2 %v509_v34  ;;  %601 = vmatmul.f32.vlgmr.msra.gmra.mxu3 %v513_v35 }
  0xd3   : > { %564 = vmatpush.msra.mxu0 %v517_v33  ;;  %2345 = vmatpush.msra.mxu1 %v517_v33 }
  0xd4   : > { %565 = vmatmul.f32.vlgmr.msra.gmra.mxu0 %v501_v36  ;;  %577 = vmatmul.f32.vlgmr.msra.gmra.mxu1 %v505_v37 }
  0xda   : > { %592 = vmatmul.f32.gmra.mxu2 %v510_v38  ;;  %604 = vmatmul.f32.gmra.mxu3 %v514_v39 }
  0xdc   : > { %568 = vmatmul.f32.gmra.mxu0 %v502_v40  ;;  %580 = vmatmul.f32.gmra.mxu1 %v506_v41 }
  0xe2   : > { %595 = vmatmul.f32.gmra.mxu2 %v511_v42  ;;  %607 = vmatmul.f32.gmra.mxu3 %v515_v43 }
  0xe4   : > { %571 = vmatmul.f32.gmra.mxu0 %v503_v44  ;;  %583 = vmatmul.f32.gmra.mxu1 %v507_v45 }
  0xea   : > { %598 = vmatmul.f32.gmra.mxu2 %v512_v46  ;;  %610 = vmatmul.f32.gmra.mxu3 %v516_v47 }
  0xec   : > { %574 = vmatmul.f32.gmra.mxu0 %v504_v48  ;;  %586 = vmatmul.f32.gmra.mxu1 %v508_v49 }
 0x151   : > { %v3559_v50 = vpop.f32.mrf.mxu0  ;;  %v3561_v51 = vpop.f32.mrf.mxu1 }
 0x155   : > { %v3563_v52 = vpop.f32.mrf.mxu2  ;;  %v3565_v53 = vpop.f32.mrf.mxu3 }
 0x156   : > { %4692 = vst [vmem:[#allocation48_spill] sm:$0xff] %v3563_v52 }
 0x157   : > { %4693 = vst [vmem:[#allocation49_spill] sm:$0xff] %v3565_v53 }
 0x159   : > { %v3567_v54 = vpop.f32.mrf.mxu0  ;;  %v3569_v55 = vpop.f32.mrf.mxu1 }
 0x15d   : > { %v3571_v56 = vpop.f32.mrf.mxu2  ;;  %v3573_v57 = vpop.f32.mrf.mxu3 }
 0x15e   : > { %4694 = vst [vmem:[#allocation50_spill] sm:$0xff] %v3571_v56 }
 0x15f   : > { %4695 = vst [vmem:[#allocation51_spill] sm:$0xff] %v3573_v57 }
 0x161   : > { %v3575_v58 = vpop.f32.mrf.mxu0  ;;  %v3577_v59 = vpop.f32.mrf.mxu1 }
 0x162   : > { %4696 = vst [vmem:[#allocation52_spill] sm:$0xff] %v3577_v59 }
 0x165   : > { %v3579_v60 = vpop.f32.mrf.mxu2  ;;  %v3581_v61 = vpop.f32.mrf.mxu3 }
 0x166   : > { %4697 = vst [vmem:[#allocation53_spill] sm:$0xff] %v3579_v60 }
 0x167   : > { %4698 = vst [vmem:[#allocation54_spill] sm:$0xff] %v3581_v61 }
 0x169   : > { %v3583_v62 = vpop.f32.mrf.mxu0  ;;  %v3585_v63 = vpop.f32.mrf.mxu1 }
 0x16a   : > { %4699 = vst [vmem:[#allocation55_spill] sm:$0xff] %v3585_v63 }
 0x16b   : > { %617 = sbr.rel (%p2275_p1) target bundleno = 815 (0x32f), region = 72 }
 0x16d   : > { %v3587_v0 = vpop.f32.mrf.mxu2  ;;  %v3589_v1 = vpop.f32.mrf.mxu3 }
 0x16e   : > { %4700 = vst [vmem:[#allocation56_spill] sm:$0xff] %v3587_v0 }
 0x16f   : > { %4701 = vst [vmem:[#allocation57_spill] sm:$0xff] %v3589_v1 }
 0x170   : > { %v619_v2 = vlaneseq  ;;  %1105 = vmatpush.msra.mxu0 %v3528_v20  ;;  %2348 = vmatpush.msra.mxu1 %v3528_v20  ;;  %v621_v3 = vstv %s2276_s11  ;;  %v3129_v38 = vmov 0   ;;  %v3758_v39 = vld [vmem:[#allocation2 + $0x10] sm:$0xff]  ;;  %v3760_v40 = vld [vmem:[#allocation2] sm:$0xff]  ;;  %vm976_vm2 = vcmask 7168   ;;  %v3781_v48 = vld [vmem:[#allocation2 + $0x18] sm:$0xff] }
 0x171   : > { %2349 = vmatpush.msra.mxu2 %v3528_v20  ;;  %2350 = vmatpush.msra.mxu3 %v3528_v20  ;;  %v3762_v43 = vld [vmem:[#allocation2 + $0x20] sm:$0xff]  ;;  %v3783_v49 = vld [vmem:[#allocation2 + $0x8] sm:$0xff] }
 0x172   : > { %v620_v4 = vand.u32 127, %v619_v2  ;;  %1106 = vmatpush.msra.mxu0 %v3525_v19  ;;  %2351 = vmatpush.msra.mxu1 %v3525_v19 }
 0x173   : > { %2352 = vmatpush.msra.mxu2 %v3525_v19  ;;  %2353 = vmatpush.msra.mxu3 %v3525_v19 }
 0x174   : > { %v3603_v21 = vadd.s32 %v621_v3, %v620_v4  ;;  %1107 = vmatpush.msra.mxu0 %v3522_v18  ;;  %2354 = vmatpush.msra.mxu1 %v3522_v18  ;;  %v3785_v4 = vld [vmem:[#allocation2 + $0x28] sm:$0xff] }
 0x175   : > { %2355 = vmatpush.msra.mxu2 %v3522_v18  ;;  %2356 = vmatpush.msra.mxu3 %v3522_v18 }
 0x176   : > { %vm623_vm1 = vcmp.lt.s32.totalorder %v3603_v21, 192  ;;  %1108 = vmatpush.msra.mxu0 %v3519_v17  ;;  %2357 = vmatpush.msra.mxu1 %v3519_v17 }
 0x177   : > { %v3615_v22 = vsel %vm623_vm1, %v3575_v58, -1e+30  ;;  %v3620_v23 = vsel %vm623_vm1, %v3559_v50, -1e+30  ;;  %v3625_v24 = vsel %vm623_vm1, %v3561_v51, -1e+30  ;;  %2358 = vmatpush.msra.mxu2 %v3519_v17  ;;  %2359 = vmatpush.msra.mxu3 %v3519_v17 }
 0x178   : > { %660 = vmax.xlane.f32.xlu1 %v3615_v22  ;;  %656 = vmax.xlane.f32.xlu0 %v3620_v23  ;;  %v3642_v25 = vsel %vm623_vm1, %v3583_v62, -1e+30  ;;  %v3647_v26 = vsel %vm623_vm1, %v3567_v54, -1e+30  ;;  %v3654_v27 = vsel %vm623_vm1, %v3569_v55, -1e+30 }
 0x179   : > { %664 = vmax.xlane.f32.xlu2 %v3625_v24  ;;  %1109 = vmatpush.msra.mxu0 %v3516_v16  ;;  %v3673_v28 = vsel %vm623_vm1, %v3585_v63, -1e+30  ;;  %v3678_v29 = vsel %vm623_vm1, %v3577_v59, -1e+30  ;;  %v3685_v30 = vsel %vm623_vm1, %v3563_v52, -1e+30 }
 0x17a   : > { %2360 = vmatpush.msra.mxu1 %v3516_v16  ;;  %2361 = vmatpush.msra.mxu2 %v3516_v16  ;;  %v3704_v31 = vsel %vm623_vm1, %v3579_v60, -1e+30  ;;  %v3709_v32 = vsel %vm623_vm1, %v3571_v56, -1e+30  ;;  %v3716_v33 = vsel %vm623_vm1, %v3587_v0, -1e+30 }
 0x17b   : > { %1110 = vmatpush.msra.mxu0 %v3513_v15  ;;  %2362 = vmatpush.msra.mxu3 %v3516_v16  ;;  %v3734_v34 = vsel %vm623_vm1, %v3573_v57, -1e+30  ;;  %v3739_v35 = vsel %vm623_vm1, %v3565_v53, -1e+30  ;;  %v3745_v36 = vsel %vm623_vm1, %v3581_v61, -1e+30 }
 0x17c   : > { %2363 = vmatpush.msra.mxu1 %v3513_v15  ;;  %2364 = vmatpush.msra.mxu2 %v3513_v15  ;;  %v3755_v37 = vsel %vm623_vm1, %v3589_v1, -1e+30  ;;  %v3808_v53 = vld [vmem:[#allocation2 + $0x40] sm:$0xff]  ;;  %v3831_v0 = vld [vmem:[#allocation2 + $0x58] sm:$0xff] }
 0x17d   : > { %1111 = vmatpush.msra.mxu0 %v3510_v14  ;;  %2365 = vmatpush.msra.mxu3 %v3513_v15 }
 0x17e   : > { %2366 = vmatpush.msra.mxu1 %v3510_v14  ;;  %2367 = vmatpush.msra.mxu2 %v3510_v14 }
 0x17f   : > { %1112 = vmatpush.msra.mxu0 %v3507_v13  ;;  %2368 = vmatpush.msra.mxu3 %v3510_v14 }
 0x180   : > { %662 = vmax.xlane.f32.xlu1 %v3642_v25  ;;  %658 = vmax.xlane.f32.xlu0 %v3647_v26 }
 0x181   : > { %666 = vmax.xlane.f32.xlu2 %v3654_v27  ;;  %1113 = vmatpush.msra.mxu0 %v3504_v12 }
 0x182   : > { %2369 = vmatpush.msra.mxu1 %v3507_v13  ;;  %2370 = vmatpush.msra.mxu2 %v3507_v13 }
 0x183   : > { %1114 = vmatpush.msra.mxu0 %v3501_v11  ;;  %2371 = vmatpush.msra.mxu3 %v3507_v13 }
 0x184   : > { %2372 = vmatpush.msra.mxu1 %v3504_v12  ;;  %2373 = vmatpush.msra.mxu2 %v3504_v12 }
 0x185   : > { %1115 = vmatpush.msra.mxu0 %v3498_v10  ;;  %2374 = vmatpush.msra.mxu3 %v3504_v12 }
 0x186   : > { %2375 = vmatpush.msra.mxu1 %v3501_v11  ;;  %2376 = vmatpush.msra.mxu2 %v3501_v11 }
 0x187   : > { %1116 = vmatpush.msra.mxu0 %v3495_v9  ;;  %2377 = vmatpush.msra.mxu3 %v3501_v11 }
 0x188   : > { %670 = vmax.xlane.f32.xlu1 %v3673_v28  ;;  %668 = vmax.xlane.f32.xlu0 %v3678_v29 }
 0x189   : > { %672 = vmax.xlane.f32.xlu2 %v3685_v30  ;;  %1117 = vmatpush.msra.mxu0 %v3492_v8 }
 0x18a   : > { %2378 = vmatpush.msra.mxu1 %v3498_v10  ;;  %2379 = vmatpush.msra.mxu2 %v3498_v10 }
 0x18b   : > { %1118 = vmatpush.msra.mxu0 %v3489_v7  ;;  %2380 = vmatpush.msra.mxu3 %v3498_v10  ;;  %v3854_v10 = vld [vmem:[#allocation2 + $0x70] sm:$0xff] }
 0x18c   : > { %2381 = vmatpush.msra.mxu1 %v3495_v9  ;;  %2382 = vmatpush.msra.mxu2 %v3495_v9 }
 0x18d   : > { %1119 = vmatpush.msra.mxu0 %v3486_v6  ;;  %2383 = vmatpush.msra.mxu3 %v3495_v9 }
 0x18e   : > { %2384 = vmatpush.msra.mxu1 %v3492_v8  ;;  %2385 = vmatpush.msra.mxu2 %v3492_v8 }
 0x18f   : > { %1120 = vmatpush.msra.mxu0 %v3483_v5  ;;  %2386 = vmatpush.msra.mxu3 %v3492_v8 }
 0x190   : > { %676 = vmax.xlane.f32.xlu1 %v3704_v31  ;;  %674 = vmax.xlane.f32.xlu0 %v3709_v32 }
 0x191   : > { %678 = vmax.xlane.f32.xlu2 %v3716_v33  ;;  %2387 = vmatpush.msra.mxu1 %v3489_v7 }
 0x192   : > { %2388 = vmatpush.msra.mxu2 %v3489_v7  ;;  %2389 = vmatpush.msra.mxu3 %v3489_v7 }
 0x193   : > { %2390 = vmatpush.msra.mxu1 %v3486_v6  ;;  %2649 = vset.pattern.permute.xlu0 %v3129_v38 }
 0x194   : > { %2391 = vmatpush.msra.mxu2 %v3486_v6  ;;  %2392 = vmatpush.msra.mxu3 %v3486_v6 }
 0x195   : > { %2393 = vmatpush.msra.mxu1 %v3483_v5  ;;  %2647 = vset.pattern.permute.xlu1 %v3129_v38 }
 0x196   : > { %2394 = vmatpush.msra.mxu2 %v3483_v5  ;;  %2395 = vmatpush.msra.mxu3 %v3483_v5 }
 0x197   : > { %2648 = vset.pattern.permute.xlu2 %v3129_v38 }
 0x198   : > { %682 = vmax.xlane.f32.xlu1 %v3734_v34  ;;  %680 = vmax.xlane.f32.xlu0 %v3739_v35 }
 0x199   : > { %684 = vmax.xlane.f32.xlu2 %v3745_v36 }
 0x1a0   : > { %686 = vmax.xlane.f32.xlu0 %v3755_v37 }
 0x1eb   : > { %v661_v41 = vpop.xlane.xlu1 %660  ;;  %v657_v42 = vpop.xlane.xlu0 %656 }
 0x1ec   : > { %v3765_v44 = vmax.f32 %v3758_v39, %v661_v41  ;;  %v3768_v45 = vmax.f32 %v3760_v40, %v657_v42  ;;  %v665_v46 = vpop.xlane.xlu2 %664 }
 0x1ed   : > { %v3775_v47 = vmax.f32 %v3762_v43, %v665_v46 }
 0x1ee   : > { %1204 = vst.msk [vmem:[#allocation2 + $0x10] sm:$0xff] %vm976_vm2, %v3765_v44  ;;  %764 = vperm.xlu0 %2649, %v3765_v44   ;;  %754 = vperm.xlu1 %2647, %v3768_v45  }
 0x1ef   : > { %1202 = vst.msk [vmem:[#allocation2] sm:$0xff] %vm976_vm2, %v3768_v45 }
 0x1f0   : > { %1206 = vst.msk [vmem:[#allocation2 + $0x20] sm:$0xff] %vm976_vm2, %v3775_v47 }
 0x1f3   : > { %v663_v2 = vpop.xlane.xlu1 %662  ;;  %v659_v3 = vpop.xlane.xlu0 %658 }
 0x1f4   : > { %v3788_v38 = vmax.f32 %v3781_v48, %v663_v2  ;;  %v3791_v41 = vmax.f32 %v3783_v49, %v659_v3  ;;  %v667_v42 = vpop.xlane.xlu2 %666  ;;  %v3804_v2 = vld [vmem:[#allocation2 + $0x38] sm:$0xff]  ;;  %v3806_v3 = vld [vmem:[#allocation2 + $0x30] sm:$0xff] }
 0x1f5   : > { %v3798_v46 = vmax.f32 %v3785_v4, %v667_v42 }
 0x1f6   : > { %1205 = vst.msk [vmem:[#allocation2 + $0x18] sm:$0xff] %vm976_vm2, %v3788_v38  ;;  %774 = vperm.xlu1 %2647, %v3775_v47   ;;  %759 = vperm.xlu2 %2648, %v3791_v41  }
 0x1f7   : > { %1203 = vst.msk [vmem:[#allocation2 + $0x8] sm:$0xff] %vm976_vm2, %v3791_v41 }
 0x1f8   : > { %1207 = vst.msk [vmem:[#allocation2 + $0x28] sm:$0xff] %vm976_vm2, %v3798_v46 }
 0x1fb   : > { %v671_v1 = vpop.xlane.xlu1 %670  ;;  %v669_v61 = vpop.xlane.xlu0 %668 }
 0x1fc   : > { %v3811_v57 = vmax.f32 %v3804_v2, %v671_v1  ;;  %v3814_v42 = vmax.f32 %v3806_v3, %v669_v61  ;;  %v673_v5 = vpop.xlane.xlu2 %672  ;;  %v3827_v1 = vld [vmem:[#allocation2 + $0x50] sm:$0xff]  ;;  %v3829_v61 = vld [vmem:[#allocation2 + $0x48] sm:$0xff] }
 0x1fd   : > { %v3821_v6 = vmax.f32 %v3808_v53, %v673_v5 }
 0x1fe   : > { %1209 = vst.msk [vmem:[#allocation2 + $0x38] sm:$0xff] %vm976_vm2, %v3811_v57  ;;  %769 = vperm.xlu2 %2648, %v3788_v38   ;;  %784 = vperm.xlu1 %2647, %v3814_v42  }
 0x1ff   : > { %1208 = vst.msk [vmem:[#allocation2 + $0x30] sm:$0xff] %vm976_vm2, %v3814_v42 }
 0x200   : > { %1210 = vst.msk [vmem:[#allocation2 + $0x40] sm:$0xff] %vm976_vm2, %v3821_v6 }
 0x203   : > { %v677_v7 = vpop.xlane.xlu1 %676  ;;  %v675_v8 = vpop.xlane.xlu0 %674 }
 0x204   : > { %v3834_v56 = vmax.f32 %v3827_v1, %v677_v7  ;;  %v3837_v5 = vmax.f32 %v3829_v61, %v675_v8  ;;  %v679_v60 = vpop.xlane.xlu2 %678  ;;  %v3850_v7 = vld [vmem:[#allocation2 + $0x68] sm:$0xff]  ;;  %v3852_v8 = vld [vmem:[#allocation2 + $0x60] sm:$0xff] }
 0x205   : > { %v3844_v9 = vmax.f32 %v3831_v0, %v679_v60 }
 0x206   : > { %1212 = vst.msk [vmem:[#allocation2 + $0x50] sm:$0xff] %vm976_vm2, %v3834_v56  ;;  %779 = vperm.xlu2 %2648, %v3798_v46   ;;  %794 = vperm.xlu1 %2647, %v3821_v6  }
 0x207   : > { %1211 = vst.msk [vmem:[#allocation2 + $0x48] sm:$0xff] %vm976_vm2, %v3837_v5 }
 0x208   : > { %1213 = vst.msk [vmem:[#allocation2 + $0x58] sm:$0xff] %vm976_vm2, %v3844_v9 }
 0x20b   : > { %v683_v11 = vpop.xlane.xlu1 %682  ;;  %v681_v12 = vpop.xlane.xlu0 %680 }
 0x20c   : > { %v3857_v52 = vmax.f32 %v3850_v7, %v683_v11  ;;  %v3860_v60 = vmax.f32 %v3852_v8, %v681_v12  ;;  %v685_v59 = vpop.xlane.xlu2 %684  ;;  %v704_v11 = vsub.f32 %v3760_v40, %v3768_v45  ;;  %v707_v40 = vsub.f32 %v3781_v48, %v3788_v38 }
 0x20d   : > { %v3863_v63 = vmax.f32 %v3854_v10, %v685_v59  ;;  %v3880_v59 = vld [vmem:[#allocation2 + $0x78] sm:$0xff]  ;;  %v709_v45 = vsub.f32 %v3785_v4, %v3798_v46 }
 0x20e   : > { %1215 = vst.msk [vmem:[#allocation2 + $0x68] sm:$0xff] %vm976_vm2, %v3857_v52  ;;  %789 = vperm.xlu2 %2648, %v3811_v57   ;;  %819 = vperm.xlu1 %2647, %v3857_v52   ;;  %v720_v13 = vmul.f32 1.442695, %v704_v11  ;;  %v705_v11 = vsub.f32 %v3783_v49, %v3791_v41  ;;  %v726_v48 = vmul.f32 1.442695, %v707_v40 }
 0x20f   : > { %1214 = vst.msk [vmem:[#allocation2 + $0x60] sm:$0xff] %vm976_vm2, %v3860_v60  ;;  %814 = vperm.xlu0 %2649, %v3860_v60  }
 0x210   : > { %1216 = vst.msk [vmem:[#allocation2 + $0x70] sm:$0xff] %vm976_vm2, %v3863_v63  ;;  %2650 = vpow2.f32 %v720_v13  ;;  %v722_v38 = vmul.f32 1.442695, %v705_v11  ;;  %v710_v13 = vsub.f32 %v3806_v3, %v3814_v42  ;;  %v712_v11 = vsub.f32 %v3808_v53, %v3821_v6 }
 0x211   : > { %2652 = vpow2.f32 %v726_v48 }
 0x212   : > { %2654 = vpow2.f32 %v722_v38  ;;  %v732_v49 = vmul.f32 1.442695, %v710_v13  ;;  %v736_v3 = vmul.f32 1.442695, %v712_v11 }
 0x213   : > { %v687_v14 = vpop.xlane.xlu0 %686 }
 0x214   : > { %v3883_v15 = vmax.f32 %v3880_v59, %v687_v14  ;;  %v706_v14 = vsub.f32 %v3758_v39, %v3765_v44  ;;  %v708_v39 = vsub.f32 %v3762_v43, %v3775_v47  ;;  %v730_v44 = vmul.f32 1.442695, %v709_v45 }
 0x215   : > { %v713_v43 = vsub.f32 %v3829_v61, %v3837_v5  ;;  %v711_v47 = vsub.f32 %v3804_v2, %v3811_v57  ;;  %v716_v57 = vsub.f32 %v3852_v8, %v3860_v60  ;;  %v714_v2 = vsub.f32 %v3827_v1, %v3834_v56 }
 0x216   : > { %809 = vperm.xlu1 %2647, %v3844_v9   ;;  %799 = vperm.xlu2 %2648, %v3837_v5   ;;  %1217 = vst.msk [vmem:[#allocation2 + $0x78] sm:$0xff] %vm976_vm2, %v3883_v15  ;;  %v724_v12 = vmul.f32 1.442695, %v706_v14  ;;  %v3898_v16 = vpop.eup %2650  ;;  %v728_v40 = vmul.f32 1.442695, %v708_v39  ;;  %v715_v14 = vsub.f32 %v3831_v0, %v3844_v9 }
 0x217   : > { %804 = vperm.xlu0 %2649, %v3834_v56   ;;  %v3909_v41 = vpop.eup %2652  ;;  %v738_v42 = vmul.f32 1.442695, %v713_v43  ;;  %v734_v45 = vmul.f32 1.442695, %v711_v47  ;;  %v744_v5 = vmul.f32 1.442695, %v716_v57 }
 0x218   : > { %2656 = vpow2.f32 %v724_v12  ;;  %v3911_v4 = vpop.eup %2654  ;;  %v742_v61 = vmul.f32 1.442695, %v715_v14  ;;  %v740_v38 = vmul.f32 1.442695, %v714_v2 }
 0x219   : > { %2658 = vpow2.f32 %v730_v44 }
 0x21a   : > { %2660 = vpow2.f32 %v732_v49 }
 0x21b   : > { %2662 = vpow2.f32 %v728_v40 }
 0x21c   : > { %2664 = vpow2.f32 %v736_v3 }
 0x21d   : > { %2666 = vpow2.f32 %v738_v42 }
 0x21e   : > { %1011 = vperm.xlu1 %2647, %v3898_v16   ;;  %824 = vperm.xlu2 %2648, %v3863_v63   ;;  %v3913_v46 = vpop.eup %2656  ;;  %2668 = vpow2.f32 %v734_v45 }
 0x21f   : > { %829 = vperm.xlu0 %2649, %v3883_v15   ;;  %v3924_v12 = vpop.eup %2658  ;;  %2670 = vpow2.f32 %v742_v61 }
 0x220   : > { %v3926_v6 = vpop.eup %2660  ;;  %2672 = vpow2.f32 %v744_v5 }
 0x221   : > { %v3928_v53 = vpop.eup %2662  ;;  %2674 = vpow2.f32 %v740_v38 }
 0x222   : > { %v3939_v48 = vpop.eup %2664 }
 0x223   : > { %v3941_v9 = vpop.eup %2666 }
 0x224   : > { %v3943_v0 = vpop.eup %2668 }
 0x225   : > { %v3948_v8 = vpop.eup %2670 }
 0x226   : > { %1026 = vperm.xlu1 %2647, %v3909_v41   ;;  %1016 = vperm.xlu2 %2648, %v3911_v4   ;;  %v3950_v56 = vpop.eup %2672 }
 0x227   : > { %1021 = vperm.xlu0 %2649, %v3913_v46   ;;  %v3952_v1 = vpop.eup %2674 }
 0x22e   : > { %1041 = vperm.xlu1 %2647, %v3926_v6   ;;  %1036 = vperm.xlu2 %2648, %v3924_v12  }
 0x22f   : > { %1031 = vperm.xlu0 %2649, %v3928_v53  }
 0x236   : > { %1051 = vperm.xlu2 %2648, %v3939_v48   ;;  %1056 = vperm.xlu1 %2647, %v3941_v9  }
 0x237   : > { %1046 = vperm.xlu0 %2649, %v3943_v0  }
 0x23e   : > { %1066 = vperm.xlu2 %2648, %v3948_v8   ;;  %1071 = vperm.xlu1 %2647, %v3950_v56  }
 0x23f   : > { %1061 = vperm.xlu0 %2649, %v3952_v1  }
 0x250   : > { %v760_v60 = vpop.permute.xlu2 %759 }
 0x251   : > { %v833_v13 = vsub.f32 %v3647_v26, %v760_v60 }
 0x253   : > { %v850_v44 = vmul.f32 1.442695, %v833_v13 }
 0x255   : > { %2676 = vpow2.f32 %v850_v44 }
 0x258   : > { %v770_v39 = vpop.permute.xlu2 %769 }
 0x259   : > { %v835_v3 = vsub.f32 %v3642_v25, %v770_v39 }
 0x25b   : > { %v2677_v45 = vpop.eup %2676  ;;  %v854_v57 = vmul.f32 1.442695, %v835_v3 }
 0x25c   : > { %v881_v26 = vsel %vm623_vm1, %v2677_v45, 0.0 }
 0x260   : > { %v755_v49 = vpop.permute.xlu1 %754  ;;  %v780_v40 = vpop.permute.xlu2 %779 }
 0x261   : > { %v832_v11 = vsub.f32 %v3620_v23, %v755_v49  ;;  %v765_v43 = vpop.permute.xlu0 %764  ;;  %v837_v23 = vsub.f32 %v3654_v27, %v780_v40 }
 0x262   : > { %v834_v47 = vsub.f32 %v3615_v22, %v765_v43 }
 0x263   : > { %v848_v42 = vmul.f32 1.442695, %v832_v11  ;;  %v858_v39 = vmul.f32 1.442695, %v837_v23 }
 0x264   : > { %v852_v14 = vmul.f32 1.442695, %v834_v47 }
 0x265   : > { %2678 = vpow2.f32 %v848_v42 }
 0x266   : > { %2680 = vpow2.f32 %v852_v14 }
 0x267   : > { %2682 = vpow2.f32 %v854_v57 }
 0x268   : > { %v775_v2 = vpop.permute.xlu1 %774  ;;  %v790_v61 = vpop.permute.xlu2 %789  ;;  %930 = vadd.xlane.f32.xlu1 %v881_v26 }
 0x269   : > { %v836_v5 = vsub.f32 %v3625_v24, %v775_v2  ;;  %v839_v25 = vsub.f32 %v3673_v28, %v790_v61 }
 0x26b   : > { %v2679_v38 = vpop.eup %2678  ;;  %v856_v22 = vmul.f32 1.442695, %v836_v5  ;;  %v862_v44 = vmul.f32 1.442695, %v839_v25 }
 0x26c   : > { %2277 = vmatmul.msk.f32.vlgmr.msra.gmra.mxu0 %vm623_vm1, %v2679_v38  ;;  %v880_v60 = vsel %vm623_vm1, %v2679_v38, 0.0  ;;  %v2681_v13 = vpop.eup %2680 }
 0x26d   : > { %2684 = vpow2.f32 %v856_v22  ;;  %928 = vadd.xlane.f32.xlu2 %v880_v60  ;;  %v882_v24 = vsel %vm623_vm1, %v2681_v13, 0.0  ;;  %v2683_v49 = vpop.eup %2682 }
 0x26e   : > { %932 = vadd.xlane.f32.xlu0 %v882_v24  ;;  %2686 = vpow2.f32 %v858_v39  ;;  %v883_v3 = vsel %vm623_vm1, %v2683_v49, 0.0 }
 0x26f   : > { %2688 = vpow2.f32 %v862_v44 }
 0x270   : > { %v785_v27 = vpop.permute.xlu1 %784  ;;  %v800_v28 = vpop.permute.xlu2 %799 }
 0x271   : > { %v838_v40 = vsub.f32 %v3678_v29, %v785_v27  ;;  %v841_v47 = vsub.f32 %v3709_v32, %v800_v28 }
 0x273   : > { %v2685_v11 = vpop.eup %2684  ;;  %v860_v43 = vmul.f32 1.442695, %v838_v40  ;;  %v866_v14 = vmul.f32 1.442695, %v841_v47 }
 0x274   : > { %2278 = vmatmul.msk.f32.gmra.mxu0 %vm623_vm1, %v2677_v45  ;;  %2281 = vmatmul.msk.f32.vlgmr.msra.gmra.mxu1 %vm623_vm1, %v2685_v11  ;;  %v884_v42 = vsel %vm623_vm1, %v2685_v11, 0.0  ;;  %v2687_v29 = vpop.eup %2686 }
 0x275   : > { %2690 = vpow2.f32 %v860_v43  ;;  %934 = vadd.xlane.f32.xlu2 %v883_v3  ;;  %936 = vadd.xlane.f32.xlu1 %v884_v42  ;;  %v2689_v26 = vpop.eup %2688  ;;  %v885_v61 = vsel %vm623_vm1, %v2687_v29, 0.0 }
 0x276   : > { %2692 = vpow2.f32 %v866_v14  ;;  %v887_v5 = vsel %vm623_vm1, %v2689_v26, 0.0 }
 0x278   : > { %v795_v57 = vpop.permute.xlu1 %794  ;;  %v825_v27 = vpop.permute.xlu2 %824 }
 0x279   : > { %v840_v32 = vsub.f32 %v3685_v30, %v795_v57  ;;  %v846_v47 = vsub.f32 %v3745_v36, %v825_v27 }
 0x27b   : > { %v2691_v2 = vpop.eup %2690  ;;  %v864_v45 = vmul.f32 1.442695, %v840_v32 }
 0x27c   : > { %2279 = vmatmul.msk.f32.gmra.mxu0 %vm623_vm1, %v2681_v13  ;;  %2282 = vmatmul.msk.f32.gmra.mxu1 %vm623_vm1, %v2687_v29  ;;  %v886_v23 = vsel %vm623_vm1, %v2691_v2, 0.0  ;;  %v2693_v22 = vpop.eup %2692 }
 0x27d   : > { %2694 = vpow2.f32 %v864_v45  ;;  %938 = vadd.xlane.f32.xlu2 %v885_v61  ;;  %942 = vadd.xlane.f32.xlu1 %v887_v5 }
 0x27e   : > { %940 = vadd.xlane.f32.xlu0 %v886_v23 }
 0x280   : > { %v820_v30 = vpop.permute.xlu1 %819 }
 0x281   : > { %v815_v38 = vpop.permute.xlu0 %814  ;;  %v845_v13 = vsub.f32 %v3734_v34, %v820_v30  ;;  %v4704_v30 = vsub.f32 %v3850_v7, %v3857_v52 }
 0x282   : > { %v844_v25 = vsub.f32 %v3739_v35, %v815_v38  ;;  %v889_v35 = vsel %vm623_vm1, %v2693_v22, 0.0 }
 0x283   : > { %v2695_v60 = vpop.eup %2694  ;;  %v874_v34 = vmul.f32 1.442695, %v845_v13  ;;  %v746_v38 = vmul.f32 1.442695, %v4704_v30  ;;  %v4706_v13 = vsub.f32 %v3880_v59, %v3883_v15 }
 0x284   : > { %v872_v39 = vmul.f32 1.442695, %v844_v25  ;;  %2280 = vmatmul.msk.f32.gmra.mxu0 %vm623_vm1, %v2683_v49  ;;  %2283 = vmatmul.msk.f32.gmra.mxu1 %vm623_vm1, %v2691_v2  ;;  %v888_v24 = vsel %vm623_vm1, %v2695_v60, 0.0 }
 0x285   : > { %2285 = vmatmul.msk.f32.vlgmr.msra.gmra.mxu2 %vm623_vm1, %v2695_v60  ;;  %944 = vadd.xlane.f32.xlu2 %v888_v24 }
 0x286   : > { %2696 = vpow2.f32 %v872_v39  ;;  %946 = vadd.xlane.f32.xlu0 %v889_v35  ;;  %v750_v39 = vmul.f32 1.442695, %v4706_v13  ;;  %v994_v13 = vld [vmem:[#allocation4] sm:$0xff] }
 0x287   : > { %2698 = vpow2.f32 %v874_v34 }
 0x288   : > { %v810_v44 = vpop.permute.xlu1 %809 }
 0x289   : > { %v843_v49 = vsub.f32 %v3716_v33, %v810_v44  ;;  %v805_v40 = vpop.permute.xlu0 %804 }
 0x28a   : > { %v842_v28 = vsub.f32 %v3704_v31, %v805_v40  ;;  %v876_v31 = vmul.f32 1.442695, %v846_v47  ;;  %v897_v40 = vld [vmem:[#allocation3 + $0x8] sm:$0xff] }
 0x28b   : > { %v870_v11 = vmul.f32 1.442695, %v843_v49 }
 0x28c   : > { %v2697_v43 = vpop.eup %2696  ;;  %v868_v3 = vmul.f32 1.442695, %v842_v28  ;;  %2284 = vmatmul.msk.f32.gmra.mxu1 %vm623_vm1, %v2689_v26 }
 0x28d   : > { %2700 = vpow2.f32 %v870_v11  ;;  %2286 = vmatmul.msk.f32.gmra.mxu2 %vm623_vm1, %v2693_v22  ;;  %2289 = vmatmul.msk.f32.vlgmr.msra.gmra.mxu3 %vm623_vm1, %v2697_v43  ;;  %v892_v33 = vsel %vm623_vm1, %v2697_v43, 0.0  ;;  %v2699_v36 = vpop.eup %2698  ;;  %v4705_v22 = vsub.f32 %v3854_v10, %v3863_v63  ;;  %v1017_v10 = vpop.permute.xlu2 %1016  ;;  %v913_v43 = vmul.f32 %v3911_v4, %v897_v40  ;;  %v997_v40 = vld [vmem:[#allocation4 + $0x50] sm:$0xff] }
 0x28e   : > { %2702 = vpow2.f32 %v868_v3  ;;  %952 = vadd.xlane.f32.xlu0 %v892_v33  ;;  %v893_v5 = vsel %vm623_vm1, %v2699_v36, 0.0  ;;  %v896_v33 = vld [vmem:[#allocation3] sm:$0xff] }
 0x28f   : > { %2704 = vpow2.f32 %v876_v31  ;;  %v748_v25 = vmul.f32 1.442695, %v4705_v22  ;;  %v898_v31 = vld [vmem:[#allocation3 + $0x10] sm:$0xff]  ;;  %v901_v22 = vld [vmem:[#allocation3 + $0x28] sm:$0xff] }
 0x290   : > { %v1012_v60 = vpop.permute.xlu1 %1011 }
 0x291   : > { %v830_v42 = vpop.permute.xlu0 %829 }
 0x292   : > { %v847_v29 = vsub.f32 %v3755_v37, %v830_v42  ;;  %v912_v42 = vmul.f32 %v3898_v16, %v896_v33 }
 0x293   : > { %v2701_v14 = vpop.eup %2700 }
 0x294   : > { %v2703_v57 = vpop.eup %2702  ;;  %v878_v26 = vmul.f32 1.442695, %v847_v29  ;;  %v891_v32 = vsel %vm623_vm1, %v2701_v14, 0.0 }
 0x295   : > { %2287 = vmatmul.msk.f32.gmra.mxu2 %vm623_vm1, %v2703_v57  ;;  %2290 = vmatmul.msk.f32.gmra.mxu3 %vm623_vm1, %v2699_v36  ;;  %v890_v2 = vsel %vm623_vm1, %v2703_v57, 0.0  ;;  %v2705_v37 = vpop.eup %2704  ;;  %v4061_v59 = vpop.permute.xlu2 %1036 }
 0x296   : > { %2706 = vpow2.f32 %v878_v26  ;;  %950 = vadd.xlane.f32.xlu2 %v891_v32  ;;  %948 = vadd.xlane.f32.xlu1 %v890_v2  ;;  %v894_v61 = vsel %vm623_vm1, %v2705_v37, 0.0  ;;  %v899_v32 = vld [vmem:[#allocation3 + $0x18] sm:$0xff]  ;;  %v900_v2 = vld [vmem:[#allocation3 + $0x20] sm:$0xff] }
 0x297   : > { %2708 = vpow2.f32 %v746_v38  ;;  %v915_v4 = vmul.f32 %v3909_v41, %v899_v32  ;;  %v917_v41 = vmul.f32 %v3924_v12, %v901_v22  ;;  %v904_v12 = vld [vmem:[#allocation3 + $0x40] sm:$0xff]  ;;  %v996_v22 = vld [vmem:[#allocation4 + $0x18] sm:$0xff] }
 0x298   : > { %2710 = vpow2.f32 %v748_v25  ;;  %v4051_v52 = vpop.permute.xlu1 %1026  ;;  %v903_v25 = vld [vmem:[#allocation3 + $0x38] sm:$0xff] }
 0x299   : > { %2712 = vpow2.f32 %v750_v39  ;;  %v4057_v63 = vpop.permute.xlu0 %1021  ;;  %v902_v39 = vld [vmem:[#allocation3 + $0x30] sm:$0xff] }
 0x29c   : > { %v2707_v45 = vpop.eup %2706 }
 0x29d   : > { %2288 = vmatmul.msk.f32.gmra.mxu2 %vm623_vm1, %v2701_v14  ;;  %2291 = vmatmul.msk.f32.gmra.mxu3 %vm623_vm1, %v2705_v37  ;;  %v895_v23 = vsel %vm623_vm1, %v2707_v45, 0.0  ;;  %v4046_v24 = vpop.eup %2708  ;;  %v4065_v44 = vpop.permute.xlu2 %1051  ;;  %v914_v14 = vmul.f32 %v3913_v46, %v898_v31  ;;  %v993_v37 = vld [vmem:[#allocation4 + $0x30] sm:$0xff] }
 0x29e   : > { %956 = vadd.xlane.f32.xlu2 %v894_v61  ;;  %954 = vadd.xlane.f32.xlu1 %v893_v5  ;;  %v4049_v21 = vpop.eup %2710  ;;  %v1089_v61 = vmul.f32 %v1012_v60, %v993_v37  ;;  %v1090_v60 = vmul.f32 %v1017_v10, %v994_v13  ;;  %v905_v10 = vld [vmem:[#allocation3 + $0x48] sm:$0xff] }
 0x29f   : > { %958 = vadd.xlane.f32.xlu0 %v895_v23  ;;  %v4053_v7 = vpop.eup %2712 }
 0x2a0   : > { %v4059_v15 = vpop.permute.xlu1 %1041 }
 0x2a1   : > { %v1032_v35 = vpop.permute.xlu0 %1031 }
 0x2a2   : > { %v1093_v33 = vmul.f32 %v1032_v35, %v997_v40 }
 0x2a5   : > { %2292 = vmatmul.msk.f32.gmra.mxu3 %vm623_vm1, %v2707_v45  ;;  %v4071_v28 = vpop.permute.xlu2 %1066  ;;  %v916_v45 = vmul.f32 %v3928_v53, %v900_v2  ;;  %v919_v53 = vmul.f32 %v3943_v0, %v903_v25  ;;  %v995_v0 = vld [vmem:[#allocation4 + $0x58] sm:$0xff]  ;;  %v998_v2 = vld [vmem:[#allocation4 + $0x68] sm:$0xff] }
 0x2a6   : > { %v1091_v35 = vmul.f32 %v4057_v63, %v995_v0  ;;  %v999_v63 = vld [vmem:[#allocation4 + $0x8] sm:$0xff]  ;;  %v1002_v0 = vld [vmem:[#allocation4 + $0x20] sm:$0xff] }
 0x2a7   : > { %v1095_v25 = vmul.f32 %v4059_v15, %v999_v63  ;;  %v1007_v63 = vld [vmem:[#allocation4 + $0x78] sm:$0xff] }
 0x2a8   : > { %v4063_v34 = vpop.permute.xlu1 %1056 }
 0x2a9   : > { %v4067_v27 = vpop.permute.xlu0 %1046 }
 0x2b0   : > { %v4069_v49 = vpop.permute.xlu1 %1071 }
 0x2b1   : > { %v4073_v11 = vpop.permute.xlu0 %1061 }
 0x2b3   : > { %1076 = vperm.xlu0 %2649, %v4046_v24  }
 0x2b6   : > { %1081 = vperm.xlu2 %2648, %v4049_v21  }
 0x2b7   : > { %1086 = vperm.xlu1 %2647, %v4053_v7  }
 0x2db   : > { %v931_v47 = vpop.xlane.xlu1 %930 }
 0x2dc   : > { %v961_v3 = vadd.f32 %v931_v47, %v913_v43 }
 0x2de   : > { %978 = vst.msk [vmem:[#allocation3 + $0x8] sm:$0xff] %vm976_vm2, %v961_v3  ;;  %v918_v3 = vmul.f32 %v3926_v6, %v902_v39  ;;  %v920_v6 = vmul.f32 %v3939_v48, %v904_v12  ;;  %v908_v48 = vld [vmem:[#allocation3 + $0x60] sm:$0xff] }
 0x2e0   : > { %v929_v36 = vpop.xlane.xlu2 %928 }
 0x2e1   : > { %v960_v29 = vadd.f32 %v929_v36, %v912_v42  ;;  %v933_v57 = vpop.xlane.xlu0 %932 }
 0x2e2   : > { %v962_v26 = vadd.f32 %v933_v57, %v914_v14 }
 0x2e3   : > { %977 = vst.msk [vmem:[#allocation3] sm:$0xff] %vm976_vm2, %v960_v29 }
 0x2e4   : > { %979 = vst.msk [vmem:[#allocation3 + $0x10] sm:$0xff] %vm976_vm2, %v962_v26 }
 0x2e8   : > { %v935_v5 = vpop.xlane.xlu2 %934  ;;  %v937_v16 = vpop.xlane.xlu1 %936 }
 0x2e9   : > { %v963_v23 = vadd.f32 %v935_v5, %v915_v4  ;;  %v964_v30 = vadd.f32 %v937_v16, %v916_v45  ;;  %v1122_v38 = vpop.f32.mrf.mxu0  ;;  %v921_v4 = vmul.f32 %v3941_v9, %v905_v10  ;;  %v1094_v45 = vmul.f32 %v4061_v59, %v998_v2  ;;  %v1005_v10 = vld [vmem:[#allocation4 + $0x60] sm:$0xff] }
 0x2ea   : > { %v1170_v46 = vadd.f32 %v1122_v38, %v1089_v61  ;;  %v1092_v9 = vmul.f32 %v4051_v52, %v996_v22  ;;  %v924_v59 = vmul.f32 %v3950_v56, %v908_v48  ;;  %v1101_v2 = vmul.f32 %v4069_v49, %v1005_v10 }
 0x2eb   : > { %980 = vst.msk [vmem:[#allocation3 + $0x18] sm:$0xff] %vm976_vm2, %v963_v23 }
 0x2ec   : > { %981 = vst.msk [vmem:[#allocation3 + $0x20] sm:$0xff] %vm976_vm2, %v964_v30 }
 0x2ed   : > { %1186 = vst [vmem:[#allocation4 + $0x30] sm:$0xff] %v1170_v46 }
 0x2f0   : > { %v939_v43 = vpop.xlane.xlu2 %938  ;;  %v943_v47 = vpop.xlane.xlu1 %942 }
 0x2f1   : > { %v965_v31 = vadd.f32 %v939_v43, %v917_v41  ;;  %v967_v42 = vadd.f32 %v943_v47, %v919_v53  ;;  %v941_v36 = vpop.xlane.xlu0 %940  ;;  %v1125_v29 = vpop.f32.mrf.mxu0  ;;  %v1001_v43 = vld [vmem:[#allocation4 + $0x40] sm:$0xff]  ;;  %v907_v47 = vld [vmem:[#allocation3 + $0x58] sm:$0xff] }
 0x2f2   : > { %v966_v14 = vadd.f32 %v941_v36, %v918_v3  ;;  %v1171_v57 = vadd.f32 %v1125_v29, %v1090_v60  ;;  %v1134_v26 = vpop.f32.mrf.mxu1  ;;  %v906_v3 = vld [vmem:[#allocation3 + $0x50] sm:$0xff]  ;;  %v1097_v52 = vmul.f32 %v4065_v44, %v1001_v43  ;;  %v923_v56 = vmul.f32 %v3948_v8, %v907_v47  ;;  %v909_v8 = vld [vmem:[#allocation3 + $0x68] sm:$0xff] }
 0x2f3   : > { %982 = vst.msk [vmem:[#allocation3 + $0x28] sm:$0xff] %vm976_vm2, %v965_v31  ;;  %v1174_v32 = vadd.f32 %v1134_v26, %v1093_v33  ;;  %v1000_v33 = vld [vmem:[#allocation4 + $0x48] sm:$0xff]  ;;  %v922_v15 = vmul.f32 %v3952_v1, %v906_v3  ;;  %v910_v44 = vld [vmem:[#allocation3 + $0x70] sm:$0xff]  ;;  %v911_v1 = vld [vmem:[#allocation3 + $0x78] sm:$0xff] }
 0x2f4   : > { %984 = vst.msk [vmem:[#allocation3 + $0x38] sm:$0xff] %vm976_vm2, %v967_v42  ;;  %v1096_v42 = vmul.f32 %v4067_v27, %v1000_v33  ;;  %v1098_v27 = vmul.f32 %v4063_v34, %v1002_v0  ;;  %v1003_v34 = vld [vmem:[#allocation4 + $0x10] sm:$0xff]  ;;  %v1008_v43 = vld [vmem:[#allocation4 + $0x28] sm:$0xff] }
 0x2f5   : > { %983 = vst.msk [vmem:[#allocation3 + $0x30] sm:$0xff] %vm976_vm2, %v966_v14 }
 0x2f6   : > { %1187 = vst [vmem:[#allocation4] sm:$0xff] %v1171_v57 }
 0x2f7   : > { %1190 = vst [vmem:[#allocation4 + $0x50] sm:$0xff] %v1174_v32 }
 0x2f8   : > { %v945_v37 = vpop.xlane.xlu2 %944 }
 0x2f9   : > { %v968_v61 = vadd.f32 %v945_v37, %v920_v6  ;;  %v947_v5 = vpop.xlane.xlu0 %946  ;;  %v1128_v16 = vpop.f32.mrf.mxu0  ;;  %v926_v37 = vmul.f32 %v4049_v21, %v910_v44  ;;  %v1099_v21 = vmul.f32 %v4073_v11, %v1003_v34 }
 0x2fa   : > { %v969_v23 = vadd.f32 %v947_v5, %v921_v4  ;;  %v1172_v30 = vadd.f32 %v1128_v16, %v1091_v35  ;;  %v1137_v38 = vpop.f32.mrf.mxu1  ;;  %v925_v4 = vmul.f32 %v4046_v24, %v909_v8 }
 0x2fb   : > { %985 = vst.msk [vmem:[#allocation3 + $0x40] sm:$0xff] %vm976_vm2, %v968_v61  ;;  %v1175_v46 = vadd.f32 %v1137_v38, %v1094_v45 }
 0x2fc   : > { %986 = vst.msk [vmem:[#allocation3 + $0x48] sm:$0xff] %vm976_vm2, %v969_v23  ;;  %v927_v23 = vmul.f32 %v4053_v7, %v911_v1  ;;  %v1004_v7 = vld [vmem:[#allocation4 + $0x38] sm:$0xff] }
 0x2fd   : > { %1188 = vst [vmem:[#allocation4 + $0x58] sm:$0xff] %v1172_v30 }
 0x2fe   : > { %1191 = vst [vmem:[#allocation4 + $0x68] sm:$0xff] %v1175_v46 }
 0x301   : > { %v953_v13 = vpop.xlane.xlu0 %952  ;;  %v1131_v39 = vpop.f32.mrf.mxu0 }
 0x302   : > { %v972_v40 = vadd.f32 %v953_v13, %v924_v59  ;;  %v1173_v41 = vadd.f32 %v1131_v39, %v1092_v9  ;;  %v1140_v53 = vpop.f32.mrf.mxu1  ;;  %v1100_v59 = vmul.f32 %v4071_v28, %v1004_v7 }
 0x303   : > { %v1176_v60 = vadd.f32 %v1140_v53, %v1095_v25  ;;  %v1006_v53 = vld [vmem:[#allocation4 + $0x70] sm:$0xff] }
 0x304   : > { %989 = vst.msk [vmem:[#allocation3 + $0x60] sm:$0xff] %vm976_vm2, %v972_v40 }
 0x305   : > { %1189 = vst [vmem:[#allocation4 + $0x18] sm:$0xff] %v1173_v41 }
 0x306   : > { %1192 = vst [vmem:[#allocation4 + $0x8] sm:$0xff] %v1176_v60 }
 0x308   : > { %v1146_v31 = vpop.f32.mrf.mxu2 }
 0x309   : > { %v1178_v36 = vadd.f32 %v1146_v31, %v1097_v52  ;;  %v951_v29 = vpop.xlane.xlu2 %950  ;;  %v949_v14 = vpop.xlane.xlu1 %948 }
 0x30a   : > { %v971_v57 = vadd.f32 %v951_v29, %v923_v56  ;;  %v970_v26 = vadd.f32 %v949_v14, %v922_v15  ;;  %v1143_v32 = vpop.f32.mrf.mxu1 }
 0x30b   : > { %1194 = vst [vmem:[#allocation4 + $0x40] sm:$0xff] %v1178_v36  ;;  %v1177_v12 = vadd.f32 %v1143_v32, %v1096_v42 }
 0x30c   : > { %988 = vst.msk [vmem:[#allocation3 + $0x58] sm:$0xff] %vm976_vm2, %v971_v57 }
 0x30d   : > { %987 = vst.msk [vmem:[#allocation3 + $0x50] sm:$0xff] %vm976_vm2, %v970_v26 }
 0x30e   : > { %1193 = vst [vmem:[#allocation4 + $0x48] sm:$0xff] %v1177_v12 }
 0x310   : > { %v1149_v6 = vpop.f32.mrf.mxu2  ;;  %v1158_v35 = vpop.f32.mrf.mxu3 }
 0x311   : > { %v1179_v45 = vadd.f32 %v1149_v6, %v1098_v27  ;;  %v1182_v61 = vadd.f32 %v1158_v35, %v1101_v2  ;;  %v957_v5 = vpop.xlane.xlu2 %956  ;;  %v955_v16 = vpop.xlane.xlu1 %954 }
 0x312   : > { %v974_v30 = vadd.f32 %v957_v5, %v926_v37  ;;  %v973_v38 = vadd.f32 %v955_v16, %v925_v4  ;;  %v959_v46 = vpop.xlane.xlu0 %958 }
 0x313   : > { %1195 = vst [vmem:[#allocation4 + $0x20] sm:$0xff] %v1179_v45  ;;  %v975_v22 = vadd.f32 %v959_v46, %v927_v23 }
 0x314   : > { %1198 = vst [vmem:[#allocation4 + $0x60] sm:$0xff] %v1182_v61 }
 0x315   : > { %991 = vst.msk [vmem:[#allocation3 + $0x70] sm:$0xff] %vm976_vm2, %v974_v30 }
 0x316   : > { %990 = vst.msk [vmem:[#allocation3 + $0x68] sm:$0xff] %vm976_vm2, %v973_v38 }
 0x317   : > { %992 = vst.msk [vmem:[#allocation3 + $0x78] sm:$0xff] %vm976_vm2, %v975_v22 }
 0x318   : > { %v1152_v24 = vpop.f32.mrf.mxu2  ;;  %v1161_v49 = vpop.f32.mrf.mxu3 }
 0x319   : > { %v1180_v48 = vadd.f32 %v1152_v24, %v1099_v21  ;;  %v1082_v9 = vpop.permute.xlu2 %1081 }
 0x31a   : > { %v1103_v25 = vmul.f32 %v1082_v9, %v1007_v63 }
 0x31b   : > { %1196 = vst [vmem:[#allocation4 + $0x10] sm:$0xff] %v1180_v48 }
 0x320   : > { %v1155_v13 = vpop.f32.mrf.mxu2  ;;  %v1164_v39 = vpop.f32.mrf.mxu3 }
 0x321   : > { %v1181_v40 = vadd.f32 %v1155_v13, %v1100_v59  ;;  %v1184_v41 = vadd.f32 %v1164_v39, %v1103_v25 }
 0x323   : > { %1197 = vst [vmem:[#allocation4 + $0x38] sm:$0xff] %v1181_v40 }
 0x324   : > { %1200 = vst [vmem:[#allocation4 + $0x78] sm:$0xff] %v1184_v41 }
 0x325   : > { %v1077_v11 = vpop.permute.xlu0 %1076 }
 0x326   : > { %v1102_v60 = vmul.f32 %v1077_v11, %v1006_v53 }
 0x328   : > { %v1183_v47 = vadd.f32 %v1161_v49, %v1102_v60  ;;  %v1167_v52 = vpop.f32.mrf.mxu3 }
 0x329   : > { %v1087_v3 = vpop.permute.xlu1 %1086 }
 0x32a   : > { %1199 = vst [vmem:[#allocation4 + $0x70] sm:$0xff] %v1183_v47  ;;  %v1104_v33 = vmul.f32 %v1087_v3, %v1008_v43 }
 0x32c   : > { %v1185_v31 = vadd.f32 %v1167_v52, %v1104_v33 }
 0x32e   : > { %1201 = vst [vmem:[#allocation4 + $0x28] sm:$0xff] %v1185_v31 }
 0x32f PF: > { %s4707_s14 = sld [smem:[#allocation24_spill]] }
 0x335   : > { %p2293_p4 = scmp.ge.s32.totalorder %s4707_s14, 1 }
 0x337   : > { %1221 = sbr.rel (%p2293_p4) target bundleno = 1266 (0x4f2), region = 76 }
 0x33c   : > { %1242 = vmax.xlane.f32.xlu1 %v3575_v58  ;;  %1238 = vmax.xlane.f32.xlu0 %v3559_v50  ;;  %v4711_v28 = vld [vmem:[#allocation44_spill] sm:$0xff]  ;;  %v4712_v56 = vld [vmem:[#allocation55_spill] sm:$0xff]  ;;  %v4716_v36 = vld [vmem:[#allocation42_spill] sm:$0xff]  ;;  %v3130_v6 = vmov 0   ;;  %vm1542_vm3 = vcmask 7168  }
 0x33d   : > { %1246 = vmax.xlane.f32.xlu2 %v3561_v51  ;;  %1671 = vmatpush.msra.mxu0 %v3528_v20  ;;  %v4713_v15 = vld [vmem:[#allocation52_spill] sm:$0xff]  ;;  %v4715_v42 = vld [vmem:[#allocation43_spill] sm:$0xff]  ;;  %v4717_v29 = vld [vmem:[#allocation41_spill] sm:$0xff] }
 0x33e   : > { %2396 = vmatpush.msra.mxu1 %v3528_v20  ;;  %2397 = vmatpush.msra.mxu2 %v3528_v20  ;;  %v4718_v14 = vld [vmem:[#allocation40_spill] sm:$0xff]  ;;  %v4719_v57 = vld [vmem:[#allocation53_spill] sm:$0xff]  ;;  %v4720_v26 = vld [vmem:[#allocation50_spill] sm:$0xff] }
 0x33f   : > { %1672 = vmatpush.msra.mxu0 %v3525_v19  ;;  %2398 = vmatpush.msra.mxu3 %v3528_v20  ;;  %v4708_v20 = vld [vmem:[#allocation47_spill] sm:$0xff]  ;;  %v4721_v32 = vld [vmem:[#allocation56_spill] sm:$0xff]  ;;  %v4723_v0 = vld [vmem:[#allocation38_spill] sm:$0xff] }
 0x340   : > { %2399 = vmatpush.msra.mxu1 %v3525_v19  ;;  %2400 = vmatpush.msra.mxu2 %v3525_v19  ;;  %v4722_v12 = vld [vmem:[#allocation39_spill] sm:$0xff]  ;;  %v4724_v10 = vld [vmem:[#allocation37_spill] sm:$0xff]  ;;  %v4725_v44 = vld [vmem:[#allocation36_spill] sm:$0xff] }
 0x341   : > { %1673 = vmatpush.msra.mxu0 %v3522_v18  ;;  %2401 = vmatpush.msra.mxu3 %v3525_v19  ;;  %v4709_v19 = vld [vmem:[#allocation46_spill] sm:$0xff]  ;;  %v4726_v8 = vld [vmem:[#allocation51_spill] sm:$0xff]  ;;  %v4727_v1 = vld [vmem:[#allocation49_spill] sm:$0xff] }
 0x342   : > { %2402 = vmatpush.msra.mxu1 %v3522_v18  ;;  %2403 = vmatpush.msra.mxu2 %v3522_v18  ;;  %v4728_v27 = vld [vmem:[#allocation54_spill] sm:$0xff]  ;;  %v4729_v2 = vld [vmem:[#allocation57_spill] sm:$0xff]  ;;  %v4200_v37 = vld [vmem:[#allocation2] sm:$0xff] }
 0x343   : > { %1674 = vmatpush.msra.mxu0 %v3519_v17  ;;  %2404 = vmatpush.msra.mxu3 %v3522_v18  ;;  %v4710_v18 = vld [vmem:[#allocation45_spill] sm:$0xff]  ;;  %v4198_v35 = vld [vmem:[#allocation2 + $0x10] sm:$0xff]  ;;  %v4202_v61 = vld [vmem:[#allocation2 + $0x20] sm:$0xff] }
 0x344   : > { %1244 = vmax.xlane.f32.xlu1 %v3583_v62  ;;  %1240 = vmax.xlane.f32.xlu0 %v3567_v54  ;;  %v4221_v38 = vld [vmem:[#allocation2 + $0x18] sm:$0xff]  ;;  %v4223_v46 = vld [vmem:[#allocation2 + $0x8] sm:$0xff]  ;;  %v4246_v9 = vld [vmem:[#allocation2 + $0x30] sm:$0xff] }
 0x345   : > { %1248 = vmax.xlane.f32.xlu2 %v3569_v55  ;;  %1675 = vmatpush.msra.mxu0 %v4708_v20  ;;  %v4225_v21 = vld [vmem:[#allocation2 + $0x28] sm:$0xff]  ;;  %v4244_v63 = vld [vmem:[#allocation2 + $0x38] sm:$0xff]  ;;  %v4248_v13 = vld [vmem:[#allocation2 + $0x40] sm:$0xff] }
 0x346   : > { %2405 = vmatpush.msra.mxu1 %v3519_v17  ;;  %2406 = vmatpush.msra.mxu2 %v3519_v17  ;;  %v4267_v11 = vld [vmem:[#allocation2 + $0x50] sm:$0xff]  ;;  %v4269_v60 = vld [vmem:[#allocation2 + $0x48] sm:$0xff]  ;;  %v4271_v3 = vld [vmem:[#allocation2 + $0x58] sm:$0xff] }
 0x347   : > { %1676 = vmatpush.msra.mxu0 %v4709_v19  ;;  %2407 = vmatpush.msra.mxu3 %v3519_v17  ;;  %v4714_v17 = vld [vmem:[#allocation48_spill] sm:$0xff] }
 0x348   : > { %2408 = vmatpush.msra.mxu1 %v4708_v20  ;;  %2409 = vmatpush.msra.mxu2 %v4708_v20 }
 0x349   : > { %1677 = vmatpush.msra.mxu0 %v4710_v18  ;;  %2410 = vmatpush.msra.mxu3 %v4708_v20 }
 0x34a   : > { %2411 = vmatpush.msra.mxu1 %v4709_v19  ;;  %2412 = vmatpush.msra.mxu2 %v4709_v19 }
 0x34b   : > { %1678 = vmatpush.msra.mxu0 %v4711_v28  ;;  %2413 = vmatpush.msra.mxu3 %v4709_v19  ;;  %v4290_v19 = vld [vmem:[#allocation2 + $0x68] sm:$0xff] }
 0x34c   : > { %1252 = vmax.xlane.f32.xlu1 %v4712_v56  ;;  %1250 = vmax.xlane.f32.xlu0 %v4713_v15 }
 0x34d   : > { %1254 = vmax.xlane.f32.xlu2 %v4714_v17  ;;  %1679 = vmatpush.msra.mxu0 %v4715_v42 }
 0x34e   : > { %2414 = vmatpush.msra.mxu1 %v4710_v18  ;;  %2415 = vmatpush.msra.mxu2 %v4710_v18 }
 0x34f   : > { %1680 = vmatpush.msra.mxu0 %v4716_v36  ;;  %2416 = vmatpush.msra.mxu3 %v4710_v18  ;;  %v4292_v18 = vld [vmem:[#allocation2 + $0x60] sm:$0xff] }
 0x350   : > { %2417 = vmatpush.msra.mxu1 %v4711_v28  ;;  %2418 = vmatpush.msra.mxu2 %v4711_v28 }
 0x351   : > { %1681 = vmatpush.msra.mxu0 %v4717_v29  ;;  %2419 = vmatpush.msra.mxu3 %v4711_v28  ;;  %v4294_v28 = vld [vmem:[#allocation2 + $0x70] sm:$0xff] }
 0x352   : > { %2420 = vmatpush.msra.mxu1 %v4715_v42  ;;  %2421 = vmatpush.msra.mxu2 %v4715_v42 }
 0x353   : > { %1682 = vmatpush.msra.mxu0 %v4718_v14  ;;  %2422 = vmatpush.msra.mxu3 %v4715_v42 }
 0x354   : > { %1258 = vmax.xlane.f32.xlu1 %v4719_v57  ;;  %1256 = vmax.xlane.f32.xlu0 %v4720_v26 }
 0x355   : > { %1260 = vmax.xlane.f32.xlu2 %v4721_v32  ;;  %1683 = vmatpush.msra.mxu0 %v4722_v12 }
 0x356   : > { %2423 = vmatpush.msra.mxu1 %v4716_v36  ;;  %2424 = vmatpush.msra.mxu2 %v4716_v36 }
 0x357   : > { %1684 = vmatpush.msra.mxu0 %v4723_v0  ;;  %2425 = vmatpush.msra.mxu3 %v4716_v36 }
 0x358   : > { %2426 = vmatpush.msra.mxu1 %v4717_v29  ;;  %2427 = vmatpush.msra.mxu2 %v4717_v29 }
 0x359   : > { %1685 = vmatpush.msra.mxu0 %v4724_v10  ;;  %2428 = vmatpush.msra.mxu3 %v4717_v29 }
 0x35a   : > { %2429 = vmatpush.msra.mxu1 %v4718_v14  ;;  %2430 = vmatpush.msra.mxu2 %v4718_v14 }
 0x35b   : > { %1686 = vmatpush.msra.mxu0 %v4725_v44  ;;  %2431 = vmatpush.msra.mxu3 %v4718_v14 }
 0x35c   : > { %1264 = vmax.xlane.f32.xlu1 %v4726_v8  ;;  %1262 = vmax.xlane.f32.xlu0 %v4727_v1 }
 0x35d   : > { %1266 = vmax.xlane.f32.xlu2 %v4728_v27  ;;  %2432 = vmatpush.msra.mxu1 %v4722_v12 }
 0x35e   : > { %2433 = vmatpush.msra.mxu2 %v4722_v12  ;;  %2434 = vmatpush.msra.mxu3 %v4722_v12 }
 0x35f   : > { %2435 = vmatpush.msra.mxu1 %v4723_v0  ;;  %2716 = vset.pattern.permute.xlu0 %v3130_v6 }
 0x360   : > { %2436 = vmatpush.msra.mxu2 %v4723_v0  ;;  %2437 = vmatpush.msra.mxu3 %v4723_v0 }
 0x361   : > { %2438 = vmatpush.msra.mxu1 %v4724_v10  ;;  %2714 = vset.pattern.permute.xlu1 %v3130_v6 }
 0x362   : > { %2439 = vmatpush.msra.mxu2 %v4724_v10  ;;  %2440 = vmatpush.msra.mxu3 %v4724_v10 }
 0x363   : > { %2441 = vmatpush.msra.mxu1 %v4725_v44  ;;  %2715 = vset.pattern.permute.xlu2 %v3130_v6 }
 0x364   : > { %1268 = vmax.xlane.f32.xlu0 %v4729_v2  ;;  %2442 = vmatpush.msra.mxu2 %v4725_v44 }
 0x365   : > { %2443 = vmatpush.msra.mxu3 %v4725_v44 }
 0x3af   : > { %v1243_v4 = vpop.xlane.xlu1 %1242  ;;  %v1239_v45 = vpop.xlane.xlu0 %1238 }
 0x3b0   : > { %v4205_v5 = vmax.f32 %v4198_v35, %v1243_v4  ;;  %v4208_v16 = vmax.f32 %v4200_v37, %v1239_v45  ;;  %v1247_v23 = vpop.xlane.xlu2 %1246  ;;  %v4320_v4 = vld [vmem:[#allocation2 + $0x78] sm:$0xff] }
 0x3b1   : > { %v4215_v30 = vmax.f32 %v4202_v61, %v1247_v23 }
 0x3b2   : > { %1770 = vst.msk [vmem:[#allocation2 + $0x10] sm:$0xff] %vm1542_vm3, %v4205_v5  ;;  %1346 = vperm.xlu0 %2716, %v4205_v5   ;;  %1336 = vperm.xlu1 %2714, %v4208_v16   ;;  %v1286_v6 = vsub.f32 %v4200_v37, %v4208_v16 }
 0x3b3   : > { %1768 = vst.msk [vmem:[#allocation2] sm:$0xff] %vm1542_vm3, %v4208_v16 }
 0x3b4   : > { %1772 = vst.msk [vmem:[#allocation2 + $0x20] sm:$0xff] %vm1542_vm3, %v4215_v30  ;;  %v1302_v23 = vmul.f32 1.442695, %v1286_v6 }
 0x3b6   : > { %2717 = vpow2.f32 %v1302_v23 }
 0x3b7   : > { %v1245_v22 = vpop.xlane.xlu1 %1244  ;;  %v1241_v34 = vpop.xlane.xlu0 %1240 }
 0x3b8   : > { %v4228_v24 = vmax.f32 %v4221_v38, %v1245_v22  ;;  %v4231_v49 = vmax.f32 %v4223_v46, %v1241_v34  ;;  %v1249_v48 = vpop.xlane.xlu2 %1248  ;;  %v1288_v34 = vsub.f32 %v4198_v35, %v4205_v5 }
 0x3b9   : > { %v4238_v7 = vmax.f32 %v4225_v21, %v1249_v48 }
 0x3ba   : > { %1771 = vst.msk [vmem:[#allocation2 + $0x18] sm:$0xff] %vm1542_vm3, %v4228_v24  ;;  %1341 = vperm.xlu2 %2715, %v4231_v49   ;;  %1356 = vperm.xlu1 %2714, %v4215_v30   ;;  %v1287_v16 = vsub.f32 %v4223_v46, %v4231_v49  ;;  %v1289_v48 = vsub.f32 %v4221_v38, %v4228_v24  ;;  %v1306_v35 = vmul.f32 1.442695, %v1288_v34 }
 0x3bb   : > { %1769 = vst.msk [vmem:[#allocation2 + $0x8] sm:$0xff] %vm1542_vm3, %v4231_v49  ;;  %v1291_v46 = vsub.f32 %v4225_v21, %v4238_v7 }
 0x3bc   : > { %1773 = vst.msk [vmem:[#allocation2 + $0x28] sm:$0xff] %vm1542_vm3, %v4238_v7  ;;  %v1304_v5 = vmul.f32 1.442695, %v1287_v16  ;;  %2719 = vpow2.f32 %v1306_v35 }
 0x3bd   : > { %v1312_v49 = vmul.f32 1.442695, %v1291_v46 }
 0x3be   : > { %2721 = vpow2.f32 %v1304_v5 }
 0x3bf   : > { %v1253_v59 = vpop.xlane.xlu1 %1252  ;;  %v1251_v25 = vpop.xlane.xlu0 %1250 }
 0x3c0   : > { %v4251_v39 = vmax.f32 %v4244_v63, %v1253_v59  ;;  %v4254_v40 = vmax.f32 %v4246_v9, %v1251_v25  ;;  %v1255_v41 = vpop.xlane.xlu2 %1254  ;;  %v1308_v59 = vmul.f32 1.442695, %v1289_v48  ;;  %v4338_v25 = vpop.eup %2717 }
 0x3c1   : > { %v4261_v53 = vmax.f32 %v4248_v13, %v1255_v41  ;;  %v1290_v41 = vsub.f32 %v4202_v61, %v4215_v30 }
 0x3c2   : > { %1775 = vst.msk [vmem:[#allocation2 + $0x38] sm:$0xff] %vm1542_vm3, %v4251_v39  ;;  %1351 = vperm.xlu2 %2715, %v4228_v24   ;;  %1366 = vperm.xlu1 %2714, %v4254_v40   ;;  %2723 = vpow2.f32 %v1308_v59  ;;  %v1292_v38 = vsub.f32 %v4246_v9, %v4254_v40 }
 0x3c3   : > { %1774 = vst.msk [vmem:[#allocation2 + $0x30] sm:$0xff] %vm1542_vm3, %v4254_v40  ;;  %v1310_v24 = vmul.f32 1.442695, %v1290_v41  ;;  %v1294_v21 = vsub.f32 %v4248_v13, %v4261_v53 }
 0x3c4   : > { %1776 = vst.msk [vmem:[#allocation2 + $0x40] sm:$0xff] %vm1542_vm3, %v4261_v53 }
 0x3c5   : > { %2725 = vpow2.f32 %v1310_v24  ;;  %v1318_v40 = vmul.f32 1.442695, %v1294_v21 }
 0x3c6   : > { %2727 = vpow2.f32 %v1312_v49 }
 0x3c7   : > { %v1259_v43 = vpop.xlane.xlu1 %1258  ;;  %v1257_v47 = vpop.xlane.xlu0 %1256 }
 0x3c8   : > { %v4274_v33 = vmax.f32 %v4267_v11, %v1259_v43  ;;  %v4277_v52 = vmax.f32 %v4269_v60, %v1257_v47  ;;  %v1261_v31 = vpop.xlane.xlu2 %1260  ;;  %v4349_v43 = vpop.eup %2719  ;;  %v1314_v47 = vmul.f32 1.442695, %v1292_v38 }
 0x3c9   : > { %v4284_v20 = vmax.f32 %v4271_v3, %v1261_v31  ;;  %v4351_v61 = vpop.eup %2721  ;;  %v1293_v31 = vsub.f32 %v4244_v63, %v4251_v39 }
 0x3ca   : > { %1778 = vst.msk [vmem:[#allocation2 + $0x50] sm:$0xff] %vm1542_vm3, %v4274_v33  ;;  %1361 = vperm.xlu2 %2715, %v4238_v7   ;;  %1376 = vperm.xlu1 %2714, %v4261_v53   ;;  %v4353_v30 = vpop.eup %2723  ;;  %2729 = vpow2.f32 %v1314_v47  ;;  %v1295_v7 = vsub.f32 %v4269_v60, %v4277_v52 }
 0x3cb   : > { %1777 = vst.msk [vmem:[#allocation2 + $0x48] sm:$0xff] %vm1542_vm3, %v4277_v52  ;;  %v1316_v9 = vmul.f32 1.442695, %v1293_v31  ;;  %v1297_v13 = vsub.f32 %v4271_v3, %v4284_v20 }
 0x3cc   : > { %1779 = vst.msk [vmem:[#allocation2 + $0x58] sm:$0xff] %vm1542_vm3, %v4284_v20 }
 0x3cd   : > { %2731 = vpow2.f32 %v1316_v9 }
 0x3ce   : > { %2733 = vpow2.f32 %v1318_v40 }
 0x3cf   : > { %v1265_v42 = vpop.xlane.xlu1 %1264  ;;  %v1263_v36 = vpop.xlane.xlu0 %1262 }
 0x3d0   : > { %v4297_v29 = vmax.f32 %v4290_v19, %v1265_v42  ;;  %v4300_v14 = vmax.f32 %v4292_v18, %v1263_v36  ;;  %v1267_v12 = vpop.xlane.xlu2 %1266  ;;  %v4364_v42 = vpop.eup %2725  ;;  %v1320_v36 = vmul.f32 1.442695, %v1295_v7 }
 0x3d1   : > { %v4303_v0 = vmax.f32 %v4294_v28, %v1267_v12  ;;  %v4366_v63 = vpop.eup %2727  ;;  %v1296_v12 = vsub.f32 %v4267_v11, %v4274_v33 }
 0x3d2   : > { %v1299_v10 = vsub.f32 %v4290_v19, %v4297_v29  ;;  %1781 = vst.msk [vmem:[#allocation2 + $0x68] sm:$0xff] %vm1542_vm3, %v4297_v29  ;;  %1396 = vperm.xlu0 %2716, %v4300_v14   ;;  %1371 = vperm.xlu2 %2715, %v4251_v39   ;;  %v4368_v39 = vpop.eup %2729  ;;  %2735 = vpow2.f32 %v1320_v36  ;;  %v1298_v53 = vsub.f32 %v4292_v18, %v4300_v14 }
 0x3d3   : > { %1780 = vst.msk [vmem:[#allocation2 + $0x60] sm:$0xff] %vm1542_vm3, %v4300_v14  ;;  %1401 = vperm.xlu1 %2714, %v4297_v29   ;;  %v1300_v44 = vsub.f32 %v4294_v28, %v4303_v0  ;;  %v1322_v60 = vmul.f32 1.442695, %v1296_v12  ;;  %v4379_v6 = vpop.eup %2731 }
 0x3d4   : > { %1782 = vst.msk [vmem:[#allocation2 + $0x70] sm:$0xff] %vm1542_vm3, %v4303_v0  ;;  %v4381_v11 = vpop.eup %2733 }
 0x3d5   : > { %2737 = vpow2.f32 %v1322_v60 }
 0x3d7   : > { %v1269_v45 = vpop.xlane.xlu0 %1268 }
 0x3d8   : > { %v4323_v22 = vmax.f32 %v4320_v4, %v1269_v45  ;;  %v1326_v45 = vmul.f32 1.442695, %v1298_v53 }
 0x3da   : > { %1386 = vperm.xlu0 %2716, %v4274_v33   ;;  %1381 = vperm.xlu2 %2715, %v4277_v52   ;;  %v1301_v37 = vsub.f32 %v4320_v4, %v4323_v22  ;;  %1783 = vst.msk [vmem:[#allocation2 + $0x78] sm:$0xff] %vm1542_vm3, %v4323_v22  ;;  %v1324_v52 = vmul.f32 1.442695, %v1297_v13  ;;  %v4383_v33 = vpop.eup %2735 }
 0x3db   : > { %1391 = vperm.xlu1 %2714, %v4284_v20   ;;  %v4388_v3 = vpop.eup %2737 }
 0x3dc   : > { %2739 = vpow2.f32 %v1324_v52 }
 0x3dd   : > { %2741 = vpow2.f32 %v1326_v45 }
 0x3e2   : > { %1411 = vperm.xlu0 %2716, %v4323_v22   ;;  %1406 = vperm.xlu2 %2715, %v4303_v0   ;;  %v4390_v20 = vpop.eup %2739 }
 0x3e3   : > { %1577 = vperm.xlu1 %2714, %v4338_v25   ;;  %v4392_v18 = vpop.eup %2741 }
 0x3ea   : > { %1587 = vperm.xlu0 %2716, %v4349_v43   ;;  %1582 = vperm.xlu2 %2715, %v4351_v61  }
 0x3eb   : > { %1592 = vperm.xlu1 %2714, %v4353_v30  }
 0x3f2   : > { %1597 = vperm.xlu0 %2716, %v4364_v42   ;;  %1602 = vperm.xlu2 %2715, %v4366_v63  }
 0x3f3   : > { %1607 = vperm.xlu1 %2714, %v4368_v39  }
 0x3fa   : > { %1612 = vperm.xlu0 %2716, %v4379_v6   ;;  %1617 = vperm.xlu2 %2715, %v4381_v11  }
 0x3fb   : > { %1622 = vperm.xlu1 %2714, %v4383_v33  }
 0x402   : > { %1627 = vperm.xlu0 %2716, %v4388_v3   ;;  %1632 = vperm.xlu2 %2715, %v4390_v20  }
 0x403   : > { %1637 = vperm.xlu1 %2714, %v4392_v18  }
 0x414   : > { %v1342_v14 = vpop.permute.xlu2 %1341 }
 0x415   : > { %v1415_v34 = vsub.f32 %v3567_v54, %v1342_v14 }
 0x417   : > { %v1432_v16 = vmul.f32 1.442695, %v1415_v34 }
 0x419   : > { %2743 = vpow2.f32 %v1432_v16 }
 0x41c   : > { %v1352_v23 = vpop.permute.xlu2 %1351 }
 0x41d   : > { %v1417_v24 = vsub.f32 %v3583_v62, %v1352_v23 }
 0x41f   : > { %v2744_v49 = vpop.eup %2743  ;;  %v1436_v7 = vmul.f32 1.442695, %v1417_v24 }
 0x424   : > { %v1347_v48 = vpop.permute.xlu0 %1346  ;;  %v1362_v35 = vpop.permute.xlu2 %1361 }
 0x425   : > { %v1416_v5 = vsub.f32 %v3575_v58, %v1347_v48  ;;  %v1337_v59 = vpop.permute.xlu1 %1336  ;;  %v1419_v40 = vsub.f32 %v3569_v55, %v1362_v35 }
 0x426   : > { %v1414_v41 = vsub.f32 %v3559_v50, %v1337_v59 }
 0x427   : > { %v1434_v46 = vmul.f32 1.442695, %v1416_v5  ;;  %v1440_v62 = vmul.f32 1.442695, %v1419_v40 }
 0x428   : > { %v1430_v38 = vmul.f32 1.442695, %v1414_v41 }
 0x429   : > { %2745 = vpow2.f32 %v1434_v46 }
 0x42a   : > { %2747 = vpow2.f32 %v1430_v38 }
 0x42c   : > { %v1372_v47 = vpop.permute.xlu2 %1371 }
 0x42d   : > { %v1357_v31 = vpop.permute.xlu1 %1356  ;;  %1496 = vadd.xlane.f32.xlu1 %v2744_v49  ;;  %v1421_v50 = vsub.f32 %v4712_v56, %v1372_v47 }
 0x42e   : > { %v1418_v54 = vsub.f32 %v3561_v51, %v1357_v31 }
 0x42f   : > { %v2746_v21 = vpop.eup %2745  ;;  %v1444_v51 = vmul.f32 1.442695, %v1421_v50 }
 0x430   : > { %v1438_v9 = vmul.f32 1.442695, %v1418_v54  ;;  %1498 = vadd.xlane.f32.xlu0 %v2746_v21  ;;  %v2748_v58 = vpop.eup %2747 }
 0x431   : > { %1494 = vadd.xlane.f32.xlu2 %v2748_v58  ;;  %1687 = vmatmul.f32.vlgmr.msra.gmra.mxu0 %v2748_v58 }
 0x432   : > { %2749 = vpow2.f32 %v1438_v9 }
 0x433   : > { %2751 = vpow2.f32 %v1436_v7 }
 0x434   : > { %v1382_v12 = vpop.permute.xlu2 %1381  ;;  %2753 = vpow2.f32 %v1440_v62 }
 0x435   : > { %v1367_v36 = vpop.permute.xlu1 %1366  ;;  %v1423_v45 = vsub.f32 %v4720_v26, %v1382_v12  ;;  %v1332_v12 = vmul.f32 1.442695, %v1301_v37 }
 0x436   : > { %v1420_v13 = vsub.f32 %v4713_v15, %v1367_v36  ;;  %v1330_v36 = vmul.f32 1.442695, %v1300_v44 }
 0x437   : > { %v1448_v55 = vmul.f32 1.442695, %v1423_v45 }
 0x438   : > { %v2750_v53 = vpop.eup %2749  ;;  %v1442_v60 = vmul.f32 1.442695, %v1420_v13 }
 0x439   : > { %v2752_v52 = vpop.eup %2751  ;;  %1699 = vmatmul.f32.vlgmr.msra.gmra.mxu1 %v2750_v53  ;;  %1502 = vadd.xlane.f32.xlu1 %v2750_v53 }
 0x43a   : > { %2755 = vpow2.f32 %v1442_v60  ;;  %1500 = vadd.xlane.f32.xlu2 %v2752_v52  ;;  %1690 = vmatmul.f32.gmra.mxu0 %v2744_v49  ;;  %v2754_v23 = vpop.eup %2753 }
 0x43b   : > { %2757 = vpow2.f32 %v1444_v51 }
 0x43c   : > { %2759 = vpow2.f32 %v1448_v55  ;;  %v1407_v24 = vpop.permute.xlu2 %1406  ;;  %v1463_v55 = vld [vmem:[#allocation3 + $0x8] sm:$0xff] }
 0x43d   : > { %v1377_v56 = vpop.permute.xlu1 %1376 }
 0x43e   : > { %v1422_v14 = vsub.f32 %v4714_v17, %v1377_v56 }
 0x440   : > { %v2756_v34 = vpop.eup %2755  ;;  %v1446_v15 = vmul.f32 1.442695, %v1422_v14  ;;  %v1479_v14 = vmul.f32 %v4351_v61, %v1463_v55  ;;  %v1465_v61 = vld [vmem:[#allocation3 + $0x18] sm:$0xff] }
 0x441   : > { %1702 = vmatmul.f32.gmra.mxu1 %v2754_v23  ;;  %1506 = vadd.xlane.f32.xlu0 %v2756_v34  ;;  %v2758_v16 = vpop.eup %2757 }
 0x442   : > { %2761 = vpow2.f32 %v1446_v15  ;;  %1504 = vadd.xlane.f32.xlu2 %v2754_v23  ;;  %1693 = vmatmul.f32.gmra.mxu0 %v2746_v21  ;;  %v2760_v5 = vpop.eup %2759  ;;  %v1428_v21 = vsub.f32 %v4728_v27, %v1407_v24  ;;  %v1464_v23 = vld [vmem:[#allocation3 + $0x10] sm:$0xff]  ;;  %v1481_v24 = vmul.f32 %v4353_v30, %v1465_v61 }
 0x443   : > { %1508 = vadd.xlane.f32.xlu1 %v2758_v16 }
 0x444   : > { %v1397_v26 = vpop.permute.xlu0 %1396  ;;  %v1458_v7 = vmul.f32 1.442695, %v1428_v21  ;;  %v1583_v0 = vpop.permute.xlu2 %1582  ;;  %v1468_v21 = vld [vmem:[#allocation3 + $0x30] sm:$0xff] }
 0x445   : > { %v1426_v48 = vsub.f32 %v4727_v1, %v1397_v26  ;;  %v1402_v35 = vpop.permute.xlu1 %1401  ;;  %v1480_v26 = vmul.f32 %v4349_v43, %v1464_v23  ;;  %v1471_v23 = vld [vmem:[#allocation3 + $0x48] sm:$0xff] }
 0x446   : > { %v1427_v17 = vsub.f32 %v4726_v8, %v1402_v35 }
 0x447   : > { %v1454_v59 = vmul.f32 1.442695, %v1426_v48 }
 0x448   : > { %v2762_v41 = vpop.eup %2761  ;;  %v1456_v46 = vmul.f32 1.442695, %v1427_v17  ;;  %v1466_v17 = vld [vmem:[#allocation3 + $0x20] sm:$0xff] }
 0x449   : > { %2763 = vpow2.f32 %v1454_v59  ;;  %1512 = vadd.xlane.f32.xlu0 %v2760_v5  ;;  %1705 = vmatmul.f32.gmra.mxu1 %v2756_v34 }
 0x44a   : > { %1696 = vmatmul.f32.gmra.mxu0 %v2752_v52  ;;  %1510 = vadd.xlane.f32.xlu2 %v2762_v41  ;;  %2765 = vpow2.f32 %v1456_v46  ;;  %v1559_v46 = vld [vmem:[#allocation4 + $0x30] sm:$0xff] }
 0x44b   : > { %1711 = vmatmul.f32.vlgmr.msra.gmra.mxu2 %v2762_v41 }
 0x44c   : > { %v1387_v38 = vpop.permute.xlu0 %1386  ;;  %v4437_v4 = vpop.permute.xlu2 %1602 }
 0x44d   : > { %v1424_v49 = vsub.f32 %v4719_v57, %v1387_v38  ;;  %v1392_v47 = vpop.permute.xlu1 %1391  ;;  %v1482_v38 = vmul.f32 %v4364_v42, %v1466_v17  ;;  %v1484_v42 = vmul.f32 %v4368_v39, %v1468_v21  ;;  %v1567_v21 = vld [vmem:[#allocation4 + $0x40] sm:$0xff] }
 0x44e   : > { %v1425_v1 = vsub.f32 %v4721_v32, %v1392_v47 }
 0x44f   : > { %v2764_v31 = vpop.eup %2763  ;;  %v1450_v54 = vmul.f32 1.442695, %v1424_v49 }
 0x450   : > { %v1452_v8 = vmul.f32 1.442695, %v1425_v1  ;;  %1723 = vmatmul.f32.vlgmr.msra.gmra.mxu3 %v2764_v31  ;;  %v2766_v57 = vpop.eup %2765 }
 0x451   : > { %2767 = vpow2.f32 %v1450_v54  ;;  %1518 = vadd.xlane.f32.xlu0 %v2764_v31  ;;  %1708 = vmatmul.f32.gmra.mxu1 %v2758_v16  ;;  %v1462_v16 = vld [vmem:[#allocation3] sm:$0xff] }
 0x452   : > { %2769 = vpow2.f32 %v1452_v8  ;;  %v1467_v8 = vld [vmem:[#allocation3 + $0x28] sm:$0xff] }
 0x453   : > { %1714 = vmatmul.f32.gmra.mxu2 %v2760_v5  ;;  %2771 = vpow2.f32 %v1458_v7  ;;  %v1478_v5 = vmul.f32 %v4338_v25, %v1462_v16  ;;  %v1563_v7 = vld [vmem:[#allocation4 + $0x50] sm:$0xff]  ;;  %v1483_v30 = vmul.f32 %v4366_v63, %v1467_v8  ;;  %v1470_v63 = vld [vmem:[#allocation3 + $0x40] sm:$0xff]  ;;  %v1566_v8 = vld [vmem:[#allocation4 + $0x48] sm:$0xff] }
 0x454   : > { %v1412_v9 = vpop.permute.xlu0 %1411  ;;  %v4443_v60 = vpop.permute.xlu2 %1617 }
 0x455   : > { %v1429_v58 = vsub.f32 %v4729_v2, %v1412_v9  ;;  %v1328_v2 = vmul.f32 1.442695, %v1299_v10  ;;  %v1578_v13 = vpop.permute.xlu1 %1577  ;;  %v1469_v9 = vld [vmem:[#allocation3 + $0x38] sm:$0xff] }
 0x456   : > { %v1655_v1 = vmul.f32 %v1578_v13, %v1559_v46  ;;  %v1474_v46 = vld [vmem:[#allocation3 + $0x60] sm:$0xff] }
 0x457   : > { %v2768_v40 = vpop.eup %2767  ;;  %v1460_v50 = vmul.f32 1.442695, %v1429_v58  ;;  %v1560_v58 = vld [vmem:[#allocation4] sm:$0xff] }
 0x458   : > { %v2770_v32 = vpop.eup %2769  ;;  %1726 = vmatmul.f32.gmra.mxu3 %v2766_v57  ;;  %1514 = vadd.xlane.f32.xlu1 %v2768_v40 }
 0x459   : > { %2773 = vpow2.f32 %v1460_v50  ;;  %1516 = vadd.xlane.f32.xlu2 %v2770_v32  ;;  %v2772_v27 = vpop.eup %2771 }
 0x45a   : > { %2775 = vpow2.f32 %v1328_v2 }
 0x45b   : > { %1717 = vmatmul.f32.gmra.mxu2 %v2768_v40  ;;  %2777 = vpow2.f32 %v1330_v36 }
 0x45c   : > { %2779 = vpow2.f32 %v1332_v12  ;;  %v4433_v28 = vpop.permute.xlu0 %1587  ;;  %v4449_v56 = vpop.permute.xlu2 %1632 }
 0x45d   : > { %v4430_v29 = vpop.permute.xlu1 %1592 }
 0x45f   : > { %v2774_v62 = vpop.eup %2773 }
 0x460   : > { %1524 = vadd.xlane.f32.xlu0 %v2774_v62  ;;  %1729 = vmatmul.f32.gmra.mxu3 %v2772_v27  ;;  %v4422_v53 = vpop.eup %2775 }
 0x461   : > { %1522 = vadd.xlane.f32.xlu2 %v2772_v27  ;;  %1520 = vadd.xlane.f32.xlu1 %v2766_v57  ;;  %v4425_v51 = vpop.eup %2777  ;;  %v1485_v27 = vmul.f32 %v4379_v6, %v1469_v9  ;;  %v1487_v6 = vmul.f32 %v4383_v33, %v1471_v23  ;;  %v1565_v33 = vld [vmem:[#allocation4 + $0x8] sm:$0xff] }
 0x462   : > { %v4427_v19 = vpop.eup %2779 }
 0x463   : > { %1720 = vmatmul.f32.gmra.mxu2 %v2770_v32 }
 0x464   : > { %v1598_v44 = vpop.permute.xlu0 %1597 }
 0x465   : > { %v4435_v10 = vpop.permute.xlu1 %1607  ;;  %v1659_v40 = vmul.f32 %v1598_v44, %v1563_v7  ;;  %v1564_v44 = vld [vmem:[#allocation4 + $0x68] sm:$0xff] }
 0x466   : > { %v1660_v16 = vmul.f32 %v4437_v4, %v1564_v44  ;;  %v1490_v4 = vmul.f32 %v4392_v18, %v1474_v46 }
 0x468   : > { %1732 = vmatmul.f32.gmra.mxu3 %v2774_v62  ;;  %v1656_v62 = vmul.f32 %v1583_v0, %v1560_v58 }
 0x46c   : > { %v4441_v37 = vpop.permute.xlu0 %1612 }
 0x46d   : > { %v4439_v22 = vpop.permute.xlu1 %1622 }
 0x474   : > { %1642 = vperm.xlu0 %2716, %v4422_v53   ;;  %v4447_v45 = vpop.permute.xlu0 %1627 }
 0x475   : > { %v4445_v52 = vpop.permute.xlu1 %1637 }
 0x479   : > { %1647 = vperm.xlu2 %2715, %v4425_v51  }
 0x47a   : > { %1652 = vperm.xlu1 %2714, %v4427_v19  }
 0x4a0   : > { %v1497_v34 = vpop.xlane.xlu1 %1496 }
 0x4a1   : > { %v1527_v15 = vadd.f32 %v1497_v34, %v1479_v14  ;;  %v1561_v34 = vld [vmem:[#allocation4 + $0x58] sm:$0xff] }
 0x4a3   : > { %1544 = vst.msk [vmem:[#allocation3 + $0x8] sm:$0xff] %vm1542_vm3, %v1527_v15  ;;  %v1499_v48 = vpop.xlane.xlu0 %1498  ;;  %v1486_v15 = vmul.f32 %v4381_v11, %v1470_v63  ;;  %v1562_v11 = vld [vmem:[#allocation4 + $0x18] sm:$0xff] }
 0x4a4   : > { %v1528_v35 = vadd.f32 %v1499_v48, %v1480_v26  ;;  %v1495_v59 = vpop.xlane.xlu2 %1494 }
 0x4a5   : > { %v1526_v41 = vadd.f32 %v1495_v59, %v1478_v5 }
 0x4a6   : > { %1545 = vst.msk [vmem:[#allocation3 + $0x10] sm:$0xff] %vm1542_vm3, %v1528_v35  ;;  %v1657_v35 = vmul.f32 %v4433_v28, %v1561_v34 }
 0x4a7   : > { %1543 = vst.msk [vmem:[#allocation3] sm:$0xff] %vm1542_vm3, %v1526_v41 }
 0x4ac   : > { %v1503_v43 = vpop.xlane.xlu1 %1502 }
 0x4ad   : > { %v1501_v49 = vpop.xlane.xlu2 %1500  ;;  %v1530_v47 = vadd.f32 %v1503_v43, %v1482_v38  ;;  %v1658_v43 = vmul.f32 %v4430_v29, %v1562_v11  ;;  %v1663_v29 = vmul.f32 %v4443_v60, %v1567_v21 }
 0x4ae   : > { %v1529_v31 = vadd.f32 %v1501_v49, %v1481_v24  ;;  %v1688_v25 = vpop.f32.mrf.mxu0  ;;  %v1661_v24 = vmul.f32 %v4435_v10, %v1565_v33 }
 0x4af   : > { %1547 = vst.msk [vmem:[#allocation3 + $0x20] sm:$0xff] %vm1542_vm3, %v1530_v47  ;;  %v1736_v54 = vadd.f32 %v1688_v25, %v1655_v1 }
 0x4b0   : > { %1546 = vst.msk [vmem:[#allocation3 + $0x18] sm:$0xff] %vm1542_vm3, %v1529_v31  ;;  %v1472_v31 = vld [vmem:[#allocation3 + $0x50] sm:$0xff] }
 0x4b1   : > { %1752 = vst [vmem:[#allocation4 + $0x30] sm:$0xff] %v1736_v54  ;;  %v1473_v54 = vld [vmem:[#allocation3 + $0x58] sm:$0xff]  ;;  %v1488_v18 = vmul.f32 %v4388_v3, %v1472_v31 }
 0x4b2   : > { %v1489_v7 = vmul.f32 %v4390_v20, %v1473_v54  ;;  %v1477_v3 = vld [vmem:[#allocation3 + $0x78] sm:$0xff]  ;;  %v1475_v20 = vld [vmem:[#allocation3 + $0x68] sm:$0xff] }
 0x4b3   : > { %v1491_v23 = vmul.f32 %v4422_v53, %v1475_v20 }
 0x4b4   : > { %v1507_v57 = vpop.xlane.xlu0 %1506 }
 0x4b5   : > { %v1505_v50 = vpop.xlane.xlu2 %1504  ;;  %v1532_v32 = vadd.f32 %v1507_v57, %v1484_v42  ;;  %v1662_v42 = vmul.f32 %v4441_v37, %v1566_v8  ;;  %v1493_v37 = vmul.f32 %v4427_v19, %v1477_v3  ;;  %v1569_v19 = vld [vmem:[#allocation4 + $0x10] sm:$0xff] }
 0x4b6   : > { %v1531_v2 = vadd.f32 %v1505_v50, %v1483_v30  ;;  %v1509_v36 = vpop.xlane.xlu1 %1508  ;;  %v1700_v12 = vpop.f32.mrf.mxu1  ;;  %v1571_v50 = vld [vmem:[#allocation4 + $0x60] sm:$0xff] }
 0x4b7   : > { %1549 = vst.msk [vmem:[#allocation3 + $0x30] sm:$0xff] %vm1542_vm3, %v1532_v32  ;;  %v1533_v13 = vadd.f32 %v1509_v36, %v1485_v27  ;;  %v1691_v55 = vpop.f32.mrf.mxu0  ;;  %v1740_v14 = vadd.f32 %v1700_v12, %v1659_v40  ;;  %v1667_v36 = vmul.f32 %v4445_v52, %v1571_v50 }
 0x4b8   : > { %1548 = vst.msk [vmem:[#allocation3 + $0x28] sm:$0xff] %vm1542_vm3, %v1531_v2  ;;  %v1737_v39 = vadd.f32 %v1691_v55, %v1656_v62  ;;  %v1476_v62 = vld [vmem:[#allocation3 + $0x70] sm:$0xff]  ;;  %v1568_v2 = vld [vmem:[#allocation4 + $0x20] sm:$0xff] }
 0x4b9   : > { %1550 = vst.msk [vmem:[#allocation3 + $0x38] sm:$0xff] %vm1542_vm3, %v1533_v13  ;;  %v1492_v13 = vmul.f32 %v4425_v51, %v1476_v62  ;;  %v1664_v44 = vmul.f32 %v4439_v22, %v1568_v2 }
 0x4ba   : > { %1753 = vst [vmem:[#allocation4] sm:$0xff] %v1737_v39 }
 0x4bb   : > { %1756 = vst [vmem:[#allocation4 + $0x50] sm:$0xff] %v1740_v14 }
 0x4bc   : > { %v1513_v0 = vpop.xlane.xlu0 %1512 }
 0x4bd   : > { %v1535_v26 = vadd.f32 %v1513_v0, %v1487_v6  ;;  %v1511_v48 = vpop.xlane.xlu2 %1510 }
 0x4be   : > { %v1534_v5 = vadd.f32 %v1511_v48, %v1486_v15  ;;  %v1703_v59 = vpop.f32.mrf.mxu1  ;;  %v1665_v15 = vmul.f32 %v4447_v45, %v1569_v19  ;;  %v1570_v48 = vld [vmem:[#allocation4 + $0x38] sm:$0xff]  ;;  %v1574_v45 = vld [vmem:[#allocation4 + $0x28] sm:$0xff] }
 0x4bf   : > { %1552 = vst.msk [vmem:[#allocation3 + $0x48] sm:$0xff] %vm1542_vm3, %v1535_v26  ;;  %v1694_v41 = vpop.f32.mrf.mxu0  ;;  %v1741_v17 = vadd.f32 %v1703_v59, %v1660_v16  ;;  %v1573_v26 = vld [vmem:[#allocation4 + $0x78] sm:$0xff] }
 0x4c0   : > { %1551 = vst.msk [vmem:[#allocation3 + $0x40] sm:$0xff] %vm1542_vm3, %v1534_v5  ;;  %v1738_v61 = vadd.f32 %v1694_v41, %v1657_v35  ;;  %v1572_v41 = vld [vmem:[#allocation4 + $0x70] sm:$0xff] }
 0x4c1   : > { %1757 = vst [vmem:[#allocation4 + $0x68] sm:$0xff] %v1741_v17  ;;  %v1666_v17 = vmul.f32 %v4449_v56, %v1570_v48 }
 0x4c2   : > { %1754 = vst [vmem:[#allocation4 + $0x58] sm:$0xff] %v1738_v61 }
 0x4c4   : > { %v1519_v38 = vpop.xlane.xlu0 %1518 }
 0x4c5   : > { %v1538_v28 = vadd.f32 %v1519_v38, %v1490_v4 }
 0x4c6   : > { %v1706_v49 = vpop.f32.mrf.mxu1 }
 0x4c7   : > { %1555 = vst.msk [vmem:[#allocation3 + $0x60] sm:$0xff] %vm1542_vm3, %v1538_v28  ;;  %v1697_v47 = vpop.f32.mrf.mxu0  ;;  %v1742_v1 = vadd.f32 %v1706_v49, %v1661_v24 }
 0x4c8   : > { %v1739_v25 = vadd.f32 %v1697_v47, %v1658_v43 }
 0x4c9   : > { %1758 = vst [vmem:[#allocation4 + $0x8] sm:$0xff] %v1742_v1 }
 0x4ca   : > { %1755 = vst [vmem:[#allocation4 + $0x18] sm:$0xff] %v1739_v25 }
 0x4cb   : > { %v1515_v10 = vpop.xlane.xlu1 %1514 }
 0x4cc   : > { %v1517_v9 = vpop.xlane.xlu2 %1516  ;;  %v1536_v58 = vadd.f32 %v1515_v10, %v1488_v18 }
 0x4cd   : > { %v1537_v30 = vadd.f32 %v1517_v9, %v1489_v7 }
 0x4ce   : > { %v1712_v57 = vpop.f32.mrf.mxu2  ;;  %1553 = vst.msk [vmem:[#allocation3 + $0x50] sm:$0xff] %vm1542_vm3, %v1536_v58  ;;  %v1709_v40 = vpop.f32.mrf.mxu1 }
 0x4cf   : > { %v1744_v32 = vadd.f32 %v1712_v57, %v1663_v29  ;;  %1554 = vst.msk [vmem:[#allocation3 + $0x58] sm:$0xff] %vm1542_vm3, %v1537_v30  ;;  %v1743_v27 = vadd.f32 %v1709_v40, %v1662_v42 }
 0x4d1   : > { %1760 = vst [vmem:[#allocation4 + $0x40] sm:$0xff] %v1744_v32 }
 0x4d2   : > { %1759 = vst [vmem:[#allocation4 + $0x48] sm:$0xff] %v1743_v27 }
 0x4d3   : > { %v1724_v60 = vpop.f32.mrf.mxu3  ;;  %v1525_v12 = vpop.xlane.xlu0 %1524 }
 0x4d4   : > { %v1748_v55 = vadd.f32 %v1724_v60, %v1667_v36  ;;  %v1541_v14 = vadd.f32 %v1525_v12, %v1493_v37  ;;  %v1523_v39 = vpop.xlane.xlu2 %1522  ;;  %v1521_v63 = vpop.xlane.xlu1 %1520 }
 0x4d5   : > { %v1540_v34 = vadd.f32 %v1523_v39, %v1492_v13  ;;  %v1539_v0 = vadd.f32 %v1521_v63, %v1491_v23 }
 0x4d6   : > { %1764 = vst [vmem:[#allocation4 + $0x60] sm:$0xff] %v1748_v55  ;;  %v1715_v6 = vpop.f32.mrf.mxu2 }
 0x4d7   : > { %1558 = vst.msk [vmem:[#allocation3 + $0x78] sm:$0xff] %vm1542_vm3, %v1541_v14  ;;  %v1745_v52 = vadd.f32 %v1715_v6, %v1664_v44 }
 0x4d8   : > { %1557 = vst.msk [vmem:[#allocation3 + $0x70] sm:$0xff] %vm1542_vm3, %v1540_v34 }
 0x4d9   : > { %1761 = vst [vmem:[#allocation4 + $0x20] sm:$0xff] %v1745_v52 }
 0x4da   : > { %1556 = vst.msk [vmem:[#allocation3 + $0x68] sm:$0xff] %vm1542_vm3, %v1539_v0 }
 0x4db   : > { %v1727_v51 = vpop.f32.mrf.mxu3 }
 0x4dc   : > { %v1648_v22 = vpop.permute.xlu2 %1647 }
 0x4dd   : > { %v1669_v35 = vmul.f32 %v1648_v22, %v1573_v26 }
 0x4de   : > { %v1718_v53 = vpop.f32.mrf.mxu2 }
 0x4df   : > { %v1746_v16 = vadd.f32 %v1718_v53, %v1665_v15 }
 0x4e1   : > { %1762 = vst [vmem:[#allocation4 + $0x10] sm:$0xff] %v1746_v16 }
 0x4e3   : > { %v1730_v5 = vpop.f32.mrf.mxu3 }
 0x4e4   : > { %v1750_v59 = vadd.f32 %v1730_v5, %v1669_v35 }
 0x4e6   : > { %v1721_v61 = vpop.f32.mrf.mxu2  ;;  %1766 = vst [vmem:[#allocation4 + $0x78] sm:$0xff] %v1750_v59  ;;  %v1643_v46 = vpop.permute.xlu0 %1642 }
 0x4e7   : > { %v1747_v33 = vadd.f32 %v1721_v61, %v1666_v17  ;;  %v1668_v11 = vmul.f32 %v1643_v46, %v1572_v41 }
 0x4e9   : > { %1763 = vst [vmem:[#allocation4 + $0x38] sm:$0xff] %v1747_v33  ;;  %v1749_v4 = vadd.f32 %v1727_v51, %v1668_v11 }
 0x4eb   : > { %1765 = vst [vmem:[#allocation4 + $0x70] sm:$0xff] %v1749_v4  ;;  %v1733_v28 = vpop.f32.mrf.mxu3 }
 0x4ec   : > { %v1653_v38 = vpop.permute.xlu1 %1652 }
 0x4ed   : > { %v1670_v24 = vmul.f32 %v1653_v38, %v1574_v45 }
 0x4ef   : > { %v1751_v43 = vadd.f32 %v1733_v28, %v1670_v24 }
 0x4f1   : > { %1767 = vst [vmem:[#allocation4 + $0x28] sm:$0xff] %v1751_v43 }
 0x4f2 PF: > { %1786 = sbr.rel (%p2275_p1) target bundleno = 1701 (0x6a5), region = 80  ;;  %s4731_s0 = sld [smem:[#allocation61_spill]] (!%p2275_p1) }
 0x4f7   : > { %v1807_v49 = vld [vmem:[#allocation3 + $0x20] sm:$0xff]  ;;  %v3131_v47 = vmov 0   ;;  %v1805_v1 = vld [vmem:[#allocation3 + $0x10] sm:$0xff]  ;;  %v1804_v25 = vld [vmem:[#allocation3 + $0x8] sm:$0xff] }
 0x4f8   : > { %v1803_v56 = vld [vmem:[#allocation3] sm:$0xff]  ;;  %2782 = vset.pattern.permute.xlu1 %v3131_v47  ;;  %2781 = vset.pattern.permute.xlu0 %v3131_v47  ;;  %2785 = vrcp.f32 %v1807_v49  ;;  %v1808_v8 = vld [vmem:[#allocation3 + $0x28] sm:$0xff]  ;;  %v1806_v9 = vld [vmem:[#allocation3 + $0x18] sm:$0xff] }
 0x4f9   : > { %2787 = vrcp.f32 %v1803_v56  ;;  %2783 = vset.pattern.permute.xlu2 %v3131_v47  ;;  %v1811_v31 = vld [vmem:[#allocation3 + $0x40] sm:$0xff]  ;;  %v1812_v7 = vld [vmem:[#allocation3 + $0x48] sm:$0xff]  ;;  %v1946_v29 = vld [vmem:[#allocation13 + $0x78] sm:$0xff] }
 0x4fa   : > { %2789 = vrcp.f32 %v1805_v1  ;;  %v1809_v42 = vld [vmem:[#allocation3 + $0x30] sm:$0xff]  ;;  %1951 = vmatpush.msra.mxu0 %v1946_v29  ;;  %2444 = vmatpush.msra.mxu1 %v1946_v29  ;;  %v1944_v40 = vld [vmem:[#allocation13 + $0x68] sm:$0xff]  ;;  %v1815_v27 = vld [vmem:[#allocation3 + $0x60] sm:$0xff] }
 0x4fb   : > { %2791 = vrcp.f32 %v1811_v31  ;;  %v1945_v30 = vld [vmem:[#allocation13 + $0x70] sm:$0xff]  ;;  %2445 = vmatpush.msra.mxu2 %v1946_v29  ;;  %2446 = vmatpush.msra.mxu3 %v1946_v29  ;;  %v1943_v3 = vld [vmem:[#allocation13 + $0x60] sm:$0xff]  ;;  %v1942_v20 = vld [vmem:[#allocation13 + $0x58] sm:$0xff] }
 0x4fc   : > { %2793 = vrcp.f32 %v1804_v25  ;;  %v1813_v50 = vld [vmem:[#allocation3 + $0x50] sm:$0xff]  ;;  %1952 = vmatpush.msra.mxu0 %v1945_v30  ;;  %2447 = vmatpush.msra.mxu1 %v1945_v30  ;;  %v1810_v36 = vld [vmem:[#allocation3 + $0x38] sm:$0xff]  ;;  %v1940_v60 = vld [vmem:[#allocation13 + $0x48] sm:$0xff] }
 0x4fd   : > { %2795 = vrcp.f32 %v1808_v8  ;;  %2448 = vmatpush.msra.mxu2 %v1945_v30  ;;  %2449 = vmatpush.msra.mxu3 %v1945_v30  ;;  %v1941_v2 = vld [vmem:[#allocation13 + $0x50] sm:$0xff]  ;;  %v1814_v12 = vld [vmem:[#allocation3 + $0x58] sm:$0xff]  ;;  %v1816_v55 = vld [vmem:[#allocation3 + $0x68] sm:$0xff] }
 0x4fe   : > { %v2786_v54 = vpop.eup %2785  ;;  %2797 = vrcp.f32 %v1812_v7  ;;  %1953 = vmatpush.msra.mxu0 %v1944_v40  ;;  %2450 = vmatpush.msra.mxu1 %v1944_v40  ;;  %v1939_v14 = vld [vmem:[#allocation13 + $0x40] sm:$0xff]  ;;  %v1938_v23 = vld [vmem:[#allocation13 + $0x38] sm:$0xff]  ;;  %v1937_v63 = vld [vmem:[#allocation13 + $0x30] sm:$0xff] }
 0x4ff   : > { %v2788_v21 = vpop.eup %2787  ;;  %1857 = vperm.xlu1 %2782, %v2786_v54   ;;  %2799 = vrcp.f32 %v1806_v9  ;;  %2451 = vmatpush.msra.mxu2 %v1944_v40  ;;  %v1817_v44 = vld [vmem:[#allocation3 + $0x70] sm:$0xff]  ;;  %v1936_v6 = vld [vmem:[#allocation13 + $0x28] sm:$0xff]  ;;  %v1818_v52 = vld [vmem:[#allocation3 + $0x78] sm:$0xff] }
 0x500   : > { %1837 = vperm.xlu0 %2781, %v2788_v21   ;;  %v2790_v18 = vpop.eup %2789  ;;  %2801 = vrcp.f32 %v1809_v42  ;;  %1954 = vmatpush.msra.mxu0 %v1943_v3  ;;  %v1935_v19 = vld [vmem:[#allocation13 + $0x20] sm:$0xff]  ;;  %v1934_v15 = vld [vmem:[#allocation13 + $0x18] sm:$0xff]  ;;  %v1933_v53 = vld [vmem:[#allocation13 + $0x10] sm:$0xff] }
 0x501   : > { %v2792_v10 = vpop.eup %2791  ;;  %2803 = vrcp.f32 %v1813_v50  ;;  %2453 = vmatpush.msra.mxu1 %v1943_v3  ;;  %2454 = vmatpush.msra.mxu2 %v1943_v3  ;;  %v1932_v26 = vld [vmem:[#allocation13 + $0x8] sm:$0xff]  ;;  %v1931_v48 = vld [vmem:[#allocation13] sm:$0xff]  ;;  %v1791_v41 = vld [vmem:[#allocation4 + $0x50] sm:$0xff] }
 0x502   : > { %v2794_v58 = vpop.eup %2793  ;;  %1877 = vperm.xlu2 %2783, %v2792_v10   ;;  %2805 = vrcp.f32 %v1815_v27  ;;  %1955 = vmatpush.msra.mxu0 %v1942_v20  ;;  %v1795_v35 = vld [vmem:[#allocation4 + $0x40] sm:$0xff]  ;;  %v1787_v17 = vld [vmem:[#allocation4 + $0x30] sm:$0xff]  ;;  %v1792_v45 = vld [vmem:[#allocation4 + $0x68] sm:$0xff] }
 0x503   : > { %v2796_v57 = vpop.eup %2795  ;;  %2456 = vmatpush.msra.mxu1 %v1942_v20  ;;  %2452 = vmatpush.msra.mxu3 %v1944_v40  ;;  %2807 = vrcp.f32 %v1810_v36  ;;  %v1788_v24 = vld [vmem:[#allocation4] sm:$0xff]  ;;  %v1793_v47 = vld [vmem:[#allocation4 + $0x8] sm:$0xff]  ;;  %v1789_v31 = vld [vmem:[#allocation4 + $0x58] sm:$0xff] }
 0x504   : > { %v2798_v32 = vpop.eup %2797  ;;  %1956 = vmatpush.msra.mxu0 %v1941_v2  ;;  %2457 = vmatpush.msra.mxu2 %v1942_v20  ;;  %2809 = vrcp.f32 %v1814_v12  ;;  %v1796_v1 = vld [vmem:[#allocation4 + $0x20] sm:$0xff]  ;;  %v1794_v7 = vld [vmem:[#allocation4 + $0x48] sm:$0xff]  ;;  %v1797_v9 = vld [vmem:[#allocation4 + $0x10] sm:$0xff] }
 0x505   : > { %v2800_v62 = vpop.eup %2799  ;;  %2459 = vmatpush.msra.mxu1 %v1941_v2  ;;  %2455 = vmatpush.msra.mxu3 %v1943_v3  ;;  %2811 = vrcp.f32 %v1816_v55  ;;  %v1799_v42 = vld [vmem:[#allocation4 + $0x60] sm:$0xff]  ;;  %v1798_v27 = vld [vmem:[#allocation4 + $0x38] sm:$0xff]  ;;  %v1800_v3 = vld [vmem:[#allocation4 + $0x70] sm:$0xff] }
 0x506   : > { %v2802_v37 = vpop.eup %2801  ;;  %1957 = vmatpush.msra.mxu0 %v1940_v60  ;;  %2460 = vmatpush.msra.mxu2 %v1941_v2  ;;  %2813 = vrcp.f32 %v1817_v44  ;;  %v1802_v55 = vld [vmem:[#allocation4 + $0x28] sm:$0xff] }
 0x507   : > { %1847 = vperm.xlu1 %2782, %v2790_v18   ;;  %v2804_v13 = vpop.eup %2803  ;;  %2462 = vmatpush.msra.mxu1 %v1940_v60  ;;  %2815 = vrcp.f32 %v1818_v52 }
 0x508   : > { %1842 = vperm.xlu0 %2781, %v2794_v58   ;;  %v2806_v39 = vpop.eup %2805  ;;  %1958 = vmatpush.msra.mxu0 %v1939_v14  ;;  %v1790_v58 = vld [vmem:[#allocation4 + $0x18] sm:$0xff] }
 0x509   : > { %2463 = vmatpush.msra.mxu2 %v1940_v60  ;;  %2465 = vmatpush.msra.mxu1 %v1939_v14  ;;  %v2808_v34 = vpop.eup %2807 }
 0x50a   : > { %1862 = vperm.xlu2 %2783, %v2796_v57   ;;  %1959 = vmatpush.msra.mxu0 %v1938_v23  ;;  %v2810_v0 = vpop.eup %2809 }
 0x50b   : > { %2466 = vmatpush.msra.mxu2 %v1939_v14  ;;  %2458 = vmatpush.msra.mxu3 %v1942_v20  ;;  %v2812_v51 = vpop.eup %2811 }
 0x50c   : > { %1960 = vmatpush.msra.mxu0 %v1937_v63  ;;  %2468 = vmatpush.msra.mxu1 %v1938_v23  ;;  %v2814_v16 = vpop.eup %2813 }
 0x50d   : > { %2469 = vmatpush.msra.mxu2 %v1938_v23  ;;  %2461 = vmatpush.msra.mxu3 %v1941_v2  ;;  %v2816_v22 = vpop.eup %2815 }
 0x50e   : > { %1961 = vmatpush.msra.mxu0 %v1936_v6  ;;  %2471 = vmatpush.msra.mxu1 %v1937_v63 }
 0x50f   : > { %1882 = vperm.xlu1 %2782, %v2798_v32   ;;  %2472 = vmatpush.msra.mxu2 %v1937_v63 }
 0x510   : > { %1852 = vperm.xlu0 %2781, %v2800_v62   ;;  %1962 = vmatpush.msra.mxu0 %v1935_v19 }
 0x511   : > { %2474 = vmatpush.msra.mxu1 %v1936_v6  ;;  %2475 = vmatpush.msra.mxu2 %v1936_v6 }
 0x512   : > { %1867 = vperm.xlu2 %2783, %v2802_v37   ;;  %1963 = vmatpush.msra.mxu0 %v1934_v15 }
 0x513   : > { %2477 = vmatpush.msra.mxu1 %v1935_v19  ;;  %2464 = vmatpush.msra.mxu3 %v1940_v60  ;;  %v1801_v60 = vld [vmem:[#allocation4 + $0x78] sm:$0xff] }
 0x514   : > { %1964 = vmatpush.msra.mxu0 %v1933_v53  ;;  %2478 = vmatpush.msra.mxu2 %v1935_v19 }
 0x515   : > { %2480 = vmatpush.msra.mxu1 %v1934_v15  ;;  %2467 = vmatpush.msra.mxu3 %v1939_v14 }
 0x516   : > { %1965 = vmatpush.msra.mxu0 %v1932_v26  ;;  %2481 = vmatpush.msra.mxu2 %v1934_v15 }
 0x517   : > { %1887 = vperm.xlu1 %2782, %v2804_v13   ;;  %2483 = vmatpush.msra.mxu1 %v1933_v53 }
 0x518   : > { %1897 = vperm.xlu0 %2781, %v2806_v39   ;;  %2470 = vmatpush.msra.mxu3 %v1938_v23  ;;  %v2784_v39 = vld [vmem:[%s4731_s0] ss:$0 sm:$0xff] }
 0x519   : > { %2484 = vmatpush.msra.mxu2 %v1933_v53  ;;  %2486 = vmatpush.msra.mxu1 %v1932_v26 }
 0x51a   : > { %1872 = vperm.xlu2 %2783, %v2808_v34   ;;  %2473 = vmatpush.msra.mxu3 %v1937_v63 }
 0x51b   : > { %2487 = vmatpush.msra.mxu2 %v1932_v26  ;;  %1966 = vmatpush.msra.mxu0 %v1931_v48 }
 0x51c   : > { %2476 = vmatpush.msra.mxu3 %v1936_v6  ;;  %2489 = vmatpush.msra.mxu1 %v1931_v48 }
 0x51d   : > { %2490 = vmatpush.msra.mxu2 %v1931_v48 }
 0x51e   : > { %2479 = vmatpush.msra.mxu3 %v1935_v19 }
 0x51f   : > { %1892 = vperm.xlu1 %2782, %v2810_v0  }
 0x520   : > { %1902 = vperm.xlu0 %2781, %v2812_v51   ;;  %2482 = vmatpush.msra.mxu3 %v1934_v15 }
 0x522   : > { %1907 = vperm.xlu2 %2783, %v2814_v16   ;;  %2485 = vmatpush.msra.mxu3 %v1933_v53 }
 0x524   : > { %2488 = vmatpush.msra.mxu3 %v1932_v26 }
 0x526   : > { %2491 = vmatpush.msra.mxu3 %v1931_v48 }
 0x528   : > { %1912 = vperm.xlu0 %2781, %v2816_v22  }
 0x55c   : > { %v1878_v5 = vpop.permute.xlu2 %1877 }
 0x55d   : > { %v1923_v59 = vmul.f32 %v1878_v5, %v1795_v35 }
 0x55f   : > { %1991 = vmatmul.f32.vlgmr.msra.gmra.mxu2 %v1923_v59 }
 0x564   : > { %v1863_v4 = vpop.permute.xlu2 %1862 }
 0x565   : > { %v1920_v38 = vmul.f32 %v1863_v4, %v1792_v45 }
 0x56c   : > { %v1868_v56 = vpop.permute.xlu2 %1867 }
 0x56d   : > { %v1921_v25 = vmul.f32 %v1868_v56, %v1793_v47  ;;  %v2048_v47 = vld [vmem:[%s3413_s4] sm:$0xff] }
 0x571   : > { %v1858_v61 = vpop.permute.xlu1 %1857 }
 0x572   : > { %v1919_v46 = vmul.f32 %v1858_v61, %v1791_v41  ;;  %v1838_v33 = vpop.permute.xlu0 %1837 }
 0x573   : > { %v1915_v11 = vmul.f32 %v1838_v33, %v1787_v17 }
 0x574   : > { %1979 = vmatmul.f32.vlgmr.msra.gmra.mxu1 %v1919_v46  ;;  %v1873_v10 = vpop.permute.xlu2 %1872 }
 0x575   : > { %1967 = vmatmul.f32.vlgmr.msra.gmra.mxu0 %v1915_v11  ;;  %v1922_v29 = vmul.f32 %v1873_v10, %v1794_v7 }
 0x579   : > { %v1848_v28 = vpop.permute.xlu1 %1847 }
 0x57a   : > { %v1843_v43 = vpop.permute.xlu0 %1842  ;;  %v1917_v18 = vmul.f32 %v1848_v28, %v1789_v31 }
 0x57b   : > { %v1916_v49 = vmul.f32 %v1843_v43, %v1788_v24 }
 0x57c   : > { %1982 = vmatmul.f32.gmra.mxu1 %v1920_v38  ;;  %v1908_v37 = vpop.permute.xlu2 %1907 }
 0x57d   : > { %1970 = vmatmul.f32.gmra.mxu0 %v1916_v49  ;;  %v1929_v12 = vmul.f32 %v1908_v37, %v1801_v60 }
 0x581   : > { %v1883_v54 = vpop.permute.xlu1 %1882 }
 0x582   : > { %v1924_v21 = vmul.f32 %v1883_v54, %v1796_v1  ;;  %v1853_v8 = vpop.permute.xlu0 %1852 }
 0x583   : > { %v1918_v50 = vmul.f32 %v1853_v8, %v1790_v58 }
 0x584   : > { %1994 = vmatmul.f32.gmra.mxu2 %v1924_v21  ;;  %1985 = vmatmul.f32.gmra.mxu1 %v1921_v25  ;;  %v2049_v25 = vld [vmem:[%s3413_s4 + $0x8] sm:$0xff] }
 0x585   : > { %1973 = vmatmul.f32.gmra.mxu0 %v1917_v18 }
 0x589   : > { %v1888_v30 = vpop.permute.xlu1 %1887 }
 0x58a   : > { %v1925_v57 = vmul.f32 %v1888_v30, %v1797_v9  ;;  %v1898_v40 = vpop.permute.xlu0 %1897 }
 0x58b   : > { %v1927_v32 = vmul.f32 %v1898_v40, %v1799_v42 }
 0x58c   : > { %1997 = vmatmul.f32.gmra.mxu2 %v1925_v57  ;;  %1988 = vmatmul.f32.gmra.mxu1 %v1922_v29 }
 0x58d   : > { %1976 = vmatmul.f32.gmra.mxu0 %v1918_v50  ;;  %2003 = vmatmul.f32.vlgmr.msra.gmra.mxu3 %v1927_v32 }
 0x591   : > { %v1893_v62 = vpop.permute.xlu1 %1892 }
 0x592   : > { %v1926_v20 = vmul.f32 %v1893_v62, %v1798_v27  ;;  %v1903_v2 = vpop.permute.xlu0 %1902 }
 0x593   : > { %v1928_v36 = vmul.f32 %v1903_v2, %v1800_v3 }
 0x594   : > { %2000 = vmatmul.f32.gmra.mxu2 %v1926_v20 }
 0x595   : > { %2006 = vmatmul.f32.gmra.mxu3 %v1928_v36 }
 0x59a   : > { %v1913_v13 = vpop.permute.xlu0 %1912 }
 0x59b   : > { %v1930_v14 = vmul.f32 %v1913_v13, %v1802_v55 }
 0x59d   : > { %2009 = vmatmul.f32.gmra.mxu3 %v1929_v12 }
 0x5a5   : > { %2012 = vmatmul.f32.gmra.mxu3 %v1930_v14 }
 0x5e2   : > { %v1992_v35 = vpop.f32.mrf.mxu2 }
 0x5e3   : > { %v1993_v59 = vadd.f32 %v2784_v39, %v1992_v35 }
 0x5f1   : > { %v1980_v52 = vpop.f32.mrf.mxu1 }
 0x5f2   : > { %v1968_v23 = vpop.f32.mrf.mxu0  ;;  %v1981_v15 = vadd.f32 %v2784_v39, %v1980_v52 }
 0x5f3   : > { %v1969_v63 = vadd.f32 %v2784_v39, %v1968_v23 }
 0x5f5   : > { %2016 = vxpose.xlu1.b32.start [1/16] (narrow) %v1969_v63, 16 }
 0x5f9   : > { %v1983_v53 = vpop.f32.mrf.mxu1 }
 0x5fa   : > { %v1971_v44 = vpop.f32.mrf.mxu0  ;;  %v1984_v16 = vadd.f32 %v2784_v39, %v1983_v53 }
 0x5fb   : > { %v1972_v34 = vadd.f32 %v2784_v39, %v1971_v44 }
 0x5fd   : > { %2017 = vxpose.xlu1.b32.cont [2/16] (narrow) %v1972_v34, 16 }
 0x601   : > { %v1986_v26 = vpop.f32.mrf.mxu1 }
 0x602   : > { %v1974_v6 = vpop.f32.mrf.mxu0  ;;  %v1987_v22 = vadd.f32 %v2784_v39, %v1986_v26 }
 0x603   : > { %v1975_v0 = vadd.f32 %v2784_v39, %v1974_v6 }
 0x605   : > { %2018 = vxpose.xlu1.b32.cont [3/16] (narrow) %v1975_v0, 16 }
 0x607   : > { %v1995_v41 = vpop.f32.mrf.mxu2 }
 0x608   : > { %v1996_v17 = vadd.f32 %v2784_v39, %v1995_v41 }
 0x609   : > { %v1989_v48 = vpop.f32.mrf.mxu1 }
 0x60a   : > { %v1977_v19 = vpop.f32.mrf.mxu0  ;;  %v1990_v5 = vadd.f32 %v2784_v39, %v1989_v48 }
 0x60b   : > { %v1978_v51 = vadd.f32 %v2784_v39, %v1977_v19 }
 0x60d   : > { %2019 = vxpose.xlu1.b32.cont [4/16] (narrow) %v1978_v51, 16 }
 0x60f   : > { %v1998_v61 = vpop.f32.mrf.mxu2 }
 0x610   : > { %v1999_v46 = vadd.f32 %v2784_v39, %v1998_v61  ;;  %v2004_v11 = vpop.f32.mrf.mxu3 }
 0x611   : > { %v2005_v45 = vadd.f32 %v2784_v39, %v2004_v11 }
 0x615   : > { %2020 = vxpose.xlu1.b32.cont [5/16] (narrow) %v1981_v15, 16 }
 0x617   : > { %v2001_v33 = vpop.f32.mrf.mxu2 }
 0x618   : > { %v2002_v4 = vadd.f32 %v2784_v39, %v2001_v33  ;;  %v2007_v38 = vpop.f32.mrf.mxu3 }
 0x619   : > { %v2008_v24 = vadd.f32 %v2784_v39, %v2007_v38 }
 0x61d   : > { %2021 = vxpose.xlu1.b32.cont [6/16] (narrow) %v1984_v16, 16 }
 0x620   : > { %v2010_v28 = vpop.f32.mrf.mxu3 }
 0x621   : > { %v2011_v43 = vadd.f32 %v2784_v39, %v2010_v28 }
 0x625   : > { %2022 = vxpose.xlu1.b32.cont [7/16] (narrow) %v1987_v22, 16 }
 0x628   : > { %v2013_v49 = vpop.f32.mrf.mxu3 }
 0x629   : > { %v2014_v56 = vadd.f32 %v2784_v39, %v2013_v49 }
 0x62d   : > { %2023 = vxpose.xlu1.b32.cont [8/16] (narrow) %v1990_v5, 16 }
 0x635   : > { %2024 = vxpose.xlu1.b32.cont [9/16] (narrow) %v1993_v59, 16 }
 0x63d   : > { %2025 = vxpose.xlu1.b32.cont [10/16] (narrow) %v1996_v17, 16 }
 0x645   : > { %2026 = vxpose.xlu1.b32.cont [11/16] (narrow) %v1999_v46, 16 }
 0x64d   : > { %2027 = vxpose.xlu1.b32.cont [12/16] (narrow) %v2002_v4, 16 }
 0x655   : > { %2028 = vxpose.xlu1.b32.cont [13/16] (narrow) %v2005_v45, 16 }
 0x65d   : > { %2029 = vxpose.xlu1.b32.cont [14/16] (narrow) %v2008_v24, 16 }
 0x665   : > { %2030 = vxpose.xlu1.b32.cont [15/16] (narrow) %v2011_v43, 16 }
 0x66d   : > { %2031 = vxpose.xlu1.b32.end [16/16] (narrow) %v2014_v56, 16 }
 0x699   : > { %v2032_v1 = vpop.trf.xlu1 }
 0x69a   : > { %v2050_v31 = vadd.f32 %v2048_v47, %v2032_v1 }
 0x69c   : > { %2052 = vst [vmem:[%s3444_s17] sm:$0xff] %v2050_v31 }
 0x6a1   : > { %v2033_v54 = vpop.trf.xlu1 }
 0x6a2   : > { %v2051_v21 = vadd.f32 %v2049_v25, %v2033_v54 }
 0x6a4   : > { %2053 = vst [vmem:[%s3444_s17 + $0x8] sm:$0xff] %v2051_v21 }
 0x6a5 PF: > { %s4732_s1 = sld [smem:[#allocation26_spill]]  ;;  %s2068_s28 = sshll.u32 %s3444_s17, 4  ;;  %s2069_s28 = int_to_ptr.vmem [resolvable:$true] %s2068_s28 }
 0x6a6   : > { %s4733_s25 = sld [smem:[#allocation25_spill]]  ;;  %s2055_s4 = scalar_lea.sflag [#allocation7], %s3409_s16 }
 0x6a7   : > { %s4735_s26 = sld [smem:[#allocation62_spill]] }
 0x6ab   : > { %s2296_s27 = sshll.u32 %s4732_s1, 2 }
 0x6ac   : > { %s2065_s6 = sadd.s32 %s4733_s25, %s2296_s27 }
 0x6ad   : > { %s2297_s13 = sshll.u32 %s2065_s6, 3  ;;  %s4736_s19 = smov %s4735_s26 }
 0x6ae   : > { %s2067_s15 = scalar_lea.hbm %s4735_s26, %s2297_s13  ;;  %s2987_s17 = scalar_lea.hbm %s4736_s19, 64 }
 0x6af   : > { %s2070_s24 = sshll.u32 %s2067_s15, 4  ;;  %s2071_s24 = int_to_ptr.hbm [resolvable:$true] %s2070_s24 }
 0x6b0   : > { %s2981_s11 = sshra.s32 %s2071_s24, 4  ;;  %s2982_s11 = int_to_ptr.hbm [resolvable:$true] %s2981_s11 }
 0x6b1   : > { %s2983_s14 = scalar_lea.hbm %s2982_s11, 16  ;;  %p2988_p8 = scmp.lt.s32.totalorder %s2982_s11, %s4736_s19 }
 0x6b2   : > { %p2984_p11 = scmp.ne.s32.totalorder %s2982_s11, %s2983_s14  ;;  %p2989_p10 = scmp.lt.s32.totalorder %s2987_s17, %s2983_s14 }
 0x6b4   : > { %p2985_p2 = pnand %p2984_p11, %p3296_p6  ;;  %p2990_p13 = por %p2989_p10, %p2988_p8 }
 0x6b6   : > { %p2986_p9 = pneg %p2985_p2 }
 0x6b8   : > { %p2991_p0 = pnand %p2990_p13, %p2986_p9 }
 0x6ba   : > { %2994 = shalt.err (!%p2991_p0)
}
 0x6bb   : > { %s3132_s16 = smov 128   ;;  %s3133_s1 = smov 256  }
 0x6bc   : > { %s3134_s25 = smov 8  }
 0x6bd   : > { %2504 = dma.vmem_to_hbm [thread:$0]  (%p3296_p6), %s2069_s28, 256, %s2071_s24, %s2055_s4, %s3132_s16, %s3133_s1, %s3134_s25  }
 0x6be PF: > { %s4737_s27 = sld [smem:[#allocation21_spill]]  ;;  %p2530_p3 = scmp.ge.s32.totalorder %s3121_s9, 2 }
 0x6c0   : > { %p2524_p7 = pnand %p2530_p3, %p3308_p12 }
 0x6c2   : > { %p2525_p5 = pneg %p2524_p7 }
 0x6c4   : > { %s2085_s13 = sand.u32 1, %s4737_s27  }
 0x6c5   : > { %s2086_s29 = scalar_lea.sflag [#allocation7], %s2085_s13 }
 0x6c6   : > { %3068 = dma.done.wait (%p2525_p5), %s2086_s29, 256  }
 0x6c7   : > { %3070 = vsyncadd (%p2525_p5), %s2086_s29, 4294967040  ;;  %s28_s9 = sadd.s32 1, %s3121_s9   ;;  %s4740_s24 = sld [smem:[#allocation22_spill]] }
 0x6c8   : > { %p4524_p1 = scmp.ge.s32.totalorder %s28_s9, 10   ;;  %s4741_s25 = sld [smem:[#allocation23_spill]] }
 0x6c9   : > { %s4742_s26 = sld [smem:[#allocation35_spill]]  ;;  %s4746_s21 = smov %s3077_s22 }
 0x6ca   : > { %s4743_s12 = sld [smem:[#allocation29_spill]]  ;;  %s4747_s22 = smov %s3081_s23 }
 0x6cb   : > { %s4744_s15 = sld [smem:[#allocation30_spill]]  ;;  %s4748_s23 = smov %s3376_s10 }
 0x6cc   : > { %s4745_s4 = sld [smem:[#allocation33_spill]]  ;;  %s4749_s27 = smov %s3109_s30 }
 0x6cd   : > { %s4750_s28 = smov %s3113_s7  ;;  %s4751_s29 = smov %s3117_s8 }
 0x6ce   :  { %27 = sbr.rel (!%p4524_p1) target bundleno = 20 (0x14), region = 146 }
 0x6d0   : > { %s4752_s30 = smov %s4743_s12 }
 0x6d1   : > { %s4753_s7 = smov %s4744_s15 }
 0x6d2   : > { %s4754_s8 = smov %s4745_s4 }
 0x6d3   :  { %2092 = vsyncpa [#allocation6], 1 }
 0x6d4   :  { %2094 = vsyncpa [#allocation6 + $0x1], 1 }
 0x6d5   :  { %2095 = vsyncpa [#allocation9], 1 }
 0x6d6   :  { %2097 = vsyncpa [#allocation9 + $0x1], 1 }
 0x6d7   :  { %2098 = vsyncpa [#allocation12], 1 }
 0x6d8   :  { %2100 = vsyncpa [#allocation12 + $0x1], 1 }
 0x6d9   :  { %2101 = vsyncpa [#allocation7], 1 }
 0x6da   :  { %2103 = vsyncpa [#allocation7 + $0x1], 1 }

</bundles_post_ra>
